<compile_context>
chip_gen: v7x
topology: tpu7x:2x2x1
jax: 0.10.0
libtpu: 0.0.40
codegen_flags: <defaults>
</compile_context>

<pallas_src>
import numpy as np
import jax
import jax.numpy as jnp
from jax.experimental import pallas as pl
from jax.experimental.pallas import tpu as pltpu

# ---- static model geometry ---------------------------------------------------
SEQ_LEN = 41                       # Linear(128,64) after the conv stack forces L=41
C_IN = 4
F0_RAW = C_IN * SEQ_LEN            # 164 raw input lanes (channel-major: c*41+l)
F0 = 256                           # padded input width; lane 164 = constant 1

C1, K1 = 16, 4                     # Conv1d(4,16,4): 41 -> 38
L1_CONV = SEQ_LEN - K1 + 1         # 38
P1_K, P1_S = 5, 1                  # MaxPool1d(5, stride=1): 38 -> 34
L1_POOL = (L1_CONV - P1_K) // P1_S + 1     # 34
B1 = 640                           # block width: 34*16=544 -> 640 (lane aligned)
W1_COLS = P1_K * B1                # 3200

C2, K2 = 32, 4                     # Conv1d(16,32,4): 34 -> 31
L2_CONV = L1_POOL - K2 + 1         # 31
P2_K, P2_S = 4, 4                  # MaxPool1d(4): 31 -> 7
L2_POOL = (L2_CONV - P2_K) // P2_S + 1     # 7
B2 = 256                           # 7*32=224 -> 256
W2_COLS = P2_K * B2                # 1024

C3, K3 = 64, 4                     # Conv1d(32,64,4): 7 -> 4
L3_CONV = L2_POOL - K3 + 1         # 4
P3_K, P3_S = 2, 2                  # MaxPool1d(2): 4 -> 2
L3_POOL = (L3_CONV - P3_K) // P3_S + 1     # 2
B3 = 256                           # 2*64=128 -> 256 (room for the bias carrier)
W3_COLS = P3_K * B3                # 512

H1, H2 = 64, 32                    # classifier hidden widths
FLAT = L3_POOL * C3                # 128
OUT_LANES = 128                    # lane-dense output slab width


def _elu(v):
    # ELU(alpha=1) in f32: x if x > 0 else exp(x) - 1 (exp clamped for safety)
    return jnp.where(v > 0.0, v, jnp.exp(jnp.minimum(v, 0.0)) - 1.0)


# ---- kernel ------------------------------------------------------------------
def cnnnet_plus3_kernel(x_ref, w1_ref, w2_ref, w3_ref, w12_ref, wf3_ref, out_ref):
    # Conv1d(4,16,4)+bias+ELU: one bf16 MXU push emitting 5 pre-shifted,
    # lane-aligned copies of the conv output -> (TB, 3200) f32.
    h = _elu(jnp.dot(x_ref[...], w1_ref[...], preferred_element_type=jnp.float32))
    # MaxPool1d(5, stride=1): elementwise max over 5 aligned 640-lane blocks.
    p = h[:, 0:B1]
    for k in range(1, P1_K):
        p = jnp.maximum(p, h[:, k * B1:(k + 1) * B1])

    # Conv1d(16,32,4)+bias+ELU (stride-4 subsampling folded into the blocks).
    h = _elu(jnp.dot(p.astype(jnp.bfloat16), w2_ref[...],
                     preferred_element_type=jnp.float32))
    # MaxPool1d(4, stride=4): max over 4 aligned 256-lane blocks.
    p = h[:, 0:B2]
    for k in range(1, P2_K):
        p = jnp.maximum(p, h[:, k * B2:(k + 1) * B2])

    # Conv1d(32,64,4)+bias+ELU (stride-2 subsampling folded into the blocks).
    h = _elu(jnp.dot(p.astype(jnp.bfloat16), w3_ref[...],
                     preferred_element_type=jnp.float32))
    # MaxPool1d(2, stride=2): max over 2 aligned 256-lane blocks.
    p = jnp.maximum(h[:, 0:B3], h[:, B3:2 * B3])

    # TODO(synk): Dropout(0.8) is identity at inference -> omitted.
    # Fused Linear(128,64) @ Linear(64,32) (+biases via carrier lane), then ELU.
    z = _elu(jnp.dot(p.astype(jnp.bfloat16), w12_ref[...],
                     preferred_element_type=jnp.float32))
    # Linear(32,1) replicated across 128 output lanes (+bias via carrier) + sigmoid.
    z = jnp.dot(z.astype(jnp.bfloat16), wf3_ref[...],
                preferred_element_type=jnp.float32)
    out_ref[...] = pl.reciprocal(1.0 + jnp.exp(-z), approx=True)


# ---- parameter construction / packing ----------------------------------------
def init_params(key):
    """Synthetic params in PyTorch layouts (Conv1d: (Cout,Cin,K); Linear: (out,in))."""
    ks = jax.random.split(key, 6)
    w1 = jax.random.normal(ks[0], (16, 4, 4), jnp.float32) * 0.1
    w2 = jax.random.normal(ks[1], (32, 16, 4), jnp.float32) * 0.1
    w3 = jax.random.normal(ks[2], (64, 32, 4), jnp.float32) * 0.1
    b1 = jnp.full((16,), 1e-4, jnp.float32)
    b2 = jnp.full((32,), 1e-4, jnp.float32)
    b3 = jnp.full((64,), 1e-4, jnp.float32)
    fw1 = jax.random.normal(ks[3], (64, 128), jnp.float32) * 0.01
    fw2 = jax.random.normal(ks[4], (32, 64), jnp.float32) * 0.01
    fw3 = jax.random.normal(ks[5], (1, 32), jnp.float32) * 0.01
    fb1 = jnp.full((64,), 1e-4, jnp.float32)
    fb2 = jnp.full((32,), 1e-4, jnp.float32)
    fb3 = jnp.full((1,), 1e-4, jnp.float32)
    return (w1, b1, w2, b2, w3, b3, fw1, fb1, fw2, fb2, fw3, fb3)


def _conv_block_matrix(w, b, l_in, pool_k, pool_s, n_in_rows, block_w,
                       channel_major_in=False):
    """Conv1d (+bias, pre-ELU) lowered to a banded matmul that emits `pool_k`
    pre-shifted copies of the conv output (one per pool offset), each padded to
    `block_w` 128-aligned lanes and carrying a constant-1 bias column."""
    w = np.asarray(w, np.float32)
    b = np.asarray(b, np.float32)
    c_out, c_in, ksz = w.shape
    l_conv = l_in - ksz + 1
    n_pool = (l_conv - pool_k) // pool_s + 1
    w_kio = np.transpose(w, (2, 1, 0))                       # (K, Cin, Cout)
    carrier_row = l_in * c_in                                # constant-1 input lane
    out = np.zeros((n_in_rows, pool_k * block_w), np.float32)
    for k in range(pool_k):
        m = np.zeros((l_in, c_in, n_pool, c_out), np.float32)
        for p in range(n_pool):
            q = pool_s * p + k                               # conv position for this block
            for kk in range(ksz):
                m[q + kk, :, p, :] += w_kio[kk]
        if channel_major_in:
            m = m.transpose(1, 0, 2, 3)                      # rows = ci*l_in + l
        col0 = k * block_w
        out[:l_in * c_in, col0:col0 + n_pool * c_out] = m.reshape(l_in * c_in,
                                                                  n_pool * c_out)
        out[carrier_row, col0:col0 + n_pool * c_out] = np.tile(b, n_pool)  # bias
        out[carrier_row, col0 + n_pool * c_out] = 1.0        # regenerate the carrier
    return out


def pack_params(params):
    """Convert PyTorch-layout params into the fused bf16 kernel operands."""
    (w1, b1, w2, b2, w3, b3, fw1, fb1, fw2, fb2, fw3, fb3) = params

    w1m = _conv_block_matrix(w1, b1, SEQ_LEN, P1_K, P1_S, F0, B1,
                             channel_major_in=True)                  # (256, 3200)
    w2m = _conv_block_matrix(w2, b2, L1_POOL, P2_K, P2_S, B1, B2)    # (640, 1024)
    w3m = _conv_block_matrix(w3, b3, L2_POOL, P3_K, P3_S, B2, B3)    # (256, 512)

    fw1n, fw2n, fw3n = (np.asarray(a, np.float32) for a in (fw1, fw2, fw3))
    fb1n, fb2n, fb3n = (np.asarray(a, np.float32) for a in (fb1, fb2, fb3))

    # Fuse Linear(128,64) and Linear(64,32) (no activation in between -> exact).
    W12 = fw1n.T @ fw2n.T                                    # (128, 32) torch-flatten rows
    b12 = fb1n @ fw2n.T + fb2n                               # (32,)
    w12m = np.zeros((B3, OUT_LANES), np.float32)
    # torch Flatten index = c*2+p ; our layout row = p*64+c -> reorder rows.
    w12m[:FLAT, :H2] = W12.reshape(C3, L3_POOL, H2).transpose(1, 0, 2).reshape(FLAT, H2)
    w12m[FLAT, :H2] = b12                                    # bias via carrier lane
    w12m[FLAT, H2] = 1.0                                     # carrier for the final bias

    # Linear(32,1) replicated across 128 lanes -> lane-dense unmasked store.
    wf3m = np.zeros((OUT_LANES, OUT_LANES), np.float32)
    wf3m[:H2, :] = np.tile(fw3n.T, (1, OUT_LANES))
    wf3m[H2, :] = fb3n[0]

    to_bf16 = lambda a: jnp.asarray(a, dtype=jnp.bfloat16)
    return tuple(to_bf16(a) for a in (w1m, w2m, w3m, w12m, wf3m))


# ---- wrapper -------------------------------------------------------------------
def _round_up(x, m):
    return (x + m - 1) // m * m


@jax.jit
def cnnnet_plus3_forward(x_ncl, kernel_params):
    """x_ncl: (N, 4, 41) float32 in PyTorch NCL layout -> (N, 1) probabilities."""
    n = x_ncl.shape[0]
    # Consume NCL directly (channel-major Toeplitz rows) — no transpose pass.
    x = x_ncl.astype(jnp.float32).reshape(n, F0_RAW)
    x = jnp.concatenate(
        [x,
         jnp.ones((n, 1), jnp.float32),                       # constant-1 bias lane (164)
         jnp.zeros((n, F0 - F0_RAW - 1), jnp.float32)],
        axis=1).astype(jnp.bfloat16)                          # (N, 256) bf16

    # Batch tile: at least 2 grid steps when possible (v7x megacore), cap at 1024
    # rows (VMEM: ~16 MiB f32 intermediates + ~8 MiB buffers at tb=1024).
    tb = min(1024, _round_up(max((n + 1) // 2, 1), 16))
    n_pad = _round_up(n, tb)
    if n_pad != n:
        x = jnp.pad(x, ((0, n_pad - n), (0, 0)))

    w1m, w2m, w3m, w12m, wf3m = kernel_params

    def fixed(a):   # full-array block, constant index -> stays VMEM-resident
        return pl.BlockSpec(a.shape, lambda i: (0, 0))

    out = pl.pallas_call(
        cnnnet_plus3_kernel,
        out_shape=jax.ShapeDtypeStruct((n_pad, OUT_LANES), jnp.float32),
        grid=(n_pad // tb,),
        in_specs=[
            pl.BlockSpec((tb, F0), lambda i: (i, 0)),
            fixed(w1m), fixed(w2m), fixed(w3m), fixed(w12m), fixed(wf3m),
        ],
        out_specs=pl.BlockSpec((tb, OUT_LANES), lambda i: (i, 0)),
        compiler_params=pltpu.CompilerParams(
            dimension_semantics=("parallel",),
            vmem_limit_bytes=48 * 1024 * 1024),
    )(x, w1m, w2m, w3m, w12m, wf3m)

    return out[:n, 0:1]


# ---- pure-JAX (non-Pallas) reference, for validation ----------------------------
def reference_forward(x_ncl, params):
    (w1, b1, w2, b2, w3, b3, fw1, fb1, fw2, fb2, fw3, fb3) = params

    def elu(v):
        return jnp.where(v > 0.0, v, jnp.exp(jnp.minimum(v, 0.0)) - 1.0)

    def conv(x, w_t, b):                          # x: (N, L, Cin), w_t: (Cout, Cin, K)
        k_sz = w_t.shape[2]
        l_out = x.shape[1] - k_sz + 1
        w = jnp.transpose(w_t, (2, 1, 0))
        acc = sum(jnp.einsum('nlc,co->nlo', x[:, k:k + l_out, :], w[k])
                  for k in range(k_sz))
        return acc + b

    def pool(x, k_sz, stride):
        l_out = (x.shape[1] - k_sz) // stride + 1
        return jnp.stack([x[:, l * stride:l * stride + k_sz, :].max(axis=1)
                          for l in range(l_out)], axis=1)

    h = jnp.transpose(x_ncl, (0, 2, 1)).astype(jnp.float32)
    h = pool(elu(conv(h, w1, b1)), 5, 1)
    h = pool(elu(conv(h, w2, b2)), 4, 4)
    h = pool(elu(conv(h, w3, b3)), 2, 2)                              # (N, 2, 64)
    flat = jnp.transpose(h, (0, 2, 1)).reshape(h.shape[0], FLAT)      # torch Flatten order
    z = flat @ fw1.T + fb1
    z = z @ fw2.T + fb2
    z = elu(z)
    z = z @ fw3.T + fb3
    return jax.nn.sigmoid(z)


if __name__ == "__main__":
    key = jax.random.PRNGKey(0)
    k_x, k_p = jax.random.split(key)
    batch = 2
    x = jax.random.normal(k_x, (batch, C_IN, SEQ_LEN), jnp.float32)

    params = init_params(k_p)
    kparams = pack_params(params)

    out = cnnnet_plus3_forward(x, kparams)
    jax.block_until_ready(out)
    assert out.shape == (batch, 1)

    ref = reference_forward(x, params)
    assert bool(jnp.all(jnp.abs(out - ref) < 5e-3)), "kernel/reference mismatch"
    print("KERNEL_OK")
</pallas_src>

<mosaic_0001>
module attributes {stable_mosaic.version = 11 : i64} {
  func.func @cnnnet_plus3_kernel(%arg0: i32, %arg1: memref<16x256xbf16, #tpu.memory_space<vmem>>, %arg2: memref<256x3200xbf16, #tpu.memory_space<vmem>>, %arg3: memref<640x1024xbf16, #tpu.memory_space<vmem>>, %arg4: memref<256x512xbf16, #tpu.memory_space<vmem>>, %arg5: memref<256x128xbf16, #tpu.memory_space<vmem>>, %arg6: memref<128x128xbf16, #tpu.memory_space<vmem>>, %arg7: memref<16x128xf32, #tpu.memory_space<vmem>>) attributes {dimension_semantics = [#tpu.dimension_semantics<parallel>], iteration_bounds = array<i64: 1>, scalar_prefetch = 0 : i64, scratch_operands = 0 : i64, tpu.core_type = #tpu.core_type<tc>, window_params = [{transform_indices = @transform_0, window_bounds = array<i64: 16, 256>}, {pipeline_mode = #tpu.pipeline_mode<synchronous>, transform_indices = @transform_1, window_bounds = array<i64: 256, 3200>}, {pipeline_mode = #tpu.pipeline_mode<synchronous>, transform_indices = @transform_2, window_bounds = array<i64: 640, 1024>}, {pipeline_mode = #tpu.pipeline_mode<synchronous>, transform_indices = @transform_3, window_bounds = array<i64: 256, 512>}, {pipeline_mode = #tpu.pipeline_mode<synchronous>, transform_indices = @transform_4, window_bounds = array<i64: 256, 128>}, {pipeline_mode = #tpu.pipeline_mode<synchronous>, transform_indices = @transform_5, window_bounds = array<i64: 128, 128>}, {transform_indices = @transform_6, window_bounds = array<i64: 16, 128>}]} {
    %c0 = arith.constant 0 : index
    %c0_0 = arith.constant 0 : index
    %0 = vector.load %arg1[%c0, %c0_0] : memref<16x256xbf16, #tpu.memory_space<vmem>>, vector<16x256xbf16>
    %c0_1 = arith.constant 0 : index
    %c0_2 = arith.constant 0 : index
    %1 = vector.load %arg2[%c0_1, %c0_2] : memref<256x3200xbf16, #tpu.memory_space<vmem>>, vector<256x3200xbf16>
    %cst = arith.constant dense<0.000000e+00> : vector<16x3200xf32>
    %2 = tpu.matmul %0, %1, %cst {dimension_numbers = #tpu.dot_dimension_numbers<[1], [0], [0], [1], [0, 0, 1, 1], [], []>} : vector<16x256xbf16>, vector<256x3200xbf16>, vector<16x3200xf32> -> vector<16x3200xf32>
    %cst_3 = arith.constant 0.000000e+00 : f32
    %3 = vector.broadcast %cst_3 : f32 to vector<16x3200xf32>
    %4 = arith.cmpf ogt, %2, %3 : vector<16x3200xf32>
    %cst_4 = arith.constant 0.000000e+00 : f32
    %5 = vector.broadcast %cst_4 : f32 to vector<16x3200xf32>
    %6 = arith.minimumf %2, %5 : vector<16x3200xf32>
    %7 = math.exp %6 : vector<16x3200xf32>
    %cst_5 = arith.constant 1.000000e+00 : f32
    %8 = vector.broadcast %cst_5 : f32 to vector<16x3200xf32>
    %9 = arith.subf %7, %8 : vector<16x3200xf32>
    %10 = arith.select %4, %2, %9 : vector<16x3200xi1>, vector<16x3200xf32>
    %11 = vector.extract_strided_slice %10 {offsets = [0, 0], sizes = [16, 640], strides = [1, 1]} : vector<16x3200xf32> to vector<16x640xf32>
    %12 = vector.extract_strided_slice %10 {offsets = [0, 640], sizes = [16, 640], strides = [1, 1]} : vector<16x3200xf32> to vector<16x640xf32>
    %13 = arith.maximumf %11, %12 : vector<16x640xf32>
    %14 = vector.extract_strided_slice %10 {offsets = [0, 1280], sizes = [16, 640], strides = [1, 1]} : vector<16x3200xf32> to vector<16x640xf32>
    %15 = arith.maximumf %13, %14 : vector<16x640xf32>
    %16 = vector.extract_strided_slice %10 {offsets = [0, 1920], sizes = [16, 640], strides = [1, 1]} : vector<16x3200xf32> to vector<16x640xf32>
    %17 = arith.maximumf %15, %16 : vector<16x640xf32>
    %18 = vector.extract_strided_slice %10 {offsets = [0, 2560], sizes = [16, 640], strides = [1, 1]} : vector<16x3200xf32> to vector<16x640xf32>
    %19 = arith.maximumf %17, %18 : vector<16x640xf32>
    %20 = arith.truncf %19 : vector<16x640xf32> to vector<16x640xbf16>
    %c0_6 = arith.constant 0 : index
    %c0_7 = arith.constant 0 : index
    %21 = vector.load %arg3[%c0_6, %c0_7] : memref<640x1024xbf16, #tpu.memory_space<vmem>>, vector<640x1024xbf16>
    %cst_8 = arith.constant dense<0.000000e+00> : vector<16x1024xf32>
    %22 = tpu.matmul %20, %21, %cst_8 {dimension_numbers = #tpu.dot_dimension_numbers<[1], [0], [0], [1], [0, 0, 1, 1], [], []>} : vector<16x640xbf16>, vector<640x1024xbf16>, vector<16x1024xf32> -> vector<16x1024xf32>
    %cst_9 = arith.constant 0.000000e+00 : f32
    %23 = vector.broadcast %cst_9 : f32 to vector<16x1024xf32>
    %24 = arith.cmpf ogt, %22, %23 : vector<16x1024xf32>
    %cst_10 = arith.constant 0.000000e+00 : f32
    %25 = vector.broadcast %cst_10 : f32 to vector<16x1024xf32>
    %26 = arith.minimumf %22, %25 : vector<16x1024xf32>
    %27 = math.exp %26 : vector<16x1024xf32>
    %cst_11 = arith.constant 1.000000e+00 : f32
    %28 = vector.broadcast %cst_11 : f32 to vector<16x1024xf32>
    %29 = arith.subf %27, %28 : vector<16x1024xf32>
    %30 = arith.select %24, %22, %29 : vector<16x1024xi1>, vector<16x1024xf32>
    %31 = vector.extract_strided_slice %30 {offsets = [0, 0], sizes = [16, 256], strides = [1, 1]} : vector<16x1024xf32> to vector<16x256xf32>
    %32 = vector.extract_strided_slice %30 {offsets = [0, 256], sizes = [16, 256], strides = [1, 1]} : vector<16x1024xf32> to vector<16x256xf32>
    %33 = arith.maximumf %31, %32 : vector<16x256xf32>
    %34 = vector.extract_strided_slice %30 {offsets = [0, 512], sizes = [16, 256], strides = [1, 1]} : vector<16x1024xf32> to vector<16x256xf32>
    %35 = arith.maximumf %33, %34 : vector<16x256xf32>
    %36 = vector.extract_strided_slice %30 {offsets = [0, 768], sizes = [16, 256], strides = [1, 1]} : vector<16x1024xf32> to vector<16x256xf32>
    %37 = arith.maximumf %35, %36 : vector<16x256xf32>
    %38 = arith.truncf %37 : vector<16x256xf32> to vector<16x256xbf16>
    %c0_12 = arith.constant 0 : index
    %c0_13 = arith.constant 0 : index
    %39 = vector.load %arg4[%c0_12, %c0_13] : memref<256x512xbf16, #tpu.memory_space<vmem>>, vector<256x512xbf16>
    %cst_14 = arith.constant dense<0.000000e+00> : vector<16x512xf32>
    %40 = tpu.matmul %38, %39, %cst_14 {dimension_numbers = #tpu.dot_dimension_numbers<[1], [0], [0], [1], [0, 0, 1, 1], [], []>} : vector<16x256xbf16>, vector<256x512xbf16>, vector<16x512xf32> -> vector<16x512xf32>
    %cst_15 = arith.constant 0.000000e+00 : f32
    %41 = vector.broadcast %cst_15 : f32 to vector<16x512xf32>
    %42 = arith.cmpf ogt, %40, %41 : vector<16x512xf32>
    %cst_16 = arith.constant 0.000000e+00 : f32
    %43 = vector.broadcast %cst_16 : f32 to vector<16x512xf32>
    %44 = arith.minimumf %40, %43 : vector<16x512xf32>
    %45 = math.exp %44 : vector<16x512xf32>
    %cst_17 = arith.constant 1.000000e+00 : f32
    %46 = vector.broadcast %cst_17 : f32 to vector<16x512xf32>
    %47 = arith.subf %45, %46 : vector<16x512xf32>
    %48 = arith.select %42, %40, %47 : vector<16x512xi1>, vector<16x512xf32>
    %49 = vector.extract_strided_slice %48 {offsets = [0, 0], sizes = [16, 256], strides = [1, 1]} : vector<16x512xf32> to vector<16x256xf32>
    %50 = vector.extract_strided_slice %48 {offsets = [0, 256], sizes = [16, 256], strides = [1, 1]} : vector<16x512xf32> to vector<16x256xf32>
    %51 = arith.maximumf %49, %50 : vector<16x256xf32>
    %52 = arith.truncf %51 : vector<16x256xf32> to vector<16x256xbf16>
    %c0_18 = arith.constant 0 : index
    %c0_19 = arith.constant 0 : index
    %53 = vector.load %arg5[%c0_18, %c0_19] : memref<256x128xbf16, #tpu.memory_space<vmem>>, vector<256x128xbf16>
    %cst_20 = arith.constant dense<0.000000e+00> : vector<16x128xf32>
    %54 = tpu.matmul %52, %53, %cst_20 {dimension_numbers = #tpu.dot_dimension_numbers<[1], [0], [0], [1], [0, 0, 1, 1], [], []>} : vector<16x256xbf16>, vector<256x128xbf16>, vector<16x128xf32> -> vector<16x128xf32>
    %cst_21 = arith.constant 0.000000e+00 : f32
    %55 = vector.broadcast %cst_21 : f32 to vector<16x128xf32>
    %56 = arith.cmpf ogt, %54, %55 : vector<16x128xf32>
    %cst_22 = arith.constant 0.000000e+00 : f32
    %57 = vector.broadcast %cst_22 : f32 to vector<16x128xf32>
    %58 = arith.minimumf %54, %57 : vector<16x128xf32>
    %59 = math.exp %58 : vector<16x128xf32>
    %cst_23 = arith.constant 1.000000e+00 : f32
    %60 = vector.broadcast %cst_23 : f32 to vector<16x128xf32>
    %61 = arith.subf %59, %60 : vector<16x128xf32>
    %62 = arith.select %56, %54, %61 : vector<16x128xi1>, vector<16x128xf32>
    %63 = arith.truncf %62 : vector<16x128xf32> to vector<16x128xbf16>
    %c0_24 = arith.constant 0 : index
    %c0_25 = arith.constant 0 : index
    %64 = vector.load %arg6[%c0_24, %c0_25] : memref<128x128xbf16, #tpu.memory_space<vmem>>, vector<128x128xbf16>
    %cst_26 = arith.constant dense<0.000000e+00> : vector<16x128xf32>
    %65 = tpu.matmul %63, %64, %cst_26 {dimension_numbers = #tpu.dot_dimension_numbers<[1], [0], [0], [1], [0, 0, 1, 1], [], []>} : vector<16x128xbf16>, vector<128x128xbf16>, vector<16x128xf32> -> vector<16x128xf32>
    %cst_27 = arith.constant 0.000000e+00 : f32
    %66 = vector.broadcast %cst_27 : f32 to vector<16x128xf32>
    %67 = arith.subf %66, %65 : vector<16x128xf32>
    %68 = math.exp %67 : vector<16x128xf32>
    %cst_28 = arith.constant 1.000000e+00 : f32
    %69 = vector.broadcast %cst_28 : f32 to vector<16x128xf32>
    %70 = arith.addf %69, %68 : vector<16x128xf32>
    %71 = tpu.reciprocal %70 {approx = true} : vector<16x128xf32> -> vector<16x128xf32>
    %c0_29 = arith.constant 0 : index
    %c0_30 = arith.constant 0 : index
    %72 = vector.load %arg7[%c0_29, %c0_30] : memref<16x128xf32, #tpu.memory_space<vmem>>, vector<16x128xf32>
    tpu.vector_store %arg7[%c0_29, %c0_30], %71 {strides = array<i32>} : memref<16x128xf32, #tpu.memory_space<vmem>>, vector<16x128xf32>,
    return
  }
  func.func @transform_0(%arg0: i32) -> (i32, i32) {
    %c0_i32 = arith.constant 0 : i32
    %c0_i32_0 = arith.constant 0 : i32
    return %arg0, %c0_i32 : i32, i32
  }
  func.func @transform_1(%arg0: i32) -> (i32, i32) {
    %c0_i32 = arith.constant 0 : i32
    %c0_i32_0 = arith.constant 0 : i32
    %c0_i32_1 = arith.constant 0 : i32
    return %c0_i32, %c0_i32_0 : i32, i32
  }
  func.func @transform_2(%arg0: i32) -> (i32, i32) {
    %c0_i32 = arith.constant 0 : i32
    %c0_i32_0 = arith.constant 0 : i32
    %c0_i32_1 = arith.constant 0 : i32
    return %c0_i32, %c0_i32_0 : i32, i32
  }
  func.func @transform_3(%arg0: i32) -> (i32, i32) {
    %c0_i32 = arith.constant 0 : i32
    %c0_i32_0 = arith.constant 0 : i32
    %c0_i32_1 = arith.constant 0 : i32
    return %c0_i32, %c0_i32_0 : i32, i32
  }
  func.func @transform_4(%arg0: i32) -> (i32, i32) {
    %c0_i32 = arith.constant 0 : i32
    %c0_i32_0 = arith.constant 0 : i32
    %c0_i32_1 = arith.constant 0 : i32
    return %c0_i32, %c0_i32_0 : i32, i32
  }
  func.func @transform_5(%arg0: i32) -> (i32, i32) {
    %c0_i32 = arith.constant 0 : i32
    %c0_i32_0 = arith.constant 0 : i32
    %c0_i32_1 = arith.constant 0 : i32
    return %c0_i32, %c0_i32_0 : i32, i32
  }
  func.func @transform_6(%arg0: i32) -> (i32, i32) {
    %c0_i32 = arith.constant 0 : i32
    %c0_i32_0 = arith.constant 0 : i32
    return %arg0, %c0_i32 : i32, i32
  }
}

</mosaic_0001>

<bundles_post_ra>
// kernel: cnnnet_plus3_forward.1
= control target key start
LH: loop header
LB: loop body
LE: loop exit
PB: predicated region body
PF: predicated region fallthrough
CT: control target
= control target key end

     0   :  { %11 = vsyncpa [#allocation3], 0  ;;  %s9472_s0 = inlined_call_operand.vmem [shape: bf16[16,256], index: 0, kind: input, shape index: {}]   ;;  %s9473_s1 = inlined_call_operand.hbm [shape: bf16[256,3200], index: 1, kind: input, shape index: {}]   ;;  %s9474_s2 = inlined_call_operand.hbm [shape: bf16[640,1024], index: 2, kind: input, shape index: {}]   ;;  %s9475_s3 = inlined_call_operand.hbm [shape: bf16[256,512], index: 3, kind: input, shape index: {}]   ;;  %s9476_s4 = inlined_call_operand.hbm [shape: bf16[256,128], index: 4, kind: input, shape index: {}]   ;;  %s9477_s5 = inlined_call_operand.hbm [shape: bf16[128,128], index: 5, kind: input, shape index: {}]   ;;  %s9478_s6 = inlined_call_operand.vmem [shape: f32[16,128], index: 6, kind: output, shape index: {}]  }
   0x1   :  { %12 = vsyncpa [#allocation5], 0 }
   0x2   :  { %13 = vsyncpa [#allocation8], 0  ;;  %s8816_s21 = smov [#allocation4]   ;;  %s8700_s25 = scalar_lea.hbm %s9474_s2, 40960 }
   0x3   :  { %s33_s22 = sshll.u32 %s8816_s21, 4  ;;  %p8701_p0 = scmp.ne.s32.totalorder %s9474_s2, %s8700_s25  ;;  %s34_s22 = int_to_ptr.vmem [resolvable:$true] %s33_s22 }
   0x4   :  { %p8704_p1 = scmp.lt.u32.totalorder %s8700_s25, %s9474_s2 }
   0x6   :  { %p8706_p2 = pnand %p8704_p1, %p8701_p0 }
   0x8   :  { %8709 = shalt.err (!%p8706_p2)
}
   0x9   :  { %s8710_s30 = scalar_lea.vmem %s34_s22, 40960  ;;  %p8715_p4 = scmp.lt.s32.totalorder %s34_s22, %s34_s22 }
   0xa   :  { %p8711_p3 = scmp.ne.s32.totalorder %s34_s22, %s8710_s30  ;;  %p8716_p5 = scmp.lt.s32.totalorder %s8710_s30, %s8710_s30 }
   0xc   :  { %p8717_p6 = por %p8716_p5, %p8715_p4 }
   0xe   :  { %p8718_p7 = pnand %p8717_p6, %p8711_p3 }
  0x10   :  { %8721 = shalt.err (!%p8718_p7)
}
  0x11   :  { %s8817_s7 = smov 512   ;;  %s8818_s8 = smov 32  }
  0x12   :  { %39 = dma.hbm_to_vmem [thread:$0]  %s9474_s2, 40960, %s34_s22, [#allocation5], %s8817_s7, %s8817_s7, %s8818_s8  }
  0x13   :  { %s8819_s11 = smov [#allocation7]   ;;  %s8722_s15 = scalar_lea.hbm %s9476_s4, 2048 }
  0x14   :  { %s57_s12 = sshll.u32 %s8819_s11, 4  ;;  %p8723_p8 = scmp.ne.s32.totalorder %s9476_s4, %s8722_s15  ;;  %s58_s12 = int_to_ptr.vmem [resolvable:$true] %s57_s12 }
  0x15   :  { %p8726_p9 = scmp.lt.u32.totalorder %s8722_s15, %s9476_s4 }
  0x17   :  { %p8728_p10 = pnand %p8726_p9, %p8723_p8 }
  0x19   :  { %8731 = shalt.err (!%p8728_p10)
}
  0x1a   :  { %s8732_s20 = scalar_lea.vmem %s58_s12, 2048  ;;  %p8737_p12 = scmp.lt.s32.totalorder %s58_s12, %s58_s12 }
  0x1b   :  { %p8733_p11 = scmp.ne.s32.totalorder %s58_s12, %s8732_s20  ;;  %p8738_p13 = scmp.lt.s32.totalorder %s8732_s20, %s8732_s20 }
  0x1d   :  { %p8739_p0 = por %p8738_p13, %p8737_p12 }
  0x1f   :  { %p8740_p1 = pnand %p8739_p0, %p8733_p11 }
  0x21   :  { %8743 = shalt.err (!%p8740_p1)
}
  0x22   :  { %s8820_s2 = smov 64   ;;  %s8821_s21 = smov 4  }
  0x23   :  { %63 = dma.hbm_to_vmem [thread:$0]  %s9476_s4, 2048, %s58_s12, [#allocation8], %s8820_s2, %s8820_s2, %s8821_s21  }
  0x24   :  { %s8822_s24 = smov [#allocation2]   ;;  %s8744_s28 = scalar_lea.hbm %s9473_s1, 51200 }
  0x25   :  { %s21_s25 = sshll.u32 %s8822_s24, 4  ;;  %p8745_p2 = scmp.ne.s32.totalorder %s9473_s1, %s8744_s28  ;;  %s22_s25 = int_to_ptr.vmem [resolvable:$true] %s21_s25 }
  0x26   :  { %p8748_p3 = scmp.lt.u32.totalorder %s8744_s28, %s9473_s1 }
  0x28   :  { %p8750_p4 = pnand %p8748_p3, %p8745_p2 }
  0x2a   :  { %8753 = shalt.err (!%p8750_p4)
}
  0x2b   :  { %s8754_s9 = scalar_lea.vmem %s22_s25, 51200  ;;  %p8759_p6 = scmp.lt.s32.totalorder %s22_s25, %s22_s25 }
  0x2c   :  { %p8755_p5 = scmp.ne.s32.totalorder %s22_s25, %s8754_s9  ;;  %p8760_p7 = scmp.lt.s32.totalorder %s8754_s9, %s8754_s9 }
  0x2e   :  { %p8761_p8 = por %p8760_p7, %p8759_p6 }
  0x30   :  { %p8762_p9 = pnand %p8761_p8, %p8755_p5 }
  0x32   :  { %8765 = shalt.err (!%p8762_p9)
}
  0x33   :  { %s8823_s4 = smov 1600   ;;  %s8824_s10 = smov 100  }
  0x34   :  { %27 = dma.hbm_to_vmem [thread:$0]  %s9473_s1, 51200, %s22_s25, [#allocation3], %s8823_s4, %s8823_s4, %s8824_s10  }
  0x35   :  { %s8825_s13 = smov [#allocation6]   ;;  %s8766_s17 = scalar_lea.hbm %s9475_s3, 8192 }
  0x36   :  { %s45_s14 = sshll.u32 %s8825_s13, 4  ;;  %p8767_p10 = scmp.ne.s32.totalorder %s9475_s3, %s8766_s17  ;;  %s46_s14 = int_to_ptr.vmem [resolvable:$true] %s45_s14 }
  0x37   :  { %p8770_p11 = scmp.lt.u32.totalorder %s8766_s17, %s9475_s3 }
  0x39   :  { %p8772_p12 = pnand %p8770_p11, %p8767_p10 }
  0x3b   :  { %8775 = shalt.err (!%p8772_p12)
}
  0x3c   :  { %s8776_s23 = scalar_lea.vmem %s46_s14, 8192  ;;  %p8781_p0 = scmp.lt.s32.totalorder %s46_s14, %s46_s14 }
  0x3d   :  { %p8777_p13 = scmp.ne.s32.totalorder %s46_s14, %s8776_s23  ;;  %p8782_p1 = scmp.lt.s32.totalorder %s8776_s23, %s8776_s23 }
  0x3f   :  { %p8783_p2 = por %p8782_p1, %p8781_p0 }
  0x41   :  { %p8784_p3 = pnand %p8783_p2, %p8777_p13 }
  0x43   :  { %8787 = shalt.err (!%p8784_p3)
}
  0x44   :  { %s8826_s1 = smov 256   ;;  %s8827_s24 = smov 16  }
  0x45   :  { %51 = dma.hbm_to_vmem [thread:$0]  %s9475_s3, 8192, %s46_s14, [#allocation5], %s8826_s1, %s8826_s1, %s8827_s24  }
  0x46   :  { %s8828_s27 = smov [#allocation9]   ;;  %s8788_s7 = scalar_lea.hbm %s9477_s5, 1024 }
  0x47   :  { %s69_s28 = sshll.u32 %s8828_s27, 4  ;;  %p8789_p4 = scmp.ne.s32.totalorder %s9477_s5, %s8788_s7  ;;  %s70_s28 = int_to_ptr.vmem [resolvable:$true] %s69_s28 }
  0x48   :  { %p8792_p5 = scmp.lt.u32.totalorder %s8788_s7, %s9477_s5 }
  0x4a   :  { %p8794_p6 = pnand %p8792_p5, %p8789_p4 }
  0x4c   :  { %8797 = shalt.err (!%p8794_p6)
}
  0x4d   :  { %s8798_s11 = scalar_lea.vmem %s70_s28, 1024  ;;  %p8803_p8 = scmp.lt.s32.totalorder %s70_s28, %s70_s28 }
  0x4e   :  { %p8799_p7 = scmp.ne.s32.totalorder %s70_s28, %s8798_s11  ;;  %p8804_p9 = scmp.lt.s32.totalorder %s8798_s11, %s8798_s11 }
  0x50   :  { %p8805_p10 = por %p8804_p9, %p8803_p8 }
  0x52   :  { %p8806_p11 = pnand %p8805_p10, %p8799_p7 }
  0x54   :  { %8809 = shalt.err (!%p8806_p11)
}
  0x55   :  { %75 = dma.hbm_to_vmem [thread:$0]  %s9477_s5, 1024, %s70_s28, [#allocation8], %s8820_s2, %s8820_s2, %s8821_s21  }
  0x56   :  { %8810 = dma.done.wait [#allocation3], 51200  }
  0x57   :  { %8811 = vsyncadd [#allocation3], 4294916096 }
  0x58   :  { %8812 = dma.done.wait [#allocation5], 49152  }
  0x59   :  { %8813 = vsyncadd [#allocation5], 4294918144 }
  0x5a   :  { %8814 = dma.done.wait [#allocation8], 3072  }
  0x5b   :  { %8815 = vsyncadd [#allocation8], 4294964224  ;;  %v7821_v0 = vld [vmem:[#allocation2 + $0x4] ss:$100 sps:$4 sm:$0xff]   ;;  %v7823_v1 = vld [vmem:[#allocation2 + $0xc] ss:$100 sps:$4 sm:$0xff]  }
  0x5c   :  { %2536 = vmatprep.subr.bf16.mxu0 %v7821_v0  ;;  %v7825_v2 = vld [vmem:[#allocation2] ss:$100 sps:$4 sm:$0xff]   ;;  %v7826_v3 = vld [vmem:[#allocation2 + $0x8] ss:$100 sps:$4 sm:$0xff]   ;;  %2579 = vmatprep.subr.bf16.mxu1 %v7823_v1  ;;  %v7829_v5 = vld [vmem:[#allocation2 + $0xd4] ss:$100 sps:$4 sm:$0xff]  }
  0x5d   :  { %v7827_v4 = vld [vmem:[#allocation2 + $0xcc] ss:$100 sps:$4 sm:$0xff]   ;;  %2537 = vmatpush1.bf16.msra.mxu0 %v7825_v2  ;;  %2580 = vmatpush1.bf16.msra.mxu1 %v7826_v3  ;;  %v7833_v8 = vld [vmem:[#allocation2 + $0x194] ss:$100 sps:$4 sm:$0xff]   ;;  %v7835_v9 = vld [vmem:[#allocation2 + $0x19c] ss:$100 sps:$4 sm:$0xff]  }
  0x5e   :  { %v7831_v6 = vld [vmem:[#allocation2 + $0xc8] ss:$100 sps:$4 sm:$0xff]   ;;  %2538 = vmatprep.subr.bf16.mxu0 %v7827_v4  ;;  %v7832_v7 = vld [vmem:[#allocation2 + $0xd0] ss:$100 sps:$4 sm:$0xff]   ;;  %2581 = vmatprep.subr.bf16.mxu1 %v7829_v5  ;;  %v7838_v11 = vld [vmem:[#allocation2 + $0x198] ss:$100 sps:$4 sm:$0xff]  }
  0x5f   :  { %v7837_v10 = vld [vmem:[#allocation2 + $0x190] ss:$100 sps:$4 sm:$0xff]   ;;  %v7839_v12 = vld [vmem:[#allocation2 + $0x25c] ss:$100 sps:$4 sm:$0xff]   ;;  %v7841_v13 = vld [vmem:[#allocation2 + $0x264] ss:$100 sps:$4 sm:$0xff]  }
  0x60   :  { %v7843_v14 = vld [vmem:[#allocation2 + $0x258] ss:$100 sps:$4 sm:$0xff]   ;;  %v7844_v15 = vld [vmem:[#allocation2 + $0x260] ss:$100 sps:$4 sm:$0xff]   ;;  %v7847_v17 = vld [vmem:[#allocation2 + $0x32c] ss:$100 sps:$4 sm:$0xff]  }
  0x61   :  { %2539 = vmatpush1.bf16.msra.mxu0 %v7831_v6  ;;  %2582 = vmatpush1.bf16.msra.mxu1 %v7832_v7  ;;  %v7845_v16 = vld [vmem:[#allocation2 + $0x324] ss:$100 sps:$4 sm:$0xff]   ;;  %v7851_v20 = vld [vmem:[#allocation2 + $0x3ec] ss:$100 sps:$4 sm:$0xff]   ;;  %v7853_v21 = vld [vmem:[#allocation2 + $0x3f4] ss:$100 sps:$4 sm:$0xff]  }
  0x62   :  { %2540 = vmatprep.subr.bf16.mxu0 %v7833_v8  ;;  %2583 = vmatprep.subr.bf16.mxu1 %v7835_v9  ;;  %v7849_v18 = vld [vmem:[#allocation2 + $0x320] ss:$100 sps:$4 sm:$0xff]   ;;  %v7850_v19 = vld [vmem:[#allocation2 + $0x328] ss:$100 sps:$4 sm:$0xff]   ;;  %v7856_v23 = vld [vmem:[#allocation2 + $0x3f0] ss:$100 sps:$4 sm:$0xff]  }
  0x63   :  { %v7855_v22 = vld [vmem:[#allocation2 + $0x3e8] ss:$100 sps:$4 sm:$0xff]   ;;  %v7857_v24 = vld [vmem:[#allocation2 + $0x4b4] ss:$100 sps:$4 sm:$0xff]   ;;  %v7859_v25 = vld [vmem:[#allocation2 + $0x4bc] ss:$100 sps:$4 sm:$0xff]  }
  0x64   :  { %v7861_v26 = vld [vmem:[#allocation2 + $0x4b0] ss:$100 sps:$4 sm:$0xff]   ;;  %v7862_v27 = vld [vmem:[#allocation2 + $0x4b8] ss:$100 sps:$4 sm:$0xff]   ;;  %v7865_v29 = vld [vmem:[#allocation2 + $0x584] ss:$100 sps:$4 sm:$0xff]  }
  0x65   :  { %2541 = vmatpush1.bf16.msra.mxu0 %v7837_v10  ;;  %2584 = vmatpush1.bf16.msra.mxu1 %v7838_v11  ;;  %v7863_v28 = vld [vmem:[#allocation2 + $0x57c] ss:$100 sps:$4 sm:$0xff]   ;;  %v7869_v32 = vld [vmem:[#allocation2 + $0x644] ss:$100 sps:$4 sm:$0xff]   ;;  %v7871_v33 = vld [vmem:[#allocation2 + $0x64c] ss:$100 sps:$4 sm:$0xff]  }
  0x66   :  { %2542 = vmatprep.subr.bf16.mxu0 %v7839_v12  ;;  %2585 = vmatprep.subr.bf16.mxu1 %v7841_v13  ;;  %v7867_v30 = vld [vmem:[#allocation2 + $0x578] ss:$100 sps:$4 sm:$0xff]   ;;  %v7868_v31 = vld [vmem:[#allocation2 + $0x580] ss:$100 sps:$4 sm:$0xff]   ;;  %v7874_v35 = vld [vmem:[#allocation2 + $0x648] ss:$100 sps:$4 sm:$0xff]  }
  0x67   :  { %v7873_v34 = vld [vmem:[#allocation2 + $0x640] ss:$100 sps:$4 sm:$0xff]   ;;  %v7875_v36 = vld [vmem:[#allocation2 + $0x70c] ss:$100 sps:$4 sm:$0xff]   ;;  %v7877_v37 = vld [vmem:[#allocation2 + $0x714] ss:$100 sps:$4 sm:$0xff]  }
  0x68   :  { %v7879_v38 = vld [vmem:[#allocation2 + $0x708] ss:$100 sps:$4 sm:$0xff]   ;;  %v7880_v39 = vld [vmem:[#allocation2 + $0x710] ss:$100 sps:$4 sm:$0xff]   ;;  %v7883_v41 = vld [vmem:[#allocation2 + $0x7dc] ss:$100 sps:$4 sm:$0xff]  }
  0x69   :  { %2543 = vmatpush1.bf16.msra.mxu0 %v7843_v14  ;;  %2586 = vmatpush1.bf16.msra.mxu1 %v7844_v15  ;;  %v7881_v40 = vld [vmem:[#allocation2 + $0x7d4] ss:$100 sps:$4 sm:$0xff]   ;;  %v7887_v44 = vld [vmem:[#allocation2 + $0x89c] ss:$100 sps:$4 sm:$0xff]   ;;  %v7889_v45 = vld [vmem:[#allocation2 + $0x8a4] ss:$100 sps:$4 sm:$0xff]  }
  0x6a   :  { %2544 = vmatprep.subr.bf16.mxu0 %v7845_v16  ;;  %2587 = vmatprep.subr.bf16.mxu1 %v7847_v17  ;;  %v7885_v42 = vld [vmem:[#allocation2 + $0x7d0] ss:$100 sps:$4 sm:$0xff]   ;;  %v7886_v43 = vld [vmem:[#allocation2 + $0x7d8] ss:$100 sps:$4 sm:$0xff]   ;;  %v7892_v47 = vld [vmem:[#allocation2 + $0x8a0] ss:$100 sps:$4 sm:$0xff]  }
  0x6b   :  { %v7891_v46 = vld [vmem:[#allocation2 + $0x898] ss:$100 sps:$4 sm:$0xff]   ;;  %v8936_v48 = vld [vmem:[%s9472_s0 + $0x4] ss:$8 sps:$4 sm:$0xff]   ;;  %v7904_v56 = vld [vmem:[#allocation2 + $0xa30] ss:$100 sps:$4 sm:$0xff]  }
  0x6c   :  { %v7893_v49 = vld [vmem:[#allocation2 + $0x964] ss:$100 sps:$4 sm:$0xff]   ;;  %v7895_v50 = vld [vmem:[#allocation2 + $0x96c] ss:$100 sps:$4 sm:$0xff]   ;;  %2568 = vmatprep.mubr.bf16.mxu0 %v8936_v48  ;;  %2611 = vmatprep.mubr.bf16.mxu1 %v8936_v48  ;;  %v7901_v54 = vld [vmem:[#allocation2 + $0xa34] ss:$100 sps:$4 sm:$0xff]  }
  0x6d   :  { %2545 = vmatpush1.bf16.msra.mxu0 %v7849_v18  ;;  %2588 = vmatpush1.bf16.msra.mxu1 %v7850_v19  ;;  %v7897_v51 = vld [vmem:[#allocation2 + $0x960] ss:$100 sps:$4 sm:$0xff]   ;;  %v7898_v52 = vld [vmem:[#allocation2 + $0x968] ss:$100 sps:$4 sm:$0xff]   ;;  %v7905_v57 = vld [vmem:[#allocation2 + $0xaf4] ss:$100 sps:$4 sm:$0xff]  }
  0x6e   :  { %2546 = vmatprep.subr.bf16.mxu0 %v7851_v20  ;;  %2589 = vmatprep.subr.bf16.mxu1 %v7853_v21  ;;  %v7899_v53 = vld [vmem:[#allocation2 + $0xa2c] ss:$100 sps:$4 sm:$0xff]   ;;  %v7907_v58 = vld [vmem:[#allocation2 + $0xafc] ss:$100 sps:$4 sm:$0xff]   ;;  %v7913_v62 = vld [vmem:[#allocation2 + $0xbc4] ss:$100 sps:$4 sm:$0xff]  }
  0x6f   :  { %v7903_v55 = vld [vmem:[#allocation2 + $0xa28] ss:$100 sps:$4 sm:$0xff]   ;;  %v7909_v59 = vld [vmem:[#allocation2 + $0xaf0] ss:$100 sps:$4 sm:$0xff]   ;;  %v7910_v60 = vld [vmem:[#allocation2 + $0xaf8] ss:$100 sps:$4 sm:$0xff]  }
  0x70   :  { %v7911_v61 = vld [vmem:[#allocation2 + $0xbbc] ss:$100 sps:$4 sm:$0xff]   ;;  %v7922_v1 = vld [vmem:[#allocation2 + $0x14] ss:$100 sps:$4 sm:$0xff]   ;;  %v7931_v7 = vld [vmem:[#allocation2 + $0xe4] ss:$100 sps:$4 sm:$0xff]  }
  0x71   :  { %2547 = vmatpush1.bf16.msra.mxu0 %v7855_v22  ;;  %2590 = vmatpush1.bf16.msra.mxu1 %v7856_v23  ;;  %v7915_v63 = vld [vmem:[#allocation2 + $0xbb8] ss:$100 sps:$4 sm:$0xff]   ;;  %v7916_v0 = vld [vmem:[#allocation2 + $0xbc0] ss:$100 sps:$4 sm:$0xff]   ;;  %v7920_v4 = vld [vmem:[#allocation2 + $0x10] ss:$100 sps:$4 sm:$0xff]  }
  0x72   :  { %2548 = vmatprep.subr.bf16.mxu0 %v7857_v24  ;;  %2591 = vmatprep.subr.bf16.mxu1 %v7859_v25  ;;  %v7925_v2 = vld [vmem:[#allocation2 + $0x1c] ss:$100 sps:$4 sm:$0xff]   ;;  %v7934_v10 = vld [vmem:[#allocation2 + $0x1a4] ss:$100 sps:$4 sm:$0xff]   ;;  %v7937_v11 = vld [vmem:[#allocation2 + $0x1ac] ss:$100 sps:$4 sm:$0xff]  }
  0x73   :  { %v8943_v3 = vld [vmem:[%s9472_s0] ss:$8 sps:$4 sm:$0xff]   ;;  %v7923_v5 = vld [vmem:[#allocation2 + $0x18] ss:$100 sps:$4 sm:$0xff]   ;;  %v7940_v14 = vld [vmem:[#allocation2 + $0x26c] ss:$100 sps:$4 sm:$0xff]  }
  0x74   :  { %v7928_v6 = vld [vmem:[#allocation2 + $0xdc] ss:$100 sps:$4 sm:$0xff]   ;;  %v7935_v13 = vld [vmem:[#allocation2 + $0x1a8] ss:$100 sps:$4 sm:$0xff]   ;;  %v7943_v15 = vld [vmem:[#allocation2 + $0x274] ss:$100 sps:$4 sm:$0xff]  }
  0x75   :  { %2549 = vmatpush1.bf16.msra.mxu0 %v7861_v26  ;;  %2592 = vmatpush1.bf16.msra.mxu1 %v7862_v27  ;;  %v7926_v8 = vld [vmem:[#allocation2 + $0xd8] ss:$100 sps:$4 sm:$0xff]   ;;  %v7929_v9 = vld [vmem:[#allocation2 + $0xe0] ss:$100 sps:$4 sm:$0xff]   ;;  %v7938_v16 = vld [vmem:[#allocation2 + $0x268] ss:$100 sps:$4 sm:$0xff]  }
  0x76   :  { %2550 = vmatprep.subr.bf16.mxu0 %v7863_v28  ;;  %2593 = vmatprep.subr.bf16.mxu1 %v7865_v29  ;;  %v7932_v12 = vld [vmem:[#allocation2 + $0x1a0] ss:$100 sps:$4 sm:$0xff]   ;;  %v7941_v17 = vld [vmem:[#allocation2 + $0x270] ss:$100 sps:$4 sm:$0xff]   ;;  %v7947_v21 = vld [vmem:[#allocation2 + $0x338] ss:$100 sps:$4 sm:$0xff]  }
  0x77   :  { %v7946_v18 = vld [vmem:[#allocation2 + $0x334] ss:$100 sps:$4 sm:$0xff]   ;;  %v7949_v19 = vld [vmem:[#allocation2 + $0x33c] ss:$100 sps:$4 sm:$0xff]   ;;  %v7955_v23 = vld [vmem:[#allocation2 + $0x404] ss:$100 sps:$4 sm:$0xff]  }
  0x78   :  { %v7944_v20 = vld [vmem:[#allocation2 + $0x330] ss:$100 sps:$4 sm:$0xff]   ;;  %v7952_v22 = vld [vmem:[#allocation2 + $0x3fc] ss:$100 sps:$4 sm:$0xff]   ;;  %v7958_v26 = vld [vmem:[#allocation2 + $0x4c4] ss:$100 sps:$4 sm:$0xff]  }
  0x79   :  { %2551 = vmatpush1.bf16.msra.mxu0 %v7867_v30  ;;  %2594 = vmatpush1.bf16.msra.mxu1 %v7868_v31  ;;  %v7950_v24 = vld [vmem:[#allocation2 + $0x3f8] ss:$100 sps:$4 sm:$0xff]   ;;  %v7953_v25 = vld [vmem:[#allocation2 + $0x400] ss:$100 sps:$4 sm:$0xff]   ;;  %v7961_v27 = vld [vmem:[#allocation2 + $0x4cc] ss:$100 sps:$4 sm:$0xff]  }
  0x7a   :  { %2552 = vmatprep.subr.bf16.mxu0 %v7869_v32  ;;  %2595 = vmatprep.subr.bf16.mxu1 %v7871_v33  ;;  %v7956_v28 = vld [vmem:[#allocation2 + $0x4c0] ss:$100 sps:$4 sm:$0xff]   ;;  %v7959_v29 = vld [vmem:[#allocation2 + $0x4c8] ss:$100 sps:$4 sm:$0xff]   ;;  %v7967_v31 = vld [vmem:[#allocation2 + $0x594] ss:$100 sps:$4 sm:$0xff]  }
  0x7b   :  { %v7964_v30 = vld [vmem:[#allocation2 + $0x58c] ss:$100 sps:$4 sm:$0xff]  }
  0x7c   :  { %v7962_v32 = vld [vmem:[#allocation2 + $0x588] ss:$100 sps:$4 sm:$0xff]   ;;  %v7965_v33 = vld [vmem:[#allocation2 + $0x590] ss:$100 sps:$4 sm:$0xff]  }
  0x7d   :  { %2553 = vmatpush1.bf16.msra.mxu0 %v7873_v34  ;;  %2596 = vmatpush1.bf16.msra.mxu1 %v7874_v35  ;;  %v7970_v34 = vld [vmem:[#allocation2 + $0x654] ss:$100 sps:$4 sm:$0xff]   ;;  %v7973_v35 = vld [vmem:[#allocation2 + $0x65c] ss:$100 sps:$4 sm:$0xff]  }
  0x7e   :  { %2554 = vmatprep.subr.bf16.mxu0 %v7875_v36  ;;  %2597 = vmatprep.subr.bf16.mxu1 %v7877_v37  ;;  %v7968_v36 = vld [vmem:[#allocation2 + $0x650] ss:$100 sps:$4 sm:$0xff]   ;;  %v7971_v37 = vld [vmem:[#allocation2 + $0x658] ss:$100 sps:$4 sm:$0xff]  }
  0x81   :  { %2555 = vmatpush1.bf16.msra.mxu0 %v7879_v38  ;;  %2598 = vmatpush1.bf16.msra.mxu1 %v7880_v39  ;;  %v7976_v38 = vld [vmem:[#allocation2 + $0x71c] ss:$100 sps:$4 sm:$0xff]   ;;  %v7979_v39 = vld [vmem:[#allocation2 + $0x724] ss:$100 sps:$4 sm:$0xff]  }
  0x82   :  { %2556 = vmatprep.subr.bf16.mxu0 %v7881_v40  ;;  %2599 = vmatprep.subr.bf16.mxu1 %v7883_v41  ;;  %v7974_v40 = vld [vmem:[#allocation2 + $0x718] ss:$100 sps:$4 sm:$0xff]   ;;  %v7977_v41 = vld [vmem:[#allocation2 + $0x720] ss:$100 sps:$4 sm:$0xff]  }
  0x85   :  { %2557 = vmatpush1.bf16.msra.mxu0 %v7885_v42  ;;  %2600 = vmatpush1.bf16.msra.mxu1 %v7886_v43  ;;  %v7982_v42 = vld [vmem:[#allocation2 + $0x7e4] ss:$100 sps:$4 sm:$0xff]   ;;  %v7985_v43 = vld [vmem:[#allocation2 + $0x7ec] ss:$100 sps:$4 sm:$0xff]  }
  0x86   :  { %2558 = vmatprep.subr.bf16.mxu0 %v7887_v44  ;;  %2601 = vmatprep.subr.bf16.mxu1 %v7889_v45  ;;  %v7980_v44 = vld [vmem:[#allocation2 + $0x7e0] ss:$100 sps:$4 sm:$0xff]   ;;  %v7983_v45 = vld [vmem:[#allocation2 + $0x7e8] ss:$100 sps:$4 sm:$0xff]  }
  0x89   :  { %2559 = vmatpush1.bf16.msra.mxu0 %v7891_v46  ;;  %2602 = vmatpush1.bf16.msra.mxu1 %v7892_v47  ;;  %v7988_v46 = vld [vmem:[#allocation2 + $0x8ac] ss:$100 sps:$4 sm:$0xff]   ;;  %v7991_v47 = vld [vmem:[#allocation2 + $0x8b4] ss:$100 sps:$4 sm:$0xff]  }
  0x8a   :  { %2560 = vmatprep.subr.bf16.mxu0 %v7893_v49  ;;  %2603 = vmatprep.subr.bf16.mxu1 %v7895_v50  ;;  %v7986_v49 = vld [vmem:[#allocation2 + $0x8a8] ss:$100 sps:$4 sm:$0xff]   ;;  %v7989_v50 = vld [vmem:[#allocation2 + $0x8b0] ss:$100 sps:$4 sm:$0xff]  }
  0x8d   :  { %2561 = vmatpush1.bf16.msra.mxu0 %v7897_v51  ;;  %2604 = vmatpush1.bf16.msra.mxu1 %v7898_v52  ;;  %v7994_v51 = vld [vmem:[#allocation2 + $0x974] ss:$100 sps:$4 sm:$0xff]   ;;  %v7997_v52 = vld [vmem:[#allocation2 + $0x97c] ss:$100 sps:$4 sm:$0xff]  }
  0x8e   :  { %2562 = vmatprep.subr.bf16.mxu0 %v7899_v53  ;;  %2605 = vmatprep.subr.bf16.mxu1 %v7901_v54  ;;  %v7992_v53 = vld [vmem:[#allocation2 + $0x970] ss:$100 sps:$4 sm:$0xff]   ;;  %v7995_v54 = vld [vmem:[#allocation2 + $0x978] ss:$100 sps:$4 sm:$0xff]  }
  0x91   :  { %2563 = vmatpush1.bf16.msra.mxu0 %v7903_v55  ;;  %2606 = vmatpush1.bf16.msra.mxu1 %v7904_v56  ;;  %v8000_v55 = vld [vmem:[#allocation2 + $0xa3c] ss:$100 sps:$4 sm:$0xff]   ;;  %v8003_v56 = vld [vmem:[#allocation2 + $0xa44] ss:$100 sps:$4 sm:$0xff]  }
  0x92   :  { %2564 = vmatprep.subr.bf16.mxu0 %v7905_v57  ;;  %2607 = vmatprep.subr.bf16.mxu1 %v7907_v58  ;;  %v7998_v57 = vld [vmem:[#allocation2 + $0xa38] ss:$100 sps:$4 sm:$0xff]   ;;  %v8001_v58 = vld [vmem:[#allocation2 + $0xa40] ss:$100 sps:$4 sm:$0xff]  }
  0x95   :  { %2565 = vmatpush1.bf16.msra.mxu0 %v7909_v59  ;;  %2608 = vmatpush1.bf16.msra.mxu1 %v7910_v60  ;;  %v8006_v59 = vld [vmem:[#allocation2 + $0xb04] ss:$100 sps:$4 sm:$0xff]   ;;  %v8009_v60 = vld [vmem:[#allocation2 + $0xb0c] ss:$100 sps:$4 sm:$0xff]  }
  0x96   :  { %2566 = vmatprep.subr.bf16.mxu0 %v7911_v61  ;;  %2609 = vmatprep.subr.bf16.mxu1 %v7913_v62  ;;  %v8004_v61 = vld [vmem:[#allocation2 + $0xb00] ss:$100 sps:$4 sm:$0xff]   ;;  %v8007_v62 = vld [vmem:[#allocation2 + $0xb08] ss:$100 sps:$4 sm:$0xff]  }
  0x99   :  { %2567 = vmatpush1.bf16.msra.mxu0 %v7915_v63  ;;  %2610 = vmatpush1.bf16.msra.mxu1 %v7916_v0  ;;  %v8012_v63 = vld [vmem:[#allocation2 + $0xbcc] ss:$100 sps:$4 sm:$0xff]   ;;  %v8015_v0 = vld [vmem:[#allocation2 + $0xbd4] ss:$100 sps:$4 sm:$0xff]  }
  0x9a   :  { %2622 = vmatprep.subr.bf16.mxu0 %v7922_v1  ;;  %2665 = vmatprep.subr.bf16.mxu1 %v7925_v2  ;;  %v8010_v1 = vld [vmem:[#allocation2 + $0xbc8] ss:$100 sps:$4 sm:$0xff]   ;;  %v8013_v2 = vld [vmem:[#allocation2 + $0xbd0] ss:$100 sps:$4 sm:$0xff]  }
  0x9c   :  { %2569 = vmatmul.mubr.bf16.vlgmr.msra.gmra.mrb[0].mxu0 %v8943_v3  ;;  %2612 = vmatmul.mubr.bf16.vlgmr.msra.gmra.mrb[0].mxu1 %v8943_v3 }
  0x9d   :  { %2623 = vmatpush1.bf16.msra.mxu0 %v7920_v4  ;;  %2666 = vmatpush1.bf16.msra.mxu1 %v7923_v5  ;;  %v8018_v4 = vld [vmem:[#allocation2 + $0x24] ss:$100 sps:$4 sm:$0xff]   ;;  %v8021_v5 = vld [vmem:[#allocation2 + $0x2c] ss:$100 sps:$4 sm:$0xff]  }
  0x9e   :  { %2624 = vmatprep.subr.bf16.mxu0 %v7928_v6  ;;  %2667 = vmatprep.subr.bf16.mxu1 %v7931_v7  ;;  %v8016_v6 = vld [vmem:[#allocation2 + $0x20] ss:$100 sps:$4 sm:$0xff]   ;;  %v8019_v7 = vld [vmem:[#allocation2 + $0x28] ss:$100 sps:$4 sm:$0xff]  }
  0x9f   :  { %2654 = vmatprep.mubr.bf16.mxu0 %v8936_v48  ;;  %2697 = vmatprep.mubr.bf16.mxu1 %v8936_v48 }
  0xa1   :  { %2625 = vmatpush1.bf16.msra.mxu0 %v7926_v8  ;;  %2668 = vmatpush1.bf16.msra.mxu1 %v7929_v9  ;;  %v8024_v8 = vld [vmem:[#allocation2 + $0xec] ss:$100 sps:$4 sm:$0xff]   ;;  %v8027_v9 = vld [vmem:[#allocation2 + $0xf4] ss:$100 sps:$4 sm:$0xff]  }
  0xa2   :  { %2626 = vmatprep.subr.bf16.mxu0 %v7934_v10  ;;  %2669 = vmatprep.subr.bf16.mxu1 %v7937_v11  ;;  %v8022_v10 = vld [vmem:[#allocation2 + $0xe8] ss:$100 sps:$4 sm:$0xff]   ;;  %v8025_v11 = vld [vmem:[#allocation2 + $0xf0] ss:$100 sps:$4 sm:$0xff]  }
  0xa5   :  { %2627 = vmatpush1.bf16.msra.mxu0 %v7932_v12  ;;  %2670 = vmatpush1.bf16.msra.mxu1 %v7935_v13  ;;  %v8030_v12 = vld [vmem:[#allocation2 + $0x1b4] ss:$100 sps:$4 sm:$0xff]   ;;  %v8033_v13 = vld [vmem:[#allocation2 + $0x1bc] ss:$100 sps:$4 sm:$0xff]  }
  0xa6   :  { %2628 = vmatprep.subr.bf16.mxu0 %v7940_v14  ;;  %2671 = vmatprep.subr.bf16.mxu1 %v7943_v15  ;;  %v8028_v14 = vld [vmem:[#allocation2 + $0x1b0] ss:$100 sps:$4 sm:$0xff]   ;;  %v8031_v15 = vld [vmem:[#allocation2 + $0x1b8] ss:$100 sps:$4 sm:$0xff]  }
  0xa9   :  { %2629 = vmatpush1.bf16.msra.mxu0 %v7938_v16  ;;  %2672 = vmatpush1.bf16.msra.mxu1 %v7941_v17  ;;  %v8036_v16 = vld [vmem:[#allocation2 + $0x27c] ss:$100 sps:$4 sm:$0xff]   ;;  %v8039_v17 = vld [vmem:[#allocation2 + $0x284] ss:$100 sps:$4 sm:$0xff]  }
  0xaa   :  { %2630 = vmatprep.subr.bf16.mxu0 %v7946_v18  ;;  %2673 = vmatprep.subr.bf16.mxu1 %v7949_v19  ;;  %v8034_v18 = vld [vmem:[#allocation2 + $0x278] ss:$100 sps:$4 sm:$0xff]   ;;  %v8037_v19 = vld [vmem:[#allocation2 + $0x280] ss:$100 sps:$4 sm:$0xff]  }
  0xad   :  { %2631 = vmatpush1.bf16.msra.mxu0 %v7944_v20  ;;  %2674 = vmatpush1.bf16.msra.mxu1 %v7947_v21  ;;  %v8042_v20 = vld [vmem:[#allocation2 + $0x344] ss:$100 sps:$4 sm:$0xff]   ;;  %v8045_v21 = vld [vmem:[#allocation2 + $0x34c] ss:$100 sps:$4 sm:$0xff]  }
  0xae   :  { %2632 = vmatprep.subr.bf16.mxu0 %v7952_v22  ;;  %2675 = vmatprep.subr.bf16.mxu1 %v7955_v23  ;;  %v8040_v22 = vld [vmem:[#allocation2 + $0x340] ss:$100 sps:$4 sm:$0xff]   ;;  %v8043_v23 = vld [vmem:[#allocation2 + $0x348] ss:$100 sps:$4 sm:$0xff]  }
  0xb1   :  { %2633 = vmatpush1.bf16.msra.mxu0 %v7950_v24  ;;  %2676 = vmatpush1.bf16.msra.mxu1 %v7953_v25  ;;  %v8051_v24 = vld [vmem:[#allocation2 + $0x414] ss:$100 sps:$4 sm:$0xff]   ;;  %v8046_v25 = vld [vmem:[#allocation2 + $0x408] ss:$100 sps:$4 sm:$0xff]  }
  0xb2   :  { %2634 = vmatprep.subr.bf16.mxu0 %v7958_v26  ;;  %2677 = vmatprep.subr.bf16.mxu1 %v7961_v27  ;;  %v8049_v26 = vld [vmem:[#allocation2 + $0x410] ss:$100 sps:$4 sm:$0xff]  }
  0xb3   :  { %v8054_v27 = vld [vmem:[#allocation2 + $0x4d4] ss:$100 sps:$4 sm:$0xff]  }
  0xb5   :  { %2635 = vmatpush1.bf16.msra.mxu0 %v7956_v28  ;;  %2678 = vmatpush1.bf16.msra.mxu1 %v7959_v29  ;;  %v8057_v28 = vld [vmem:[#allocation2 + $0x4dc] ss:$100 sps:$4 sm:$0xff]   ;;  %v8052_v29 = vld [vmem:[#allocation2 + $0x4d0] ss:$100 sps:$4 sm:$0xff]  }
  0xb6   :  { %2636 = vmatprep.subr.bf16.mxu0 %v7964_v30  ;;  %2679 = vmatprep.subr.bf16.mxu1 %v7967_v31  ;;  %v8055_v30 = vld [vmem:[#allocation2 + $0x4d8] ss:$100 sps:$4 sm:$0xff]  }
  0xb7   :  { %v8060_v31 = vld [vmem:[#allocation2 + $0x59c] ss:$100 sps:$4 sm:$0xff]  }
  0xb9   :  { %2637 = vmatpush1.bf16.msra.mxu0 %v7962_v32  ;;  %2680 = vmatpush1.bf16.msra.mxu1 %v7965_v33  ;;  %v8063_v32 = vld [vmem:[#allocation2 + $0x5a4] ss:$100 sps:$4 sm:$0xff]   ;;  %v8058_v33 = vld [vmem:[#allocation2 + $0x598] ss:$100 sps:$4 sm:$0xff]  }
  0xba   :  { %2638 = vmatprep.subr.bf16.mxu0 %v7970_v34  ;;  %2681 = vmatprep.subr.bf16.mxu1 %v7973_v35  ;;  %v8061_v34 = vld [vmem:[#allocation2 + $0x5a0] ss:$100 sps:$4 sm:$0xff]  }
  0xbb   :  { %v8066_v35 = vld [vmem:[#allocation2 + $0x664] ss:$100 sps:$4 sm:$0xff]  }
  0xbd   :  { %2639 = vmatpush1.bf16.msra.mxu0 %v7968_v36  ;;  %2682 = vmatpush1.bf16.msra.mxu1 %v7971_v37  ;;  %v8069_v36 = vld [vmem:[#allocation2 + $0x66c] ss:$100 sps:$4 sm:$0xff]   ;;  %v8064_v37 = vld [vmem:[#allocation2 + $0x660] ss:$100 sps:$4 sm:$0xff]  }
  0xbe   :  { %2640 = vmatprep.subr.bf16.mxu0 %v7976_v38  ;;  %2683 = vmatprep.subr.bf16.mxu1 %v7979_v39  ;;  %v8067_v38 = vld [vmem:[#allocation2 + $0x668] ss:$100 sps:$4 sm:$0xff]  }
  0xbf   :  { %v8072_v39 = vld [vmem:[#allocation2 + $0x72c] ss:$100 sps:$4 sm:$0xff]  }
  0xc1   :  { %2641 = vmatpush1.bf16.msra.mxu0 %v7974_v40  ;;  %2684 = vmatpush1.bf16.msra.mxu1 %v7977_v41  ;;  %v8075_v40 = vld [vmem:[#allocation2 + $0x734] ss:$100 sps:$4 sm:$0xff]   ;;  %v8070_v41 = vld [vmem:[#allocation2 + $0x728] ss:$100 sps:$4 sm:$0xff]  }
  0xc2   :  { %2642 = vmatprep.subr.bf16.mxu0 %v7982_v42  ;;  %2685 = vmatprep.subr.bf16.mxu1 %v7985_v43  ;;  %v8073_v42 = vld [vmem:[#allocation2 + $0x730] ss:$100 sps:$4 sm:$0xff]  }
  0xc3   :  { %v8078_v43 = vld [vmem:[#allocation2 + $0x7f4] ss:$100 sps:$4 sm:$0xff]  }
  0xc5   :  { %2643 = vmatpush1.bf16.msra.mxu0 %v7980_v44  ;;  %2686 = vmatpush1.bf16.msra.mxu1 %v7983_v45  ;;  %v8081_v44 = vld [vmem:[#allocation2 + $0x7fc] ss:$100 sps:$4 sm:$0xff]   ;;  %v8076_v45 = vld [vmem:[#allocation2 + $0x7f0] ss:$100 sps:$4 sm:$0xff]  }
  0xc6   :  { %2644 = vmatprep.subr.bf16.mxu0 %v7988_v46  ;;  %2687 = vmatprep.subr.bf16.mxu1 %v7991_v47  ;;  %v8079_v46 = vld [vmem:[#allocation2 + $0x7f8] ss:$100 sps:$4 sm:$0xff]  }
  0xc7   :  { %v8084_v47 = vld [vmem:[#allocation2 + $0x8bc] ss:$100 sps:$4 sm:$0xff]  }
  0xc9   :  { %2645 = vmatpush1.bf16.msra.mxu0 %v7986_v49  ;;  %2688 = vmatpush1.bf16.msra.mxu1 %v7989_v50  ;;  %v8087_v49 = vld [vmem:[#allocation2 + $0x8c4] ss:$100 sps:$4 sm:$0xff]   ;;  %v8082_v50 = vld [vmem:[#allocation2 + $0x8b8] ss:$100 sps:$4 sm:$0xff]  }
  0xca   :  { %2646 = vmatprep.subr.bf16.mxu0 %v7994_v51  ;;  %2689 = vmatprep.subr.bf16.mxu1 %v7997_v52  ;;  %v8085_v51 = vld [vmem:[#allocation2 + $0x8c0] ss:$100 sps:$4 sm:$0xff]  }
  0xcb   :  { %v8090_v52 = vld [vmem:[#allocation2 + $0x984] ss:$100 sps:$4 sm:$0xff]  }
  0xcd   :  { %2647 = vmatpush1.bf16.msra.mxu0 %v7992_v53  ;;  %2690 = vmatpush1.bf16.msra.mxu1 %v7995_v54  ;;  %v8093_v53 = vld [vmem:[#allocation2 + $0x98c] ss:$100 sps:$4 sm:$0xff]   ;;  %v8088_v54 = vld [vmem:[#allocation2 + $0x980] ss:$100 sps:$4 sm:$0xff]  }
  0xce   :  { %2648 = vmatprep.subr.bf16.mxu0 %v8000_v55  ;;  %2691 = vmatprep.subr.bf16.mxu1 %v8003_v56  ;;  %v8091_v55 = vld [vmem:[#allocation2 + $0x988] ss:$100 sps:$4 sm:$0xff]  }
  0xcf   :  { %v8096_v56 = vld [vmem:[#allocation2 + $0xa4c] ss:$100 sps:$4 sm:$0xff]  }
  0xd1   :  { %2649 = vmatpush1.bf16.msra.mxu0 %v7998_v57  ;;  %2692 = vmatpush1.bf16.msra.mxu1 %v8001_v58  ;;  %v8099_v57 = vld [vmem:[#allocation2 + $0xa54] ss:$100 sps:$4 sm:$0xff]   ;;  %v8094_v58 = vld [vmem:[#allocation2 + $0xa48] ss:$100 sps:$4 sm:$0xff]  }
  0xd2   :  { %2650 = vmatprep.subr.bf16.mxu0 %v8006_v59  ;;  %2693 = vmatprep.subr.bf16.mxu1 %v8009_v60  ;;  %v8097_v59 = vld [vmem:[#allocation2 + $0xa50] ss:$100 sps:$4 sm:$0xff]  }
  0xd3   :  { %v8102_v60 = vld [vmem:[#allocation2 + $0xb14] ss:$100 sps:$4 sm:$0xff]  }
  0xd5   :  { %2651 = vmatpush1.bf16.msra.mxu0 %v8004_v61  ;;  %2694 = vmatpush1.bf16.msra.mxu1 %v8007_v62  ;;  %v8105_v61 = vld [vmem:[#allocation2 + $0xb1c] ss:$100 sps:$4 sm:$0xff]   ;;  %v8100_v62 = vld [vmem:[#allocation2 + $0xb10] ss:$100 sps:$4 sm:$0xff]  }
  0xd6   :  { %2652 = vmatprep.subr.bf16.mxu0 %v8012_v63  ;;  %2695 = vmatprep.subr.bf16.mxu1 %v8015_v0  ;;  %v8103_v63 = vld [vmem:[#allocation2 + $0xb18] ss:$100 sps:$4 sm:$0xff]  }
  0xd7   :  { %v8108_v0 = vld [vmem:[#allocation2 + $0xbdc] ss:$100 sps:$4 sm:$0xff]  }
  0xd9   :  { %2653 = vmatpush1.bf16.msra.mxu0 %v8010_v1  ;;  %2696 = vmatpush1.bf16.msra.mxu1 %v8013_v2  ;;  %v8111_v1 = vld [vmem:[#allocation2 + $0xbe4] ss:$100 sps:$4 sm:$0xff]   ;;  %v8106_v2 = vld [vmem:[#allocation2 + $0xbd8] ss:$100 sps:$4 sm:$0xff]  }
  0xda   :  { %2708 = vmatprep.subr.bf16.mxu0 %v8018_v4  ;;  %2751 = vmatprep.subr.bf16.mxu1 %v8021_v5  ;;  %v8109_v4 = vld [vmem:[#allocation2 + $0xbe0] ss:$100 sps:$4 sm:$0xff]   ;;  %v8114_v5 = vld [vmem:[#allocation2 + $0x34] ss:$100 sps:$4 sm:$0xff]  }
  0xdc   :  { %2655 = vmatmul.mubr.bf16.vlgmr.msra.gmra.mrb[4].mxu0 %v8943_v3  ;;  %2698 = vmatmul.mubr.bf16.vlgmr.msra.gmra.mrb[4].mxu1 %v8943_v3 }
  0xdd   :  { %2709 = vmatpush1.bf16.msra.mxu0 %v8016_v6  ;;  %2752 = vmatpush1.bf16.msra.mxu1 %v8019_v7  ;;  %v8117_v6 = vld [vmem:[#allocation2 + $0x3c] ss:$100 sps:$4 sm:$0xff]   ;;  %v8112_v7 = vld [vmem:[#allocation2 + $0x30] ss:$100 sps:$4 sm:$0xff]  }
  0xde   :  { %2710 = vmatprep.subr.bf16.mxu0 %v8024_v8  ;;  %2753 = vmatprep.subr.bf16.mxu1 %v8027_v9  ;;  %v8115_v8 = vld [vmem:[#allocation2 + $0x38] ss:$100 sps:$4 sm:$0xff]  }
  0xdf   :  { %2740 = vmatprep.mubr.bf16.mxu0 %v8936_v48  ;;  %2783 = vmatprep.mubr.bf16.mxu1 %v8936_v48  ;;  %v8048_v48 = vld [vmem:[#allocation2 + $0x40c] ss:$100 sps:$4 sm:$0xff]   ;;  %v8120_v9 = vld [vmem:[#allocation2 + $0xfc] ss:$100 sps:$4 sm:$0xff]  }
  0xe1   :  { %2711 = vmatpush1.bf16.msra.mxu0 %v8022_v10  ;;  %2754 = vmatpush1.bf16.msra.mxu1 %v8025_v11  ;;  %v8123_v10 = vld [vmem:[#allocation2 + $0x104] ss:$100 sps:$4 sm:$0xff]   ;;  %v8118_v11 = vld [vmem:[#allocation2 + $0xf8] ss:$100 sps:$4 sm:$0xff]  }
  0xe2   :  { %2712 = vmatprep.subr.bf16.mxu0 %v8030_v12  ;;  %2755 = vmatprep.subr.bf16.mxu1 %v8033_v13  ;;  %v8121_v12 = vld [vmem:[#allocation2 + $0x100] ss:$100 sps:$4 sm:$0xff]  }
  0xe3   :  { %v8126_v13 = vld [vmem:[#allocation2 + $0x1c4] ss:$100 sps:$4 sm:$0xff]  }
  0xe5   :  { %2713 = vmatpush1.bf16.msra.mxu0 %v8028_v14  ;;  %2756 = vmatpush1.bf16.msra.mxu1 %v8031_v15  ;;  %v8129_v14 = vld [vmem:[#allocation2 + $0x1cc] ss:$100 sps:$4 sm:$0xff]  }
  0xe6   :  { %2714 = vmatprep.subr.bf16.mxu0 %v8036_v16  ;;  %2757 = vmatprep.subr.bf16.mxu1 %v8039_v17  ;;  %v8958_v15 = vld [vmem:[%s9472_s0 + $0x4] ss:$8 sps:$4 sm:$0xff]  }
  0xe7   :  { %v8124_v16 = vld [vmem:[#allocation2 + $0x1c0] ss:$100 sps:$4 sm:$0xff]   ;;  %v8127_v17 = vld [vmem:[#allocation2 + $0x1c8] ss:$100 sps:$4 sm:$0xff]  }
  0xe9   :  { %2715 = vmatpush1.bf16.msra.mxu0 %v8034_v18  ;;  %2758 = vmatpush1.bf16.msra.mxu1 %v8037_v19  ;;  %v8135_v18 = vld [vmem:[#allocation2 + $0x294] ss:$100 sps:$4 sm:$0xff]   ;;  %v8130_v19 = vld [vmem:[#allocation2 + $0x288] ss:$100 sps:$4 sm:$0xff]  }
  0xea   :  { %2716 = vmatprep.subr.bf16.mxu0 %v8042_v20  ;;  %2759 = vmatprep.subr.bf16.mxu1 %v8045_v21  ;;  %v8133_v20 = vld [vmem:[#allocation2 + $0x290] ss:$100 sps:$4 sm:$0xff]  }
  0xeb   :  { %v8138_v21 = vld [vmem:[#allocation2 + $0x354] ss:$100 sps:$4 sm:$0xff]  }
  0xed   :  { %2717 = vmatpush1.bf16.msra.mxu0 %v8040_v22  ;;  %2760 = vmatpush1.bf16.msra.mxu1 %v8043_v23  ;;  %v8141_v22 = vld [vmem:[#allocation2 + $0x35c] ss:$100 sps:$4 sm:$0xff]   ;;  %v8136_v23 = vld [vmem:[#allocation2 + $0x350] ss:$100 sps:$4 sm:$0xff]  }
  0xee   :  { %2718 = vmatprep.subr.bf16.mxu0 %v8048_v48  ;;  %2761 = vmatprep.subr.bf16.mxu1 %v8051_v24  ;;  %v8139_v48 = vld [vmem:[#allocation2 + $0x358] ss:$100 sps:$4 sm:$0xff]  }
  0xef   :  { %v8144_v24 = vld [vmem:[#allocation2 + $0x41c] ss:$100 sps:$4 sm:$0xff]  }
  0xf1   :  { %2719 = vmatpush1.bf16.msra.mxu0 %v8046_v25  ;;  %2762 = vmatpush1.bf16.msra.mxu1 %v8049_v26  ;;  %v8147_v25 = vld [vmem:[#allocation2 + $0x424] ss:$100 sps:$4 sm:$0xff]   ;;  %v8142_v26 = vld [vmem:[#allocation2 + $0x418] ss:$100 sps:$4 sm:$0xff]  }
  0xf2   :  { %2720 = vmatprep.subr.bf16.mxu0 %v8054_v27  ;;  %2763 = vmatprep.subr.bf16.mxu1 %v8057_v28  ;;  %v8145_v27 = vld [vmem:[#allocation2 + $0x420] ss:$100 sps:$4 sm:$0xff]  }
  0xf3   :  { %v8150_v28 = vld [vmem:[#allocation2 + $0x4e4] ss:$100 sps:$4 sm:$0xff]  }
  0xf5   :  { %2721 = vmatpush1.bf16.msra.mxu0 %v8052_v29  ;;  %2764 = vmatpush1.bf16.msra.mxu1 %v8055_v30  ;;  %v8153_v29 = vld [vmem:[#allocation2 + $0x4ec] ss:$100 sps:$4 sm:$0xff]   ;;  %v8148_v30 = vld [vmem:[#allocation2 + $0x4e0] ss:$100 sps:$4 sm:$0xff]  }
  0xf6   :  { %2722 = vmatprep.subr.bf16.mxu0 %v8060_v31  ;;  %2765 = vmatprep.subr.bf16.mxu1 %v8063_v32  ;;  %v8151_v31 = vld [vmem:[#allocation2 + $0x4e8] ss:$100 sps:$4 sm:$0xff]  }
  0xf7   :  { %v8156_v32 = vld [vmem:[#allocation2 + $0x5ac] ss:$100 sps:$4 sm:$0xff]  }
  0xf9   :  { %2723 = vmatpush1.bf16.msra.mxu0 %v8058_v33  ;;  %2766 = vmatpush1.bf16.msra.mxu1 %v8061_v34  ;;  %v8159_v33 = vld [vmem:[#allocation2 + $0x5b4] ss:$100 sps:$4 sm:$0xff]   ;;  %v8154_v34 = vld [vmem:[#allocation2 + $0x5a8] ss:$100 sps:$4 sm:$0xff]  }
  0xfa   :  { %2724 = vmatprep.subr.bf16.mxu0 %v8066_v35  ;;  %2767 = vmatprep.subr.bf16.mxu1 %v8069_v36  ;;  %v8157_v35 = vld [vmem:[#allocation2 + $0x5b0] ss:$100 sps:$4 sm:$0xff]  }
  0xfb   :  { %v8162_v36 = vld [vmem:[#allocation2 + $0x674] ss:$100 sps:$4 sm:$0xff]  }
  0xfd   :  { %2725 = vmatpush1.bf16.msra.mxu0 %v8064_v37  ;;  %2768 = vmatpush1.bf16.msra.mxu1 %v8067_v38  ;;  %v8165_v37 = vld [vmem:[#allocation2 + $0x67c] ss:$100 sps:$4 sm:$0xff]   ;;  %v8160_v38 = vld [vmem:[#allocation2 + $0x670] ss:$100 sps:$4 sm:$0xff]  }
  0xfe   :  { %2726 = vmatprep.subr.bf16.mxu0 %v8072_v39  ;;  %2769 = vmatprep.subr.bf16.mxu1 %v8075_v40  ;;  %v8163_v39 = vld [vmem:[#allocation2 + $0x678] ss:$100 sps:$4 sm:$0xff]  }
  0xff   :  { %v8168_v40 = vld [vmem:[#allocation2 + $0x73c] ss:$100 sps:$4 sm:$0xff]  }
 0x101   :  { %2727 = vmatpush1.bf16.msra.mxu0 %v8070_v41  ;;  %2770 = vmatpush1.bf16.msra.mxu1 %v8073_v42  ;;  %v8171_v41 = vld [vmem:[#allocation2 + $0x744] ss:$100 sps:$4 sm:$0xff]   ;;  %v8166_v42 = vld [vmem:[#allocation2 + $0x738] ss:$100 sps:$4 sm:$0xff]  }
 0x102   :  { %2728 = vmatprep.subr.bf16.mxu0 %v8078_v43  ;;  %2771 = vmatprep.subr.bf16.mxu1 %v8081_v44  ;;  %v8169_v43 = vld [vmem:[#allocation2 + $0x740] ss:$100 sps:$4 sm:$0xff]  }
 0x103   :  { %v8174_v44 = vld [vmem:[#allocation2 + $0x804] ss:$100 sps:$4 sm:$0xff]  }
 0x105   :  { %2729 = vmatpush1.bf16.msra.mxu0 %v8076_v45  ;;  %2772 = vmatpush1.bf16.msra.mxu1 %v8079_v46  ;;  %v8177_v45 = vld [vmem:[#allocation2 + $0x80c] ss:$100 sps:$4 sm:$0xff]   ;;  %v8172_v46 = vld [vmem:[#allocation2 + $0x800] ss:$100 sps:$4 sm:$0xff]  }
 0x106   :  { %2730 = vmatprep.subr.bf16.mxu0 %v8084_v47  ;;  %2773 = vmatprep.subr.bf16.mxu1 %v8087_v49  ;;  %v8175_v47 = vld [vmem:[#allocation2 + $0x808] ss:$100 sps:$4 sm:$0xff]  }
 0x107   :  { %v8180_v49 = vld [vmem:[#allocation2 + $0x8cc] ss:$100 sps:$4 sm:$0xff]  }
 0x109   :  { %2731 = vmatpush1.bf16.msra.mxu0 %v8082_v50  ;;  %2774 = vmatpush1.bf16.msra.mxu1 %v8085_v51  ;;  %v8183_v50 = vld [vmem:[#allocation2 + $0x8d4] ss:$100 sps:$4 sm:$0xff]   ;;  %v8178_v51 = vld [vmem:[#allocation2 + $0x8c8] ss:$100 sps:$4 sm:$0xff]  }
 0x10a   :  { %2732 = vmatprep.subr.bf16.mxu0 %v8090_v52  ;;  %2775 = vmatprep.subr.bf16.mxu1 %v8093_v53  ;;  %v8181_v52 = vld [vmem:[#allocation2 + $0x8d0] ss:$100 sps:$4 sm:$0xff]  }
 0x10b   :  { %v8186_v53 = vld [vmem:[#allocation2 + $0x994] ss:$100 sps:$4 sm:$0xff]  }
 0x10d   :  { %2733 = vmatpush1.bf16.msra.mxu0 %v8088_v54  ;;  %2776 = vmatpush1.bf16.msra.mxu1 %v8091_v55  ;;  %v8189_v54 = vld [vmem:[#allocation2 + $0x99c] ss:$100 sps:$4 sm:$0xff]   ;;  %v8184_v55 = vld [vmem:[#allocation2 + $0x990] ss:$100 sps:$4 sm:$0xff]  }
 0x10e   :  { %2734 = vmatprep.subr.bf16.mxu0 %v8096_v56  ;;  %2777 = vmatprep.subr.bf16.mxu1 %v8099_v57  ;;  %v8187_v56 = vld [vmem:[#allocation2 + $0x998] ss:$100 sps:$4 sm:$0xff]  }
 0x10f   :  { %v8192_v57 = vld [vmem:[#allocation2 + $0xa5c] ss:$100 sps:$4 sm:$0xff]  }
 0x111   :  { %2735 = vmatpush1.bf16.msra.mxu0 %v8094_v58  ;;  %2778 = vmatpush1.bf16.msra.mxu1 %v8097_v59  ;;  %v8195_v58 = vld [vmem:[#allocation2 + $0xa64] ss:$100 sps:$4 sm:$0xff]   ;;  %v8190_v59 = vld [vmem:[#allocation2 + $0xa58] ss:$100 sps:$4 sm:$0xff]  }
 0x112   :  { %2736 = vmatprep.subr.bf16.mxu0 %v8102_v60  ;;  %2779 = vmatprep.subr.bf16.mxu1 %v8105_v61  ;;  %v8193_v60 = vld [vmem:[#allocation2 + $0xa60] ss:$100 sps:$4 sm:$0xff]  }
 0x113   :  { %v8198_v61 = vld [vmem:[#allocation2 + $0xb24] ss:$100 sps:$4 sm:$0xff]  }
 0x115   :  { %2737 = vmatpush1.bf16.msra.mxu0 %v8100_v62  ;;  %2780 = vmatpush1.bf16.msra.mxu1 %v8103_v63  ;;  %v8201_v62 = vld [vmem:[#allocation2 + $0xb2c] ss:$100 sps:$4 sm:$0xff]   ;;  %v8196_v63 = vld [vmem:[#allocation2 + $0xb20] ss:$100 sps:$4 sm:$0xff]  }
 0x116   :  { %2738 = vmatprep.subr.bf16.mxu0 %v8108_v0  ;;  %2781 = vmatprep.subr.bf16.mxu1 %v8111_v1  ;;  %v8199_v0 = vld [vmem:[#allocation2 + $0xb28] ss:$100 sps:$4 sm:$0xff]  }
 0x117   :  { %v8204_v1 = vld [vmem:[#allocation2 + $0xbec] ss:$100 sps:$4 sm:$0xff]  }
 0x119   :  { %2739 = vmatpush1.bf16.msra.mxu0 %v8106_v2  ;;  %2782 = vmatpush1.bf16.msra.mxu1 %v8109_v4  ;;  %v8207_v2 = vld [vmem:[#allocation2 + $0xbf4] ss:$100 sps:$4 sm:$0xff]   ;;  %v8202_v4 = vld [vmem:[#allocation2 + $0xbe8] ss:$100 sps:$4 sm:$0xff]  }
 0x11a   :  { %2794 = vmatprep.subr.bf16.mxu0 %v8114_v5  ;;  %2837 = vmatprep.subr.bf16.mxu1 %v8117_v6  ;;  %v8205_v5 = vld [vmem:[#allocation2 + $0xbf0] ss:$100 sps:$4 sm:$0xff]   ;;  %v8210_v6 = vld [vmem:[#allocation2 + $0x44] ss:$100 sps:$4 sm:$0xff]  }
 0x11c   :  { %2741 = vmatmul.mubr.bf16.vlgmr.msra.gmra.mrb[8].mxu0 %v8943_v3  ;;  %2784 = vmatmul.mubr.bf16.vlgmr.msra.gmra.mrb[8].mxu1 %v8943_v3  ;;  %v8132_v3 = vld [vmem:[#allocation2 + $0x28c] ss:$100 sps:$4 sm:$0xff]  }
 0x11d   :  { %2795 = vmatpush1.bf16.msra.mxu0 %v8112_v7  ;;  %2838 = vmatpush1.bf16.msra.mxu1 %v8115_v8  ;;  %v8213_v7 = vld [vmem:[#allocation2 + $0x4c] ss:$100 sps:$4 sm:$0xff]   ;;  %v8208_v8 = vld [vmem:[#allocation2 + $0x40] ss:$100 sps:$4 sm:$0xff]  }
 0x11e   :  { %2796 = vmatprep.subr.bf16.mxu0 %v8120_v9  ;;  %2839 = vmatprep.subr.bf16.mxu1 %v8123_v10  ;;  %v8211_v9 = vld [vmem:[#allocation2 + $0x48] ss:$100 sps:$4 sm:$0xff]  }
 0x11f   :  { %2826 = vmatprep.mubr.bf16.mxu0 %v8958_v15  ;;  %2869 = vmatprep.mubr.bf16.mxu1 %v8958_v15  ;;  %v8216_v10 = vld [vmem:[#allocation2 + $0x10c] ss:$100 sps:$4 sm:$0xff]  }
 0x121   :  { %2797 = vmatpush1.bf16.msra.mxu0 %v8118_v11  ;;  %2840 = vmatpush1.bf16.msra.mxu1 %v8121_v12  ;;  %v8219_v11 = vld [vmem:[#allocation2 + $0x114] ss:$100 sps:$4 sm:$0xff]   ;;  %v8965_v12 = vld [vmem:[%s9472_s0] ss:$8 sps:$4 sm:$0xff]  }
 0x122   :  { %2798 = vmatprep.subr.bf16.mxu0 %v8126_v13  ;;  %2841 = vmatprep.subr.bf16.mxu1 %v8129_v14  ;;  %v8214_v13 = vld [vmem:[#allocation2 + $0x108] ss:$100 sps:$4 sm:$0xff]   ;;  %v8217_v14 = vld [vmem:[#allocation2 + $0x110] ss:$100 sps:$4 sm:$0xff]  }
 0x125   :  { %2799 = vmatpush1.bf16.msra.mxu0 %v8124_v16  ;;  %2842 = vmatpush1.bf16.msra.mxu1 %v8127_v17  ;;  %v8222_v16 = vld [vmem:[#allocation2 + $0x1d4] ss:$100 sps:$4 sm:$0xff]   ;;  %v8225_v17 = vld [vmem:[#allocation2 + $0x1dc] ss:$100 sps:$4 sm:$0xff]  }
 0x126   :  { %2800 = vmatprep.subr.bf16.mxu0 %v8132_v3  ;;  %2843 = vmatprep.subr.bf16.mxu1 %v8135_v18  ;;  %v8220_v3 = vld [vmem:[#allocation2 + $0x1d0] ss:$100 sps:$4 sm:$0xff]   ;;  %v8223_v18 = vld [vmem:[#allocation2 + $0x1d8] ss:$100 sps:$4 sm:$0xff]  }
 0x129   :  { %2801 = vmatpush1.bf16.msra.mxu0 %v8130_v19  ;;  %2844 = vmatpush1.bf16.msra.mxu1 %v8133_v20  ;;  %v8228_v19 = vld [vmem:[#allocation2 + $0x29c] ss:$100 sps:$4 sm:$0xff]   ;;  %v8231_v20 = vld [vmem:[#allocation2 + $0x2a4] ss:$100 sps:$4 sm:$0xff]  }
 0x12a   :  { %2802 = vmatprep.subr.bf16.mxu0 %v8138_v21  ;;  %2845 = vmatprep.subr.bf16.mxu1 %v8141_v22  ;;  %v8226_v21 = vld [vmem:[#allocation2 + $0x298] ss:$100 sps:$4 sm:$0xff]   ;;  %v8229_v22 = vld [vmem:[#allocation2 + $0x2a0] ss:$100 sps:$4 sm:$0xff]  }
 0x12d   :  { %2803 = vmatpush1.bf16.msra.mxu0 %v8136_v23  ;;  %2846 = vmatpush1.bf16.msra.mxu1 %v8139_v48  ;;  %v8234_v23 = vld [vmem:[#allocation2 + $0x364] ss:$100 sps:$4 sm:$0xff]   ;;  %v8237_v48 = vld [vmem:[#allocation2 + $0x36c] ss:$100 sps:$4 sm:$0xff]  }
 0x12e   :  { %2804 = vmatprep.subr.bf16.mxu0 %v8144_v24  ;;  %2847 = vmatprep.subr.bf16.mxu1 %v8147_v25  ;;  %v8232_v24 = vld [vmem:[#allocation2 + $0x360] ss:$100 sps:$4 sm:$0xff]   ;;  %v8235_v25 = vld [vmem:[#allocation2 + $0x368] ss:$100 sps:$4 sm:$0xff]  }
 0x131   :  { %2805 = vmatpush1.bf16.msra.mxu0 %v8142_v26  ;;  %2848 = vmatpush1.bf16.msra.mxu1 %v8145_v27  ;;  %v8240_v26 = vld [vmem:[#allocation2 + $0x42c] ss:$100 sps:$4 sm:$0xff]   ;;  %v8243_v27 = vld [vmem:[#allocation2 + $0x434] ss:$100 sps:$4 sm:$0xff]  }
 0x132   :  { %2806 = vmatprep.subr.bf16.mxu0 %v8150_v28  ;;  %2849 = vmatprep.subr.bf16.mxu1 %v8153_v29  ;;  %v8238_v28 = vld [vmem:[#allocation2 + $0x428] ss:$100 sps:$4 sm:$0xff]   ;;  %v8241_v29 = vld [vmem:[#allocation2 + $0x430] ss:$100 sps:$4 sm:$0xff]  }
 0x135   :  { %2807 = vmatpush1.bf16.msra.mxu0 %v8148_v30  ;;  %2850 = vmatpush1.bf16.msra.mxu1 %v8151_v31  ;;  %v8246_v30 = vld [vmem:[#allocation2 + $0x4f4] ss:$100 sps:$4 sm:$0xff]   ;;  %v8249_v31 = vld [vmem:[#allocation2 + $0x4fc] ss:$100 sps:$4 sm:$0xff]  }
 0x136   :  { %2808 = vmatprep.subr.bf16.mxu0 %v8156_v32  ;;  %2851 = vmatprep.subr.bf16.mxu1 %v8159_v33 }
 0x139   :  { %2809 = vmatpush1.bf16.msra.mxu0 %v8154_v34  ;;  %2852 = vmatpush1.bf16.msra.mxu1 %v8157_v35 }
 0x13a   :  { %2810 = vmatprep.subr.bf16.mxu0 %v8162_v36  ;;  %2853 = vmatprep.subr.bf16.mxu1 %v8165_v37  ;;  %v8244_v37 = vld [vmem:[#allocation2 + $0x4f0] ss:$100 sps:$4 sm:$0xff]  }
 0x13d   :  { %2811 = vmatpush1.bf16.msra.mxu0 %v8160_v38  ;;  %2854 = vmatpush1.bf16.msra.mxu1 %v8163_v39  ;;  %v8247_v38 = vld [vmem:[#allocation2 + $0x4f8] ss:$100 sps:$4 sm:$0xff]  }
 0x13e   :  { %2812 = vmatprep.subr.bf16.mxu0 %v8168_v40  ;;  %2855 = vmatprep.subr.bf16.mxu1 %v8171_v41  ;;  %v8252_v41 = vld [vmem:[#allocation2 + $0x5bc] ss:$100 sps:$4 sm:$0xff]  }
 0x141   :  { %2813 = vmatpush1.bf16.msra.mxu0 %v8166_v42  ;;  %2856 = vmatpush1.bf16.msra.mxu1 %v8169_v43  ;;  %v8255_v42 = vld [vmem:[#allocation2 + $0x5c4] ss:$100 sps:$4 sm:$0xff]  }
 0x142   :  { %2814 = vmatprep.subr.bf16.mxu0 %v8174_v44  ;;  %2857 = vmatprep.subr.bf16.mxu1 %v8177_v45  ;;  %v8250_v44 = vld [vmem:[#allocation2 + $0x5b8] ss:$100 sps:$4 sm:$0xff]   ;;  %v8253_v45 = vld [vmem:[#allocation2 + $0x5c0] ss:$100 sps:$4 sm:$0xff]  }
 0x145   :  { %2815 = vmatpush1.bf16.msra.mxu0 %v8172_v46  ;;  %2858 = vmatpush1.bf16.msra.mxu1 %v8175_v47  ;;  %v8258_v46 = vld [vmem:[#allocation2 + $0x684] ss:$100 sps:$4 sm:$0xff]   ;;  %v8261_v47 = vld [vmem:[#allocation2 + $0x68c] ss:$100 sps:$4 sm:$0xff]  }
 0x146   :  { %2816 = vmatprep.subr.bf16.mxu0 %v8180_v49  ;;  %2859 = vmatprep.subr.bf16.mxu1 %v8183_v50  ;;  %v8256_v49 = vld [vmem:[#allocation2 + $0x680] ss:$100 sps:$4 sm:$0xff]   ;;  %v8259_v50 = vld [vmem:[#allocation2 + $0x688] ss:$100 sps:$4 sm:$0xff]  }
 0x149   :  { %2817 = vmatpush1.bf16.msra.mxu0 %v8178_v51  ;;  %2860 = vmatpush1.bf16.msra.mxu1 %v8181_v52  ;;  %v8264_v51 = vld [vmem:[#allocation2 + $0x74c] ss:$100 sps:$4 sm:$0xff]   ;;  %v8267_v52 = vld [vmem:[#allocation2 + $0x754] ss:$100 sps:$4 sm:$0xff]  }
 0x14a   :  { %2818 = vmatprep.subr.bf16.mxu0 %v8186_v53  ;;  %2861 = vmatprep.subr.bf16.mxu1 %v8189_v54  ;;  %v8262_v53 = vld [vmem:[#allocation2 + $0x748] ss:$100 sps:$4 sm:$0xff]   ;;  %v8265_v54 = vld [vmem:[#allocation2 + $0x750] ss:$100 sps:$4 sm:$0xff]  }
 0x14d   :  { %2819 = vmatpush1.bf16.msra.mxu0 %v8184_v55  ;;  %2862 = vmatpush1.bf16.msra.mxu1 %v8187_v56  ;;  %v8270_v55 = vld [vmem:[#allocation2 + $0x814] ss:$100 sps:$4 sm:$0xff]   ;;  %v8273_v56 = vld [vmem:[#allocation2 + $0x81c] ss:$100 sps:$4 sm:$0xff]  }
 0x14e   :  { %2820 = vmatprep.subr.bf16.mxu0 %v8192_v57  ;;  %2863 = vmatprep.subr.bf16.mxu1 %v8195_v58  ;;  %v8268_v57 = vld [vmem:[#allocation2 + $0x810] ss:$100 sps:$4 sm:$0xff]   ;;  %v8271_v58 = vld [vmem:[#allocation2 + $0x818] ss:$100 sps:$4 sm:$0xff]  }
 0x151   :  { %2821 = vmatpush1.bf16.msra.mxu0 %v8190_v59  ;;  %2864 = vmatpush1.bf16.msra.mxu1 %v8193_v60  ;;  %v8276_v59 = vld [vmem:[#allocation2 + $0x8dc] ss:$100 sps:$4 sm:$0xff]   ;;  %v8279_v60 = vld [vmem:[#allocation2 + $0x8e4] ss:$100 sps:$4 sm:$0xff]  }
 0x152   :  { %2822 = vmatprep.subr.bf16.mxu0 %v8198_v61  ;;  %2865 = vmatprep.subr.bf16.mxu1 %v8201_v62  ;;  %v8274_v61 = vld [vmem:[#allocation2 + $0x8d8] ss:$100 sps:$4 sm:$0xff]   ;;  %v8277_v62 = vld [vmem:[#allocation2 + $0x8e0] ss:$100 sps:$4 sm:$0xff]  }
 0x155   :  { %2823 = vmatpush1.bf16.msra.mxu0 %v8196_v63  ;;  %2866 = vmatpush1.bf16.msra.mxu1 %v8199_v0  ;;  %v8282_v63 = vld [vmem:[#allocation2 + $0x9a4] ss:$100 sps:$4 sm:$0xff]   ;;  %v8285_v0 = vld [vmem:[#allocation2 + $0x9ac] ss:$100 sps:$4 sm:$0xff]  }
 0x156   :  { %2824 = vmatprep.subr.bf16.mxu0 %v8204_v1  ;;  %2867 = vmatprep.subr.bf16.mxu1 %v8207_v2  ;;  %v8280_v1 = vld [vmem:[#allocation2 + $0x9a0] ss:$100 sps:$4 sm:$0xff]   ;;  %v8283_v2 = vld [vmem:[#allocation2 + $0x9a8] ss:$100 sps:$4 sm:$0xff]  }
 0x159   :  { %2825 = vmatpush1.bf16.msra.mxu0 %v8202_v4  ;;  %2868 = vmatpush1.bf16.msra.mxu1 %v8205_v5  ;;  %v8288_v4 = vld [vmem:[#allocation2 + $0xa6c] ss:$100 sps:$4 sm:$0xff]   ;;  %v8291_v5 = vld [vmem:[#allocation2 + $0xa74] ss:$100 sps:$4 sm:$0xff]  }
 0x15a   :  { %2880 = vmatprep.subr.bf16.mxu0 %v8210_v6  ;;  %2923 = vmatprep.subr.bf16.mxu1 %v8213_v7  ;;  %v8286_v6 = vld [vmem:[#allocation2 + $0xa68] ss:$100 sps:$4 sm:$0xff]   ;;  %v8289_v7 = vld [vmem:[#allocation2 + $0xa70] ss:$100 sps:$4 sm:$0xff]  }
 0x15c   :  { %2827 = vmatmul.mubr.bf16.vlgmr.msra.gmra.mrb[12].mxu0 %v8965_v12  ;;  %2870 = vmatmul.mubr.bf16.vlgmr.msra.gmra.mrb[12].mxu1 %v8965_v12 }
 0x15d   :  { %2881 = vmatpush1.bf16.msra.mxu0 %v8208_v8  ;;  %2924 = vmatpush1.bf16.msra.mxu1 %v8211_v9  ;;  %v8294_v8 = vld [vmem:[#allocation2 + $0xb34] ss:$100 sps:$4 sm:$0xff]   ;;  %v8297_v9 = vld [vmem:[#allocation2 + $0xb3c] ss:$100 sps:$4 sm:$0xff]  }
 0x15e   :  { %2882 = vmatprep.subr.bf16.mxu0 %v8216_v10  ;;  %2925 = vmatprep.subr.bf16.mxu1 %v8219_v11  ;;  %v8292_v10 = vld [vmem:[#allocation2 + $0xb30] ss:$100 sps:$4 sm:$0xff]   ;;  %v8295_v11 = vld [vmem:[#allocation2 + $0xb38] ss:$100 sps:$4 sm:$0xff]  }
 0x15f   :  { %2912 = vmatprep.mubr.bf16.mxu0 %v8958_v15  ;;  %2955 = vmatprep.mubr.bf16.mxu1 %v8958_v15 }
 0x161   :  { %2883 = vmatpush1.bf16.msra.mxu0 %v8214_v13  ;;  %2926 = vmatpush1.bf16.msra.mxu1 %v8217_v14  ;;  %v8300_v13 = vld [vmem:[#allocation2 + $0xbfc] ss:$100 sps:$4 sm:$0xff]   ;;  %v8303_v14 = vld [vmem:[#allocation2 + $0xc04] ss:$100 sps:$4 sm:$0xff]  }
 0x162   :  { %2884 = vmatprep.subr.bf16.mxu0 %v8222_v16  ;;  %2927 = vmatprep.subr.bf16.mxu1 %v8225_v17  ;;  %v8298_v16 = vld [vmem:[#allocation2 + $0xbf8] ss:$100 sps:$4 sm:$0xff]   ;;  %v8301_v17 = vld [vmem:[#allocation2 + $0xc00] ss:$100 sps:$4 sm:$0xff]  }
 0x165   :  { %2885 = vmatpush1.bf16.msra.mxu0 %v8220_v3  ;;  %2928 = vmatpush1.bf16.msra.mxu1 %v8223_v18  ;;  %v8306_v3 = vld [vmem:[#allocation2 + $0x54] ss:$100 sps:$4 sm:$0xff]   ;;  %v8309_v18 = vld [vmem:[#allocation2 + $0x5c] ss:$100 sps:$4 sm:$0xff]  }
 0x166   :  { %2886 = vmatprep.subr.bf16.mxu0 %v8228_v19  ;;  %2929 = vmatprep.subr.bf16.mxu1 %v8231_v20  ;;  %v8304_v19 = vld [vmem:[#allocation2 + $0x50] ss:$100 sps:$4 sm:$0xff]   ;;  %v8307_v20 = vld [vmem:[#allocation2 + $0x58] ss:$100 sps:$4 sm:$0xff]  }
 0x169   :  { %2887 = vmatpush1.bf16.msra.mxu0 %v8226_v21  ;;  %2930 = vmatpush1.bf16.msra.mxu1 %v8229_v22  ;;  %v8312_v21 = vld [vmem:[#allocation2 + $0x11c] ss:$100 sps:$4 sm:$0xff]   ;;  %v8315_v22 = vld [vmem:[#allocation2 + $0x124] ss:$100 sps:$4 sm:$0xff]  }
 0x16a   :  { %2888 = vmatprep.subr.bf16.mxu0 %v8234_v23  ;;  %2931 = vmatprep.subr.bf16.mxu1 %v8237_v48  ;;  %v8310_v23 = vld [vmem:[#allocation2 + $0x118] ss:$100 sps:$4 sm:$0xff]   ;;  %v8313_v48 = vld [vmem:[#allocation2 + $0x120] ss:$100 sps:$4 sm:$0xff]  }
 0x16d   :  { %2889 = vmatpush1.bf16.msra.mxu0 %v8232_v24  ;;  %2932 = vmatpush1.bf16.msra.mxu1 %v8235_v25  ;;  %v8318_v24 = vld [vmem:[#allocation2 + $0x1e4] ss:$100 sps:$4 sm:$0xff]   ;;  %v8321_v25 = vld [vmem:[#allocation2 + $0x1ec] ss:$100 sps:$4 sm:$0xff]  }
 0x16e   :  { %2890 = vmatprep.subr.bf16.mxu0 %v8240_v26  ;;  %2933 = vmatprep.subr.bf16.mxu1 %v8243_v27  ;;  %v8316_v26 = vld [vmem:[#allocation2 + $0x1e0] ss:$100 sps:$4 sm:$0xff]   ;;  %v8319_v27 = vld [vmem:[#allocation2 + $0x1e8] ss:$100 sps:$4 sm:$0xff]  }
 0x16f   :  { %v8971_v32 = vpop.f32.mrb[0].mxu0  ;;  %v8973_v33 = vpop.f32.mrb[0].mxu1 }
 0x170   :  { %v8975_v34 = vpop.f32.mrb[1].mxu0  ;;  %v8977_v35 = vpop.f32.mrb[1].mxu1  ;;  %vm3093_vm0 = vcmp.gt.f32.partialorder %v8971_v32, 0.0  ;;  %vm3095_vm2 = vcmp.gt.f32.partialorder %v8973_v33, 0.0 }
 0x171   :  { %v8979_v36 = vpop.f32.mrb[2].mxu0  ;;  %2891 = vmatpush1.bf16.msra.mxu0 %v8238_v28  ;;  %2934 = vmatpush1.bf16.msra.mxu1 %v8241_v29  ;;  %v8981_v39 = vpop.f32.mrb[2].mxu1  ;;  %v8324_v28 = vld [vmem:[#allocation2 + $0x2ac] ss:$100 sps:$4 sm:$0xff]   ;;  %v8327_v29 = vld [vmem:[#allocation2 + $0x2b4] ss:$100 sps:$4 sm:$0xff]  }
 0x172   :  { %v8983_v40 = vpop.f32.mrb[3].mxu0  ;;  %2892 = vmatprep.subr.bf16.mxu0 %v8246_v30  ;;  %2935 = vmatprep.subr.bf16.mxu1 %v8249_v31  ;;  %v8985_v43 = vpop.f32.mrb[3].mxu1  ;;  %v8322_v30 = vld [vmem:[#allocation2 + $0x2a8] ss:$100 sps:$4 sm:$0xff]   ;;  %v8325_v31 = vld [vmem:[#allocation2 + $0x2b0] ss:$100 sps:$4 sm:$0xff]  }
 0x173   :  { %vm3094_vm1 = vcmp.gt.f32.partialorder %v8975_v34, 0.0  ;;  %vm3118_vm4 = vcmp.gt.f32.partialorder %v8979_v36, 0.0  ;;  %vm3120_vm5 = vcmp.gt.f32.partialorder %v8981_v39, 0.0  ;;  %vm3119_vm9 = vcmp.gt.f32.partialorder %v8983_v40, 0.0 }
 0x174   :  { %vm3096_vm12 = vcmp.gt.f32.partialorder %v8977_v35, 0.0  ;;  %vm3121_vm13 = vcmp.gt.f32.partialorder %v8985_v43, 0.0 }
 0x175   :  { %2893 = vmatpush1.bf16.msra.mxu0 %v8244_v37  ;;  %2936 = vmatpush1.bf16.msra.mxu1 %v8247_v38  ;;  %v8330_v37 = vld [vmem:[#allocation2 + $0x374] ss:$100 sps:$4 sm:$0xff]   ;;  %v8333_v38 = vld [vmem:[#allocation2 + $0x37c] ss:$100 sps:$4 sm:$0xff]  }
 0x176   :  { %2894 = vmatprep.subr.bf16.mxu0 %v8252_v41  ;;  %2937 = vmatprep.subr.bf16.mxu1 %v8255_v42  ;;  %v3143_v41 = vmin.f32 %v8971_v32, 0.0  ;;  %v3168_v42 = vmin.f32 %v8979_v36, 0.0 }
 0x179   :  { %2895 = vmatpush1.bf16.msra.mxu0 %v8250_v44  ;;  %2938 = vmatpush1.bf16.msra.mxu1 %v8253_v45  ;;  %v8328_v44 = vld [vmem:[#allocation2 + $0x370] ss:$100 sps:$4 sm:$0xff]   ;;  %v8331_v45 = vld [vmem:[#allocation2 + $0x378] ss:$100 sps:$4 sm:$0xff]  }
 0x17a   :  { %2896 = vmatprep.subr.bf16.mxu0 %v8258_v46  ;;  %2939 = vmatprep.subr.bf16.mxu1 %v8261_v47  ;;  %v3145_v46 = vmin.f32 %v8973_v33, 0.0  ;;  %v8336_v47 = vld [vmem:[#allocation2 + $0x43c] ss:$100 sps:$4 sm:$0xff]  }
 0x17d   :  { %2897 = vmatpush1.bf16.msra.mxu0 %v8256_v49  ;;  %2940 = vmatpush1.bf16.msra.mxu1 %v8259_v50  ;;  %v8339_v49 = vld [vmem:[#allocation2 + $0x444] ss:$100 sps:$4 sm:$0xff]   ;;  %v3193_v50 = vmul.f32 1.442695, %v3143_v41 }
 0x17e   :  { %2898 = vmatprep.subr.bf16.mxu0 %v8264_v51  ;;  %2941 = vmatprep.subr.bf16.mxu1 %v8267_v52  ;;  %v3169_v51 = vmin.f32 %v8983_v40, 0.0 }
 0x17f   :  { %8536 = vpow2.f32 %v3193_v50  ;;  %v8369_v50 = vld [vmem:[#allocation2 + $0x82c] ss:$100 sps:$4 sm:$0xff]  }
 0x181   :  { %2899 = vmatpush1.bf16.msra.mxu0 %v8262_v53  ;;  %2942 = vmatpush1.bf16.msra.mxu1 %v8265_v54  ;;  %v3170_v53 = vmin.f32 %v8981_v39, 0.0  ;;  %v3243_v54 = vmul.f32 1.442695, %v3168_v42 }
 0x182   :  { %2900 = vmatprep.subr.bf16.mxu0 %v8270_v55  ;;  %2943 = vmatprep.subr.bf16.mxu1 %v8273_v56  ;;  %v8334_v55 = vld [vmem:[#allocation2 + $0x438] ss:$100 sps:$4 sm:$0xff]   ;;  %v8337_v56 = vld [vmem:[#allocation2 + $0x440] ss:$100 sps:$4 sm:$0xff]  }
 0x185   :  { %2901 = vmatpush1.bf16.msra.mxu0 %v8268_v57  ;;  %2944 = vmatpush1.bf16.msra.mxu1 %v8271_v58  ;;  %v3197_v57 = vmul.f32 1.442695, %v3145_v46  ;;  %v8342_v58 = vld [vmem:[#allocation2 + $0x504] ss:$100 sps:$4 sm:$0xff]  }
 0x186   :  { %2902 = vmatprep.subr.bf16.mxu0 %v8276_v59  ;;  %2945 = vmatprep.subr.bf16.mxu1 %v8279_v60  ;;  %v8345_v59 = vld [vmem:[#allocation2 + $0x50c] ss:$100 sps:$4 sm:$0xff]   ;;  %v3245_v60 = vmul.f32 1.442695, %v3169_v51  ;;  %v8361_v46 = vld [vmem:[#allocation2 + $0x760] ss:$100 sps:$4 sm:$0xff]  }
 0x189   :  { %2903 = vmatpush1.bf16.msra.mxu0 %v8274_v61  ;;  %2946 = vmatpush1.bf16.msra.mxu1 %v8277_v62 }
 0x18a   :  { %2904 = vmatprep.subr.bf16.mxu0 %v8282_v63  ;;  %2947 = vmatprep.subr.bf16.mxu1 %v8285_v0  ;;  %v8340_v63 = vld [vmem:[#allocation2 + $0x500] ss:$100 sps:$4 sm:$0xff]   ;;  %v3247_v0 = vmul.f32 1.442695, %v3170_v53 }
 0x18b   :  { %v8364_v53 = vld [vmem:[#allocation2 + $0x820] ss:$100 sps:$4 sm:$0xff]  }
 0x18d   :  { %2905 = vmatpush1.bf16.msra.mxu0 %v8280_v1  ;;  %2948 = vmatpush1.bf16.msra.mxu1 %v8283_v2 }
 0x18e   :  { %2906 = vmatprep.subr.bf16.mxu0 %v8288_v4  ;;  %2949 = vmatprep.subr.bf16.mxu1 %v8291_v5 }
 0x191   :  { %2907 = vmatpush1.bf16.msra.mxu0 %v8286_v6  ;;  %2950 = vmatpush1.bf16.msra.mxu1 %v8289_v7 }
 0x192   :  { %2908 = vmatprep.subr.bf16.mxu0 %v8294_v8  ;;  %2951 = vmatprep.subr.bf16.mxu1 %v8297_v9  ;;  %v8343_v9 = vld [vmem:[#allocation2 + $0x508] ss:$100 sps:$4 sm:$0xff]  }
 0x195   :  { %2909 = vmatpush1.bf16.msra.mxu0 %v8292_v10  ;;  %2952 = vmatpush1.bf16.msra.mxu1 %v8295_v11  ;;  %v8348_v11 = vld [vmem:[#allocation2 + $0x5cc] ss:$100 sps:$4 sm:$0xff]  }
 0x196   :  { %2910 = vmatprep.subr.bf16.mxu0 %v8300_v13  ;;  %2953 = vmatprep.subr.bf16.mxu1 %v8303_v14  ;;  %v8351_v13 = vld [vmem:[#allocation2 + $0x5d4] ss:$100 sps:$4 sm:$0xff]  }
 0x199   :  { %2911 = vmatpush1.bf16.msra.mxu0 %v8298_v16  ;;  %2954 = vmatpush1.bf16.msra.mxu1 %v8301_v17 }
 0x19a   :  { %2966 = vmatprep.subr.bf16.mxu0 %v8306_v3  ;;  %3009 = vmatprep.subr.bf16.mxu1 %v8309_v18 }
 0x19c   :  { %2913 = vmatmul.mubr.bf16.vlgmr.msra.gmra.mrb[16].mxu0 %v8965_v12  ;;  %2956 = vmatmul.mubr.bf16.vlgmr.msra.gmra.mrb[16].mxu1 %v8965_v12 }
 0x19d   :  { %2967 = vmatpush1.bf16.msra.mxu0 %v8304_v19  ;;  %3010 = vmatpush1.bf16.msra.mxu1 %v8307_v20  ;;  %v8346_v19 = vld [vmem:[#allocation2 + $0x5c8] ss:$100 sps:$4 sm:$0xff]  }
 0x19e   :  { %2968 = vmatprep.subr.bf16.mxu0 %v8312_v21  ;;  %3011 = vmatprep.subr.bf16.mxu1 %v8315_v22  ;;  %v8349_v22 = vld [vmem:[#allocation2 + $0x5d0] ss:$100 sps:$4 sm:$0xff]  }
 0x19f   :  { %2998 = vmatprep.mubr.bf16.mxu0 %v8958_v15  ;;  %3041 = vmatprep.mubr.bf16.mxu1 %v8958_v15  ;;  %v3144_v15 = vmin.f32 %v8975_v34, 0.0 }
 0x1a1   :  { %2969 = vmatpush1.bf16.msra.mxu0 %v8310_v23  ;;  %3012 = vmatpush1.bf16.msra.mxu1 %v8313_v48  ;;  %v3195_v52 = vmul.f32 1.442695, %v3144_v15  ;;  %v8354_v48 = vld [vmem:[#allocation2 + $0x694] ss:$100 sps:$4 sm:$0xff]  }
 0x1a2   :  { %2970 = vmatprep.subr.bf16.mxu0 %v8318_v24  ;;  %3013 = vmatprep.subr.bf16.mxu1 %v8321_v25  ;;  %v8357_v24 = vld [vmem:[#allocation2 + $0x69c] ss:$100 sps:$4 sm:$0xff]  }
 0x1a3   :  { %8538 = vpow2.f32 %v3195_v52 }
 0x1a4   :  { %8540 = vpow2.f32 %v3243_v54 }
 0x1a5   :  { %2971 = vmatpush1.bf16.msra.mxu0 %v8316_v26  ;;  %3014 = vmatpush1.bf16.msra.mxu1 %v8319_v27  ;;  %8542 = vpow2.f32 %v3197_v57  ;;  %v8537_v27 = vpop.eup %8536  ;;  %v8367_v57 = vld [vmem:[#allocation2 + $0x828] ss:$100 sps:$4 sm:$0xff]  }
 0x1a6   :  { %2972 = vmatprep.subr.bf16.mxu0 %v8324_v28  ;;  %3015 = vmatprep.subr.bf16.mxu1 %v8327_v29  ;;  %8544 = vpow2.f32 %v3245_v60  ;;  %v8352_v28 = vld [vmem:[#allocation2 + $0x690] ss:$100 sps:$4 sm:$0xff]   ;;  %v8355_v29 = vld [vmem:[#allocation2 + $0x698] ss:$100 sps:$4 sm:$0xff]   ;;  %v7216_v15 = vadd.f32 -1.0, %v8537_v27 }
 0x1a7   :  { %8546 = vpow2.f32 %v3247_v0  ;;  %v8372_v0 = vld [vmem:[#allocation2 + $0x8ec] ss:$100 sps:$4 sm:$0xff]  }
 0x1a9   :  { %2973 = vmatpush1.bf16.msra.mxu0 %v8322_v30  ;;  %3016 = vmatpush1.bf16.msra.mxu1 %v8325_v31  ;;  %v8360_v31 = vld [vmem:[#allocation2 + $0x75c] ss:$100 sps:$4 sm:$0xff]  }
 0x1aa   :  { %2974 = vmatprep.subr.bf16.mxu0 %v8330_v37  ;;  %3017 = vmatprep.subr.bf16.mxu1 %v8333_v38  ;;  %v8363_v37 = vld [vmem:[#allocation2 + $0x764] ss:$100 sps:$4 sm:$0xff]  }
 0x1ad   :  { %2975 = vmatpush1.bf16.msra.mxu0 %v8328_v44  ;;  %3018 = vmatpush1.bf16.msra.mxu1 %v8331_v45  ;;  %v8539_v30 = vpop.eup %8538  ;;  %v8358_v45 = vld [vmem:[#allocation2 + $0x758] ss:$100 sps:$4 sm:$0xff]  }
 0x1ae   :  { %2976 = vmatprep.subr.bf16.mxu0 %v8336_v47  ;;  %3019 = vmatprep.subr.bf16.mxu1 %v8339_v49  ;;  %v8541_v38 = vpop.eup %8540  ;;  %v7217_v44 = vadd.f32 -1.0, %v8539_v30  ;;  %v8366_v49 = vld [vmem:[#allocation2 + $0x824] ss:$100 sps:$4 sm:$0xff]   ;;  %v8384_v30 = vld [vmem:[#allocation2 + $0xa7c] ss:$100 sps:$4 sm:$0xff]  }
 0x1af   :  { %v8997_v61 = vpop.f32.mrb[4].mxu0  ;;  %v8999_v62 = vpop.f32.mrb[4].mxu1  ;;  %v7241_v60 = vadd.f32 -1.0, %v8541_v38  ;;  %v8390_v38 = vld [vmem:[#allocation2 + $0xb44] ss:$100 sps:$4 sm:$0xff]  }
 0x1b0   :  { %v3149_v1 = vmin.f32 %v8999_v62, 0.0  ;;  %v9002_v2 = vpop.f32.mrb[5].mxu0  ;;  %v9004_v4 = vpop.f32.mrb[5].mxu1  ;;  %vm3099_vm3 = vcmp.gt.f32.partialorder %v8999_v62, 0.0  ;;  %vm3097_vm14 = vcmp.gt.f32.partialorder %v8997_v61, 0.0 }
 0x1b1   :  { %v3148_v5 = vmin.f32 %v9002_v2, 0.0  ;;  %v3150_v6 = vmin.f32 %v9004_v4, 0.0  ;;  %v9008_v7 = vpop.f32.mrb[6].mxu0  ;;  %v9010_v8 = vpop.f32.mrb[6].mxu1  ;;  %2977 = vmatpush1.bf16.msra.mxu0 %v8334_v55  ;;  %3020 = vmatpush1.bf16.msra.mxu1 %v8337_v56  ;;  %v9024_v55 = vsel %vm3093_vm0, %v8971_v32, %v7216_v15  ;;  %vm3100_vm6 = vcmp.gt.f32.partialorder %v9004_v4, 0.0 }
 0x1b2   :  { %v3205_v10 = vmul.f32 1.442695, %v3149_v1  ;;  %2978 = vmatprep.subr.bf16.mxu0 %v8342_v58  ;;  %3021 = vmatprep.subr.bf16.mxu1 %v8345_v59  ;;  %v3174_v17 = vmin.f32 %v9010_v8, 0.0  ;;  %v9013_v3 = vpop.f32.mrb[7].mxu0  ;;  %v9015_v18 = vpop.f32.mrb[7].mxu1  ;;  %v9029_v59 = vsel %vm3094_vm1, %v8975_v34, %v7217_v44  ;;  %vm3098_vm7 = vcmp.gt.f32.partialorder %v9002_v2, 0.0 }
 0x1b3   :  { %v3203_v14 = vmul.f32 1.442695, %v3148_v5  ;;  %v3207_v16 = vmul.f32 1.442695, %v3150_v6  ;;  %v3173_v21 = vmin.f32 %v9013_v3, 0.0  ;;  %v3175_v23 = vmin.f32 %v9015_v18, 0.0  ;;  %v8543_v41 = vpop.eup %8542 }
 0x1b4   :  { %8548 = vpow2.f32 %v3205_v10  ;;  %v3255_v20 = vmul.f32 1.442695, %v3174_v17  ;;  %v8545_v42 = vpop.eup %8544  ;;  %v7218_v52 = vadd.f32 -1.0, %v8543_v41  ;;  %v8375_v34 = vld [vmem:[#allocation2 + $0x8f4] ss:$100 sps:$4 sm:$0xff]   ;;  %vm3124_vm8 = vcmp.gt.f32.partialorder %v9010_v8, 0.0 }
 0x1b5   :  { %2979 = vmatpush1.bf16.msra.mxu0 %v8340_v63  ;;  %3022 = vmatpush1.bf16.msra.mxu1 %v8343_v9  ;;  %8550 = vpow2.f32 %v3203_v14  ;;  %v3253_v25 = vmul.f32 1.442695, %v3173_v21  ;;  %v3257_v26 = vmul.f32 1.442695, %v3175_v23  ;;  %v8547_v47 = vpop.eup %8546  ;;  %v7242_v1 = vadd.f32 -1.0, %v8545_v42 }
 0x1b6   :  { %2980 = vmatprep.subr.bf16.mxu0 %v8348_v11  ;;  %3023 = vmatprep.subr.bf16.mxu1 %v8351_v13  ;;  %8552 = vpow2.f32 %v3207_v16  ;;  %v9041_v9 = vsel %vm3095_vm2, %v8973_v33, %v7218_v52  ;;  %v7243_v13 = vadd.f32 -1.0, %v8547_v47  ;;  %v8370_v17 = vld [vmem:[#allocation2 + $0x8e8] ss:$100 sps:$4 sm:$0xff]   ;;  %vm3125_vm10 = vcmp.gt.f32.partialorder %v9015_v18, 0.0  ;;  %v8373_v21 = vld [vmem:[#allocation2 + $0x8f0] ss:$100 sps:$4 sm:$0xff]  }
 0x1b7   :  { %8554 = vpow2.f32 %v3255_v20  ;;  %vm3123_vm11 = vcmp.gt.f32.partialorder %v9013_v3, 0.0  ;;  %v8388_v41 = vld [vmem:[#allocation2 + $0xb40] ss:$100 sps:$4 sm:$0xff]   ;;  %v8391_v15 = vld [vmem:[#allocation2 + $0xb48] ss:$100 sps:$4 sm:$0xff]   ;;  %vm3122_vm0 = vcmp.gt.f32.partialorder %v9008_v7, 0.0 }
 0x1b8   :  { %8556 = vpow2.f32 %v3253_v25  ;;  %v9072_v25 = vsel %vm3118_vm4, %v8979_v36, %v7241_v60  ;;  %v8396_v42 = vld [vmem:[#allocation2 + $0xc0c] ss:$100 sps:$4 sm:$0xff]   ;;  %v8399_v44 = vld [vmem:[#allocation2 + $0xc14] ss:$100 sps:$4 sm:$0xff]   ;;  %v8400_v47 = vld [vmem:[#allocation2 + $0x6a0] ss:$100 sps:$4 sm:$0xff]  }
 0x1b9   :  { %2981 = vmatpush1.bf16.msra.mxu0 %v8346_v19  ;;  %3024 = vmatpush1.bf16.msra.mxu1 %v8349_v22  ;;  %8558 = vpow2.f32 %v3257_v26  ;;  %v9061_v22 = vsel %vm3119_vm9, %v8983_v40, %v7242_v1  ;;  %v8698_v52 = vld [vmem:[%s9472_s0 + $0x4] ss:$8 sps:$4 sm:$0xff]   ;;  %v3171_v60 = vmin.f32 %v8985_v43, 0.0 }
 0x1ba   :  { %2982 = vmatprep.subr.bf16.mxu0 %v8354_v48  ;;  %3025 = vmatprep.subr.bf16.mxu1 %v8357_v24  ;;  %v8378_v48 = vld [vmem:[#allocation2 + $0x9b4] ss:$100 sps:$4 sm:$0xff]   ;;  %v8381_v24 = vld [vmem:[#allocation2 + $0x9bc] ss:$100 sps:$4 sm:$0xff]  }
 0x1bb   :  { %v8409_v1 = vld [vmem:[#allocation2 + $0x380] ss:$100 sps:$4 sm:$0xff]  }
 0x1bd   :  { %2983 = vmatpush1.bf16.msra.mxu0 %v8352_v28  ;;  %3026 = vmatpush1.bf16.msra.mxu1 %v8355_v29  ;;  %v8379_v29 = vld [vmem:[#allocation2 + $0x9b8] ss:$100 sps:$4 sm:$0xff]  }
 0x1be   :  { %2984 = vmatprep.subr.bf16.mxu0 %v8360_v31  ;;  %3027 = vmatprep.subr.bf16.mxu1 %v8363_v37  ;;  %v8549_v51 = vpop.eup %8548  ;;  %v8382_v31 = vld [vmem:[#allocation2 + $0xa78] ss:$100 sps:$4 sm:$0xff]   ;;  %v8385_v37 = vld [vmem:[#allocation2 + $0xa80] ss:$100 sps:$4 sm:$0xff]  }
 0x1bf   :  { %v8551_v54 = vpop.eup %8550  ;;  %v7222_v56 = vadd.f32 -1.0, %v8549_v51  ;;  %v8403_v51 = vld [vmem:[#allocation2 + $0x128] ss:$100 sps:$4 sm:$0xff]  }
 0x1c0   :  { %v8553_v58 = vpop.eup %8552  ;;  %v7221_v63 = vadd.f32 -1.0, %v8551_v54  ;;  %v8405_v54 = vld [vmem:[#allocation2 + $0x1f0] ss:$100 sps:$4 sm:$0xff]  }
 0x1c1   :  { %2985 = vmatpush1.bf16.msra.mxu0 %v8358_v45  ;;  %3028 = vmatpush1.bf16.msra.mxu1 %v8361_v46  ;;  %v9035_v32 = vsel %vm3099_vm3, %v8999_v62, %v7222_v56  ;;  %v7223_v5 = vadd.f32 -1.0, %v8553_v58  ;;  %v8555_v6 = vpop.eup %8554  ;;  %v8394_v45 = vld [vmem:[#allocation2 + $0xc08] ss:$100 sps:$4 sm:$0xff]   ;;  %v8397_v46 = vld [vmem:[#allocation2 + $0xc10] ss:$100 sps:$4 sm:$0xff]  }
 0x1c2   :  { %2986 = vmatprep.subr.bf16.mxu0 %v8366_v49  ;;  %3029 = vmatprep.subr.bf16.mxu1 %v8369_v50  ;;  %v3394_v10 = vmax.f32 %v9029_v59, %v9035_v32  ;;  %v9046_v11 = vsel %vm3098_vm7, %v9002_v2, %v7221_v63  ;;  %v8557_v62 = vpop.eup %8556  ;;  %v7247_v33 = vadd.f32 -1.0, %v8555_v6  ;;  %v8401_v49 = vld [vmem:[#allocation2 + $0x60] ss:$100 sps:$4 sm:$0xff]   ;;  %v8402_v50 = vld [vmem:[#allocation2 + $0x768] ss:$100 sps:$4 sm:$0xff]   ;;  %v3147_v63 = vmin.f32 %v8997_v61, 0.0 }
 0x1c3   :  { %v3393_v14 = vmax.f32 %v9024_v55, %v9046_v11  ;;  %v9054_v16 = vsel %vm3100_vm6, %v9004_v4, %v7223_v5  ;;  %v8559_v19 = vpop.eup %8558  ;;  %v7246_v20 = vadd.f32 -1.0, %v8557_v62  ;;  %v8406_v56 = vld [vmem:[#allocation2 + $0x8f8] ss:$100 sps:$4 sm:$0xff]   ;;  %v3249_v5 = vmul.f32 1.442695, %v3171_v60 }
 0x1c4   :  { %v3395_v2 = vmax.f32 %v9041_v9, %v9054_v16  ;;  %v9066_v4 = vsel %vm3124_vm8, %v9010_v8, %v7247_v33  ;;  %v7248_v23 = vadd.f32 -1.0, %v8559_v19  ;;  %v9082_v8 = vsel %vm3120_vm5, %v8981_v39, %v7243_v13  ;;  %v8387_v39 = vld [vmem:[#allocation2 + $0xa84] ss:$100 sps:$4 sm:$0xff]   ;;  %v8407_v58 = vld [vmem:[#allocation2 + $0x2b8] ss:$100 sps:$4 sm:$0xff]  }
 0x1c5   :  { %2987 = vmatpush1.bf16.msra.mxu0 %v8364_v53  ;;  %3030 = vmatpush1.bf16.msra.mxu1 %v8367_v57  ;;  %v3399_v40 = vmax.f32 %v9061_v22, %v9066_v4  ;;  %v9077_v26 = vsel %vm3123_vm11, %v9013_v3, %v7246_v20  ;;  %v8376_v3 = vld [vmem:[#allocation2 + $0x9b0] ss:$100 sps:$4 sm:$0xff]   ;;  %v3146_v57 = vmin.f32 %v8977_v35, 0.0  ;;  %v3201_v6 = vmul.f32 1.442695, %v3147_v63  ;;  %v3455_v22 = vld [vmem:[#allocation4 + $0x88] sm:$0xff] }
 0x1c6   :  { %2988 = vmatprep.subr.bf16.mxu0 %v8372_v0  ;;  %3031 = vmatprep.subr.bf16.mxu1 %v8375_v34  ;;  %v3398_v27 = vmax.f32 %v9072_v25, %v9077_v26  ;;  %v9089_v28 = vsel %vm3125_vm10, %v9015_v18, %v7248_v23  ;;  %v8393_v18 = vld [vmem:[#allocation2 + $0xb4c] ss:$100 sps:$4 sm:$0xff]   ;;  %v3172_v62 = vmin.f32 %v9008_v7, 0.0 }
 0x1c7   :  { %v3400_v36 = vmax.f32 %v9082_v8, %v9089_v28  ;;  %v8404_v53 = vld [vmem:[#allocation2 + $0x830] ss:$100 sps:$4 sm:$0xff]   ;;  %v3199_v0 = vmul.f32 1.442695, %v3146_v57  ;;  %v8410_v34 = vld [vmem:[#allocation2 + $0xa88] ss:$100 sps:$4 sm:$0xff]  }
 0x1c8   :  { %v8411_v13 = vld [vmem:[#allocation2 + $0x448] ss:$100 sps:$4 sm:$0xff]   ;;  %v8412_v33 = vld [vmem:[#allocation2 + $0xb50] ss:$100 sps:$4 sm:$0xff]  }
 0x1c9   :  { %2989 = vmatpush1.bf16.msra.mxu0 %v8370_v17  ;;  %3032 = vmatpush1.bf16.msra.mxu1 %v8373_v21  ;;  %8560 = vpow2.f32 %v3199_v0  ;;  %v3251_v17 = vmul.f32 1.442695, %v3172_v62  ;;  %v8699_v0 = vld [vmem:[%s9472_s0] ss:$8 sps:$4 sm:$0xff]  }
 0x1ca   :  { %2990 = vmatprep.subr.bf16.mxu0 %v8378_v48  ;;  %3033 = vmatprep.subr.bf16.mxu1 %v8381_v24  ;;  %8562 = vpow2.f32 %v3249_v5  ;;  %v3443_v26 = vld [vmem:[#allocation4 + $0x28] sm:$0xff] }
 0x1cb   :  { %8564 = vpow2.f32 %v3201_v6  ;;  %v3459_v4 = vld [vmem:[#allocation4 + $0xa8] sm:$0xff] }
 0x1cc   :  { %8566 = vpow2.f32 %v3251_v17 }
 0x1cd   :  { %2991 = vmatpush1.bf16.msra.mxu0 %v8376_v3  ;;  %3034 = vmatpush1.bf16.msra.mxu1 %v8379_v29  ;;  %v8413_v3 = vld [vmem:[#allocation2 + $0x510] ss:$100 sps:$4 sm:$0xff]  }
 0x1ce   :  { %2992 = vmatprep.subr.bf16.mxu0 %v8384_v30  ;;  %3035 = vmatprep.subr.bf16.mxu1 %v8387_v39 }
 0x1d1   :  { %2993 = vmatpush1.bf16.msra.mxu0 %v8382_v31  ;;  %3036 = vmatpush1.bf16.msra.mxu1 %v8385_v37  ;;  %v8414_v37 = vld [vmem:[#allocation2 + $0xc18] ss:$100 sps:$4 sm:$0xff]  }
 0x1d2   :  { %2994 = vmatprep.subr.bf16.mxu0 %v8390_v38  ;;  %3037 = vmatprep.subr.bf16.mxu1 %v8393_v18 }
 0x1d5   :  { %2995 = vmatpush1.bf16.msra.mxu0 %v8388_v41  ;;  %3038 = vmatpush1.bf16.msra.mxu1 %v8391_v15 }
 0x1d6   :  { %2996 = vmatprep.subr.bf16.mxu0 %v8396_v42  ;;  %3039 = vmatprep.subr.bf16.mxu1 %v8399_v44 }
 0x1d9   :  { %2997 = vmatpush1.bf16.msra.mxu0 %v8394_v45  ;;  %3040 = vmatpush1.bf16.msra.mxu1 %v8397_v46 }
 0x1da   :  { %7700 = vmatprep.subr.bf16.mxu0 %v8400_v47 }
 0x1dc   :  { %2999 = vmatmul.mubr.bf16.vlgmr.msra.gmra.mrb[20].mxu0 %v8965_v12  ;;  %3042 = vmatmul.mubr.bf16.vlgmr.msra.gmra.mrb[20].mxu1 %v8965_v12  ;;  %v8408_v12 = vld [vmem:[#allocation2 + $0x9c0] ss:$100 sps:$4 sm:$0xff]  }
 0x1dd   :  { %7701 = vmatpush3.bf16.msra.mxu0 %v8401_v49  ;;  %3084 = vmatprep.mubr.bf16.mxu0 %v8698_v52 }
 0x1de   :  { %7702 = vmatprep.subr.bf16.mxu0 %v8402_v50 }
 0x1e1   :  { %7703 = vmatpush3.bf16.msra.mxu0 %v8403_v51  ;;  %v8415_v51 = vld [vmem:[#allocation2 + $0x5d8] ss:$100 sps:$4 sm:$0xff]  }
 0x1e2   :  { %7704 = vmatprep.subr.bf16.mxu0 %v8404_v53  ;;  %v8561_v53 = vpop.eup %8560 }
 0x1e3   :  { %v7219_v60 = vadd.f32 -1.0, %v8561_v53 }
 0x1e5   :  { %7705 = vmatpush3.bf16.msra.mxu0 %v8405_v54 }
 0x1e6   :  { %7706 = vmatprep.subr.bf16.mxu0 %v8406_v56  ;;  %v8563_v56 = vpop.eup %8562 }
 0x1e9   :  { %7707 = vmatpush3.bf16.msra.mxu0 %v8407_v58  ;;  %v8565_v58 = vpop.eup %8564 }
 0x1ea   :  { %7708 = vmatprep.subr.bf16.mxu0 %v8408_v12  ;;  %v7244_v12 = vadd.f32 -1.0, %v8563_v56  ;;  %v7220_v63 = vadd.f32 -1.0, %v8565_v58  ;;  %v3447_v58 = vld [vmem:[#allocation4 + $0x48] sm:$0xff] }
 0x1ec   :  { %v9135_v62 = vsel %vm3121_vm13, %v8985_v43, %v7244_v12  ;;  %v9140_v17 = vsel %vm3097_vm14, %v8997_v61, %v7220_v63  ;;  %v3454_v12 = vld [vmem:[#allocation4 + $0x80] sm:$0xff] }
 0x1ed   :  { %7709 = vmatpush3.bf16.msra.mxu0 %v8409_v1  ;;  %v8567_v1 = vpop.eup %8566  ;;  %v3458_v63 = vld [vmem:[#allocation4 + $0xa0] sm:$0xff] }
 0x1ee   :  { %7710 = vmatprep.subr.bf16.mxu0 %v8410_v34  ;;  %v9132_v34 = vsel %vm3096_vm12, %v8977_v35, %v7219_v60  ;;  %v3451_v60 = vld [vmem:[#allocation4 + $0x68] sm:$0xff] }
 0x1ef   :  { %v9102_v19 = vpop.f32.mrb[8].mxu0  ;;  %v9104_v20 = vpop.f32.mrb[8].mxu1 }
 0x1f0   :  { %v3151_v21 = vmin.f32 %v9102_v19, 0.0  ;;  %v3153_v23 = vmin.f32 %v9104_v20, 0.0  ;;  %v9108_v48 = vpop.f32.mrb[9].mxu0  ;;  %v9110_v24 = vpop.f32.mrb[9].mxu1  ;;  %vm3103_vm15 = vcmp.gt.f32.partialorder %v9104_v20, 0.0  ;;  %vm3101_vm1 = vcmp.gt.f32.partialorder %v9102_v19, 0.0 }
 0x1f1   :  { %v3152_v29 = vmin.f32 %v9108_v48, 0.0  ;;  %v3154_v30 = vmin.f32 %v9110_v24, 0.0  ;;  %v9114_v39 = vpop.f32.mrb[10].mxu0  ;;  %v9116_v31 = vpop.f32.mrb[10].mxu1  ;;  %7711 = vmatpush3.bf16.msra.mxu0 %v8411_v13  ;;  %vm3104_vm2 = vcmp.gt.f32.partialorder %v9110_v24, 0.0  ;;  %vm3102_vm3 = vcmp.gt.f32.partialorder %v9108_v48, 0.0 }
 0x1f2   :  { %v3209_v38 = vmul.f32 1.442695, %v3151_v21  ;;  %v3213_v18 = vmul.f32 1.442695, %v3153_v23  ;;  %v3176_v41 = vmin.f32 %v9114_v39, 0.0  ;;  %7712 = vmatprep.subr.bf16.mxu0 %v8412_v33  ;;  %v3178_v44 = vmin.f32 %v9116_v31, 0.0 }
 0x1f3   :  { %v3211_v15 = vmul.f32 1.442695, %v3152_v29  ;;  %v3215_v42 = vmul.f32 1.442695, %v3154_v30  ;;  %v9120_v46 = vpop.f32.mrb[11].mxu0  ;;  %v9122_v47 = vpop.f32.mrb[11].mxu1 }
 0x1f4   :  { %8568 = vpow2.f32 %v3209_v38  ;;  %v3259_v45 = vmul.f32 1.442695, %v3176_v41  ;;  %v3263_v49 = vmul.f32 1.442695, %v3178_v44  ;;  %v3177_v50 = vmin.f32 %v9120_v46, 0.0 }
 0x1f5   :  { %8570 = vpow2.f32 %v3213_v18  ;;  %7713 = vmatpush3.bf16.msra.mxu0 %v8413_v3  ;;  %v3179_v52 = vmin.f32 %v9122_v47, 0.0  ;;  %v7245_v23 = vadd.f32 -1.0, %v8567_v1  ;;  %vm3128_vm4 = vcmp.gt.f32.partialorder %v9116_v31, 0.0 }
 0x1f6   :  { %8572 = vpow2.f32 %v3211_v15  ;;  %7714 = vmatprep.subr.bf16.mxu0 %v8414_v37  ;;  %v3261_v54 = vmul.f32 1.442695, %v3177_v50  ;;  %vm3126_vm5 = vcmp.gt.f32.partialorder %v9114_v39, 0.0  ;;  %vm3129_vm6 = vcmp.gt.f32.partialorder %v9122_v47, 0.0 }
 0x1f7   :  { %8574 = vpow2.f32 %v3215_v42  ;;  %v3265_v57 = vmul.f32 1.442695, %v3179_v52  ;;  %vm3127_vm7 = vcmp.gt.f32.partialorder %v9120_v46, 0.0  ;;  %v9181_v59 = vsel %vm3122_vm0, %v9008_v7, %v7245_v23  ;;  %v3438_v7 = vld [vmem:[#allocation4] sm:$0xff]  ;;  %v3439_v52 = vld [vmem:[#allocation4 + $0x8] sm:$0xff] }
 0x1f8   :  { %8576 = vpow2.f32 %v3259_v45  ;;  %v7269_v56 = vcombine.high %v3439_v52, %v3443_v26  ;;  %v7283_v1 = vcombine.high %v3454_v12, %v3458_v63  ;;  %v7284_v23 = vcombine.low %v3455_v22, %v3459_v4 }
 0x1f9   :  { %8578 = vpow2.f32 %v3263_v49  ;;  %7715 = vmatpush3.bf16.msra.mxu0 %v8415_v51  ;;  %v3442_v51 = vld [vmem:[#allocation4 + $0x20] sm:$0xff] }
 0x1fa   :  { %8580 = vpow2.f32 %v3261_v54  ;;  %v7266_v53 = vcombine.low %v3438_v7, %v3442_v51  ;;  %v7267_v25 = vcombine.high %v3438_v7, %v3442_v51  ;;  %v3450_v54 = vld [vmem:[#allocation4 + $0x60] sm:$0xff]  ;;  %5487 = vmatprep.subr.bf16.mxu0 %v7269_v56 }
 0x1fb   :  { %8582 = vpow2.f32 %v3265_v57 }
 0x1fc   :  { %3085 = vmatmul.mubr.bf16.vlgmr.msra.gmra.mrb[24].mxu0 %v8699_v0  ;;  %5358 = vmatprep.subr.bf16.mxu1 %v7267_v25  ;;  %v7276_v0 = vcombine.low %v3447_v58, %v3451_v60  ;;  %v3486_v25 = vld [vmem:[#allocation4 + $0x180] sm:$0xff] }
 0x1fd   :  { %5359 = vmatpush1.bf16.msra.mxu1 %v7266_v53 }
 0x1fe   :  { %v8569_v5 = vpop.eup %8568 }
 0x1ff   :  { %v8571_v6 = vpop.eup %8570  ;;  %v7224_v13 = vadd.f32 -1.0, %v8569_v5  ;;  %v7285_v5 = vcombine.high %v3455_v22, %v3459_v4 }
 0x200   :  { %v8573_v33 = vpop.eup %8572  ;;  %v7226_v21 = vadd.f32 -1.0, %v8571_v6  ;;  %v3462_v6 = vld [vmem:[#allocation4 + $0xc0] sm:$0xff] }
 0x201   :  { %v8575_v35 = vpop.eup %8574  ;;  %v9145_v3 = vsel %vm3101_vm1, %v9102_v19, %v7224_v13  ;;  %v7225_v43 = vadd.f32 -1.0, %v8573_v33  ;;  %v3466_v13 = vld [vmem:[#allocation4 + $0xe0] sm:$0xff]  ;;  %v3463_v33 = vld [vmem:[#allocation4 + $0xc8] sm:$0xff] }
 0x202   :  { %v8577_v29 = vpop.eup %8576  ;;  %v3396_v30 = vmax.f32 %v9132_v34, %v9145_v3  ;;  %v3353_v61 = vsel %vm3103_vm15, %v9104_v20, %v7226_v21  ;;  %v7227_v37 = vadd.f32 -1.0, %v8575_v35  ;;  %v3467_v21 = vld [vmem:[#allocation4 + $0xe8] sm:$0xff]  ;;  %v7282_v35 = vcombine.low %v3454_v12, %v3458_v63  ;;  %v3498_v12 = vld [vmem:[#allocation4 + $0x1e0] sm:$0xff] }
 0x203   :  { %v8579_v38 = vpop.eup %8578  ;;  %v9155_v18 = vmax.f32 %v3393_v14, %v3353_v61  ;;  %v9158_v19 = vsel %vm3102_vm3, %v9108_v48, %v7225_v43  ;;  %v7249_v41 = vadd.f32 -1.0, %v8577_v29  ;;  %v7291_v43 = vcombine.high %v3462_v6, %v3466_v13  ;;  %v3470_v61 = vld [vmem:[#allocation4 + $0x100] sm:$0xff]  ;;  %v3499_v63 = vld [vmem:[#allocation4 + $0x1e8] sm:$0xff] }
 0x204   :  { %v8581_v15 = vpop.eup %8580  ;;  %v3397_v42 = vmax.f32 %v9140_v17, %v9158_v19  ;;  %v3354_v20 = vsel %vm3104_vm2, %v9110_v24, %v7227_v37  ;;  %v7251_v44 = vadd.f32 -1.0, %v8579_v38  ;;  %v7293_v29 = vcombine.high %v3463_v33, %v3467_v21  ;;  %v3474_v37 = vld [vmem:[#allocation4 + $0x120] sm:$0xff]  ;;  %v3471_v38 = vld [vmem:[#allocation4 + $0x108] sm:$0xff] }
 0x205   :  { %v8583_v45 = vpop.eup %8582  ;;  %v9168_v55 = vmax.f32 %v3394_v10, %v3354_v20  ;;  %v9171_v11 = vsel %vm3126_vm5, %v9114_v39, %v7249_v41  ;;  %v7250_v14 = vadd.f32 -1.0, %v8581_v15  ;;  %v3475_v41 = vld [vmem:[#allocation4 + $0x128] sm:$0xff]  ;;  %v7290_v15 = vcombine.low %v3462_v6, %v3466_v13 }
 0x206   :  { %v3401_v48 = vmax.f32 %v9135_v62, %v9171_v11  ;;  %v3378_v24 = vsel %vm3128_vm4, %v9116_v31, %v7251_v44  ;;  %v7252_v49 = vadd.f32 -1.0, %v8583_v45  ;;  %v7292_v20 = vcombine.low %v3463_v33, %v3467_v21  ;;  %v3503_v6 = vld [vmem:[#allocation4 + $0x208] sm:$0xff] }
 0x207   :  { %v9186_v32 = vmax.f32 %v3398_v27, %v3378_v24  ;;  %v9189_v10 = vsel %vm3127_vm7, %v9120_v46, %v7250_v14  ;;  %v3446_v27 = vld [vmem:[#allocation4 + $0x40] sm:$0xff]  ;;  %v7268_v46 = vcombine.low %v3439_v52, %v3443_v26  ;;  %v7299_v44 = vcombine.high %v3470_v61, %v3474_v37  ;;  %v3507_v13 = vld [vmem:[#allocation4 + $0x228] sm:$0xff] }
 0x208   :  { %v3402_v39 = vmax.f32 %v9181_v59, %v9189_v10  ;;  %v3379_v31 = vsel %vm3129_vm6, %v9122_v47, %v7252_v49  ;;  %v7275_v57 = vcombine.high %v3446_v27, %v3450_v54  ;;  %v7277_v47 = vcombine.high %v3447_v58, %v3451_v60  ;;  %v3478_v14 = vld [vmem:[#allocation4 + $0x140] sm:$0xff]  ;;  %v3479_v49 = vld [vmem:[#allocation4 + $0x148] sm:$0xff] }
 0x209   :  { %v9197_v50 = vmax.f32 %v3399_v40, %v3379_v31  ;;  %v7274_v40 = vcombine.low %v3446_v27, %v3450_v54  ;;  %5488 = vmatpush1.bf16.msra.mxu0 %v7268_v46  ;;  %v7301_v45 = vcombine.high %v3471_v38, %v3475_v41  ;;  %v3482_v24 = vld [vmem:[#allocation4 + $0x160] sm:$0xff]  ;;  %v3483_v31 = vld [vmem:[#allocation4 + $0x168] sm:$0xff]  ;;  %v7298_v7 = vcombine.low %v3470_v61, %v3474_v37 }
 0x20a   :  { %5360 = vmatprep.subr.bf16.mxu1 %v7275_v57  ;;  %5489 = vmatprep.subr.bf16.mxu0 %v7277_v47  ;;  %v7300_v51 = vcombine.low %v3471_v38, %v3475_v41  ;;  %v7307_v52 = vcombine.high %v3478_v14, %v3482_v24  ;;  %v7309_v53 = vcombine.high %v3479_v49, %v3483_v31  ;;  %v3490_v26 = vld [vmem:[#allocation4 + $0x1a0] sm:$0xff]  ;;  %v3487_v27 = vld [vmem:[#allocation4 + $0x188] sm:$0xff] }
 0x20b   :  { %5361 = vmatpush1.bf16.msra.mxu1 %v7274_v40  ;;  %v3491_v54 = vld [vmem:[#allocation4 + $0x1a8] sm:$0xff]  ;;  %v7306_v46 = vcombine.low %v3478_v14, %v3482_v24  ;;  %v7308_v56 = vcombine.low %v3479_v49, %v3483_v31  ;;  %v7315_v57 = vcombine.high %v3486_v25, %v3490_v26  ;;  %v3494_v60 = vld [vmem:[#allocation4 + $0x1c0] sm:$0xff]  ;;  %v7314_v22 = vcombine.low %v3486_v25, %v3490_v26 }
 0x20c   :  { %5362 = vmatprep.subr.bf16.mxu1 %v7283_v1  ;;  %v7317_v58 = vcombine.high %v3487_v27, %v3491_v54  ;;  %v3495_v47 = vld [vmem:[#allocation4 + $0x1c8] sm:$0xff]  ;;  %v7316_v4 = vcombine.low %v3487_v27, %v3491_v54  ;;  %v7323_v40 = vcombine.high %v3494_v60, %v3498_v12  ;;  %v3502_v1 = vld [vmem:[#allocation4 + $0x200] sm:$0xff]  ;;  %v7322_v33 = vcombine.low %v3494_v60, %v3498_v12 }
 0x20d   :  { %5490 = vmatpush1.bf16.msra.mxu0 %v7276_v0  ;;  %v7325_v0 = vcombine.high %v3495_v47, %v3499_v63  ;;  %v7324_v21 = vcombine.low %v3495_v47, %v3499_v63  ;;  %v3511_v61 = vld [vmem:[#allocation4 + $0x248] sm:$0xff]  ;;  %v7332_v41 = vcombine.low %v3503_v6, %v3507_v13  ;;  %v3518_v63 = vld [vmem:[#allocation4 + $0x280] sm:$0xff] }
 0x20e   :  { %5491 = vmatprep.subr.bf16.mxu0 %v7285_v5  ;;  %v3506_v5 = vld [vmem:[#allocation4 + $0x220] sm:$0xff]  ;;  %v3515_v37 = vld [vmem:[#allocation4 + $0x268] sm:$0xff] }
 0x20f   :  { %5363 = vmatpush1.bf16.msra.mxu1 %v7282_v35  ;;  %v7331_v35 = vcombine.high %v3502_v1, %v3506_v5  ;;  %v7330_v38 = vcombine.low %v3502_v1, %v3506_v5  ;;  %v3523_v1 = vld [vmem:[#allocation4 + $0x2a8] sm:$0xff] }
 0x210   :  { %5364 = vmatprep.subr.bf16.mxu1 %v7291_v43  ;;  %v3510_v43 = vld [vmem:[#allocation4 + $0x240] sm:$0xff] }
 0x211   :  { %5492 = vmatpush1.bf16.msra.mxu0 %v7284_v23  ;;  %v7333_v23 = vcombine.high %v3503_v6, %v3507_v13  ;;  %v3526_v13 = vld [vmem:[#allocation4 + $0x2c0] sm:$0xff] }
 0x212   :  { %5493 = vmatprep.subr.bf16.mxu0 %v7293_v29  ;;  %v3514_v29 = vld [vmem:[#allocation4 + $0x260] sm:$0xff] }
 0x213   :  { %5365 = vmatpush1.bf16.msra.mxu1 %v7290_v15  ;;  %v7339_v15 = vcombine.high %v3510_v43, %v3514_v29 }
 0x214   :  { %5366 = vmatprep.subr.bf16.mxu1 %v7299_v44  ;;  %v7338_v44 = vcombine.low %v3510_v43, %v3514_v29  ;;  %v3531_v29 = vld [vmem:[#allocation4 + $0x2e8] sm:$0xff] }
 0x215   :  { %5494 = vmatpush1.bf16.msra.mxu0 %v7292_v20  ;;  %v7341_v20 = vcombine.high %v3511_v61, %v3515_v37 }
 0x216   :  { %5495 = vmatprep.subr.bf16.mxu0 %v7301_v45  ;;  %v7340_v45 = vcombine.low %v3511_v61, %v3515_v37 }
 0x217   :  { %5367 = vmatpush1.bf16.msra.mxu1 %v7298_v7 }
 0x218   :  { %5368 = vmatprep.subr.bf16.mxu1 %v7307_v52 }
 0x219   :  { %5496 = vmatpush1.bf16.msra.mxu0 %v7300_v51 }
 0x21a   :  { %5497 = vmatprep.subr.bf16.mxu0 %v7309_v53 }
 0x21b   :  { %5369 = vmatpush1.bf16.msra.mxu1 %v7306_v46 }
 0x21c   :  { %5370 = vmatprep.subr.bf16.mxu1 %v7315_v57 }
 0x21d   :  { %5498 = vmatpush1.bf16.msra.mxu0 %v7308_v56 }
 0x21e   :  { %5499 = vmatprep.subr.bf16.mxu0 %v7317_v58 }
 0x21f   :  { %5371 = vmatpush1.bf16.msra.mxu1 %v7314_v22  ;;  %v3522_v22 = vld [vmem:[#allocation4 + $0x2a0] sm:$0xff] }
 0x220   :  { %5372 = vmatprep.subr.bf16.mxu1 %v7323_v40  ;;  %v7346_v6 = vcombine.low %v3518_v63, %v3522_v22 }
 0x221   :  { %5500 = vmatpush1.bf16.msra.mxu0 %v7316_v4 }
 0x222   :  { %5501 = vmatprep.subr.bf16.mxu0 %v7325_v0  ;;  %v3519_v0 = vld [vmem:[#allocation4 + $0x288] sm:$0xff] }
 0x223   :  { %5373 = vmatpush1.bf16.msra.mxu1 %v7322_v33  ;;  %v3530_v33 = vld [vmem:[#allocation4 + $0x2e0] sm:$0xff]  ;;  %v7348_v43 = vcombine.low %v3519_v0, %v3523_v1  ;;  %v7349_v37 = vcombine.high %v3519_v0, %v3523_v1 }
 0x224   :  { %5374 = vmatprep.subr.bf16.mxu1 %v7331_v35 }
 0x225   :  { %5502 = vmatpush1.bf16.msra.mxu0 %v7324_v21  ;;  %v3527_v21 = vld [vmem:[#allocation4 + $0x2c8] sm:$0xff] }
 0x226   :  { %5503 = vmatprep.subr.bf16.mxu0 %v7333_v23  ;;  %v7347_v23 = vcombine.high %v3518_v63, %v3522_v22 }
 0x227   :  { %5375 = vmatpush1.bf16.msra.mxu1 %v7330_v38  ;;  %v7355_v38 = vcombine.high %v3526_v13, %v3530_v33 }
 0x228   :  { %5376 = vmatprep.subr.bf16.mxu1 %v7339_v15  ;;  %v7354_v15 = vcombine.low %v3526_v13, %v3530_v33 }
 0x229   :  { %5504 = vmatpush1.bf16.msra.mxu0 %v7332_v41  ;;  %v7357_v41 = vcombine.high %v3527_v21, %v3531_v29 }
 0x22a   :  { %5505 = vmatprep.subr.bf16.mxu0 %v7341_v20  ;;  %v3534_v20 = vld [vmem:[#allocation4 + $0x300] sm:$0xff] }
 0x22b   :  { %5377 = vmatpush1.bf16.msra.mxu1 %v7338_v44  ;;  %v3538_v44 = vld [vmem:[#allocation4 + $0x320] sm:$0xff] }
 0x22c   :  { %5378 = vmatprep.subr.bf16.mxu1 %v7347_v23 }
 0x22d   :  { %5506 = vmatpush1.bf16.msra.mxu0 %v7340_v45  ;;  %v3535_v45 = vld [vmem:[#allocation4 + $0x308] sm:$0xff] }
 0x22e   :  { %5507 = vmatprep.subr.bf16.mxu0 %v7349_v37  ;;  %v3554_v37 = vld [vmem:[#allocation4 + $0x3a0] sm:$0xff] }
 0x22f   :  { %v9199_v14 = vpop.f32.mrb[12].mxu0  ;;  %v9201_v24 = vpop.f32.mrb[12].mxu1  ;;  %5379 = vmatpush1.bf16.msra.mxu1 %v7346_v6 }
 0x230   :  { %v3155_v49 = vmin.f32 %v9199_v14, 0.0  ;;  %v3157_v31 = vmin.f32 %v9201_v24, 0.0  ;;  %v9205_v7 = vpop.f32.mrb[13].mxu0  ;;  %v9207_v51 = vpop.f32.mrb[13].mxu1  ;;  %5380 = vmatprep.subr.bf16.mxu1 %v7355_v38  ;;  %vm3105_vm8 = vcmp.gt.f32.partialorder %v9199_v14, 0.0  ;;  %vm3107_vm9 = vcmp.gt.f32.partialorder %v9201_v24, 0.0 }
 0x231   :  { %v3156_v52 = vmin.f32 %v9205_v7, 0.0  ;;  %v3158_v53 = vmin.f32 %v9207_v51, 0.0  ;;  %v9211_v25 = vpop.f32.mrb[14].mxu0  ;;  %v9213_v26 = vpop.f32.mrb[14].mxu1  ;;  %5508 = vmatpush1.bf16.msra.mxu0 %v7348_v43  ;;  %vm3106_vm10 = vcmp.gt.f32.partialorder %v9205_v7, 0.0  ;;  %vm3108_vm11 = vcmp.gt.f32.partialorder %v9207_v51, 0.0 }
 0x232   :  { %v3217_v27 = vmul.f32 1.442695, %v3155_v49  ;;  %v3221_v54 = vmul.f32 1.442695, %v3157_v31  ;;  %v3180_v46 = vmin.f32 %v9211_v25, 0.0  ;;  %v3182_v58 = vmin.f32 %v9213_v26, 0.0  ;;  %5509 = vmatprep.subr.bf16.mxu0 %v7357_v41 }
 0x233   :  { %v3219_v56 = vmul.f32 1.442695, %v3156_v52  ;;  %v3223_v57 = vmul.f32 1.442695, %v3158_v53  ;;  %v9217_v12 = vpop.f32.mrb[15].mxu0  ;;  %v9219_v47 = vpop.f32.mrb[15].mxu1  ;;  %v7356_v49 = vcombine.low %v3527_v21, %v3531_v29  ;;  %v7363_v31 = vcombine.high %v3534_v20, %v3538_v44  ;;  %5381 = vmatpush1.bf16.msra.mxu1 %v7354_v15 }
 0x234   :  { %8584 = vpow2.f32 %v3217_v27  ;;  %v3267_v60 = vmul.f32 1.442695, %v3180_v46  ;;  %v3271_v4 = vmul.f32 1.442695, %v3182_v58  ;;  %v3181_v40 = vmin.f32 %v9217_v12, 0.0  ;;  %v3539_v52 = vld [vmem:[#allocation4 + $0x328] sm:$0xff] }
 0x235   :  { %8586 = vpow2.f32 %v3221_v54  ;;  %v3183_v5 = vmin.f32 %v9219_v47, 0.0  ;;  %v7365_v53 = vcombine.high %v3535_v45, %v3539_v52  ;;  %v7362_v54 = vcombine.low %v3534_v20, %v3538_v44  ;;  %v3542_v46 = vld [vmem:[#allocation4 + $0x340] sm:$0xff]  ;;  %5510 = vmatpush1.bf16.msra.mxu0 %v7356_v49  ;;  %5382 = vmatprep.subr.bf16.mxu1 %v7363_v31 }
 0x236   :  { %8588 = vpow2.f32 %v3219_v56  ;;  %v3269_v35 = vmul.f32 1.442695, %v3181_v40  ;;  %v3546_v56 = vld [vmem:[#allocation4 + $0x360] sm:$0xff]  ;;  %vm3130_vm12 = vcmp.gt.f32.partialorder %v9211_v25, 0.0  ;;  %v7364_v63 = vcombine.low %v3535_v45, %v3539_v52 }
 0x237   :  { %8590 = vpow2.f32 %v3223_v57  ;;  %v3273_v61 = vmul.f32 1.442695, %v3183_v5  ;;  %v3543_v57 = vld [vmem:[#allocation4 + $0x348] sm:$0xff]  ;;  %v7371_v22 = vcombine.high %v3542_v46, %v3546_v56  ;;  %vm3132_vm13 = vcmp.gt.f32.partialorder %v9213_v26, 0.0  ;;  %5511 = vmatprep.subr.bf16.mxu0 %v7365_v53  ;;  %5383 = vmatpush1.bf16.msra.mxu1 %v7362_v54  ;;  %v3558_v52 = vld [vmem:[#allocation4 + $0x3c0] sm:$0xff] }
 0x238   :  { %8592 = vpow2.f32 %v3267_v60  ;;  %vm3131_vm14 = vcmp.gt.f32.partialorder %v9217_v12, 0.0  ;;  %vm3133_vm15 = vcmp.gt.f32.partialorder %v9219_v47, 0.0  ;;  %v7370_v33 = vcombine.low %v3542_v46, %v3546_v56  ;;  %v3562_v53 = vld [vmem:[#allocation4 + $0x3e0] sm:$0xff]  ;;  %v9297_v56 = vld [vmem:[#allocation4 + $0x408] sm:$0xff] }
 0x239   :  { %8594 = vpow2.f32 %v3271_v4  ;;  %v3547_v4 = vld [vmem:[#allocation4 + $0x368] sm:$0xff]  ;;  %5512 = vmatpush1.bf16.msra.mxu0 %v7364_v63  ;;  %5384 = vmatprep.subr.bf16.mxu1 %v7371_v22  ;;  %v7387_v28 = vcombine.high %v3558_v52, %v3562_v53  ;;  %v9295_v46 = vld [vmem:[#allocation4 + $0x420] sm:$0xff] }
 0x23a   :  { %8596 = vpow2.f32 %v3269_v35  ;;  %v7373_v1 = vcombine.high %v3543_v57, %v3547_v4  ;;  %v7372_v29 = vcombine.low %v3543_v57, %v3547_v4 }
 0x23b   :  { %8598 = vpow2.f32 %v3273_v61  ;;  %v3550_v61 = vld [vmem:[#allocation4 + $0x380] sm:$0xff]  ;;  %5385 = vmatpush1.bf16.msra.mxu1 %v7370_v33 }
 0x23c   :  { %5513 = vmatprep.subr.bf16.mxu0 %v7373_v1 }
 0x23d   :  { %5514 = vmatpush1.bf16.msra.mxu0 %v7372_v29 }
 0x23e   :  { %v8585_v27 = vpop.eup %8584 }
 0x23f   :  { %v8587_v58 = vpop.eup %8586  ;;  %v7228_v60 = vadd.f32 -1.0, %v8585_v27  ;;  %v3559_v27 = vld [vmem:[#allocation4 + $0x3c8] sm:$0xff] }
 0x240   :  { %v8589_v40 = vpop.eup %8588  ;;  %v7230_v0 = vadd.f32 -1.0, %v8587_v58 }
 0x241   :  { %v8591_v5 = vpop.eup %8590  ;;  %v3355_v6 = vsel %vm3105_vm8, %v9199_v14, %v7228_v60  ;;  %v7229_v13 = vadd.f32 -1.0, %v8589_v40  ;;  %v3551_v14 = vld [vmem:[#allocation4 + $0x388] sm:$0xff] }
 0x242   :  { %v8593_v21 = vpop.eup %8592  ;;  %v9237_v35 = vmax.f32 %v3395_v2, %v3355_v6  ;;  %v3357_v23 = vsel %vm3107_vm9, %v9201_v24, %v7230_v0  ;;  %v7231_v43 = vadd.f32 -1.0, %v8591_v5  ;;  %v7379_v2 = vcombine.high %v3550_v61, %v3554_v37  ;;  %v3555_v24 = vld [vmem:[#allocation4 + $0x3a8] sm:$0xff] }
 0x243   :  { %v8595_v38 = vpop.eup %8594  ;;  %v9245_v41 = vmax.f32 %v3397_v42, %v3357_v23  ;;  %v3356_v9 = vsel %vm3106_vm10, %v9205_v7, %v7229_v13  ;;  %v7253_v16 = vadd.f32 -1.0, %v8593_v21  ;;  %v7378_v42 = vcombine.low %v3550_v61, %v3554_v37 }
 0x244   :  { %v8597_v15 = vpop.eup %8596  ;;  %v9253_v20 = vmax.f32 %v3396_v30, %v3356_v9  ;;  %v9258_v17 = vsel %vm3108_vm11, %v9207_v51, %v7231_v43  ;;  %v7255_v19 = vadd.f32 -1.0, %v8595_v38  ;;  %v7380_v34 = vcombine.low %v3551_v14, %v3555_v24  ;;  %5386 = vmatprep.subr.bf16.mxu1 %v7379_v2 }
 0x245   :  { %v8599_v7 = vpop.eup %8598  ;;  %v3413_v44 = vmax.f32 %v9155_v18, %v9258_v17  ;;  %v3380_v45 = vsel %vm3130_vm12, %v9211_v25, %v7253_v16  ;;  %v7254_v49 = vadd.f32 -1.0, %v8597_v15  ;;  %v7381_v31 = vcombine.high %v3551_v14, %v3555_v24  ;;  %5387 = vmatpush1.bf16.msra.mxu1 %v7378_v42 }
 0x246   :  { %v9268_v3 = vmax.f32 %v3400_v36, %v3380_v45  ;;  %v3382_v30 = vsel %vm3132_vm13, %v9213_v26, %v7255_v19  ;;  %v7256_v51 = vadd.f32 -1.0, %v8599_v7  ;;  %v3563_v36 = vld [vmem:[#allocation4 + $0x3e8] sm:$0xff]  ;;  %5388 = vmatprep.subr.bf16.mxu1 %v7387_v28 }
 0x247   :  { %v9276_v25 = vmax.f32 %v3402_v39, %v3382_v30  ;;  %v3381_v8 = vsel %vm3131_vm14, %v9217_v12, %v7254_v49  ;;  %5515 = vmatprep.subr.bf16.mxu0 %v7381_v31  ;;  %v7389_v10 = vcombine.high %v3559_v27, %v3563_v36  ;;  %v7386_v39 = vcombine.low %v3558_v52, %v3562_v53  ;;  %v9293_v12 = vld [vmem:[#allocation4 + $0x400] sm:$0xff] }
 0x248   :  { %v9284_v26 = vmax.f32 %v3401_v48, %v3381_v8  ;;  %v9289_v54 = vsel %vm3133_vm15, %v9219_v47, %v7256_v51  ;;  %5516 = vmatpush1.bf16.msra.mxu0 %v7380_v34  ;;  %v7388_v62 = vcombine.low %v3559_v27, %v3563_v36  ;;  %v7395_v11 = vcombine.high %v9293_v12, %v9295_v46  ;;  %v9301_v48 = vld [vmem:[#allocation4 + $0x428] sm:$0xff] }
 0x249   :  { %v3418_v59 = vmax.f32 %v9186_v32, %v9289_v54  ;;  %5517 = vmatprep.subr.bf16.mxu0 %v7389_v10  ;;  %v7394_v47 = vcombine.low %v9293_v12, %v9295_v46  ;;  %v7396_v57 = vcombine.low %v9297_v56, %v9301_v48  ;;  %v7397_v58 = vcombine.high %v9297_v56, %v9301_v48  ;;  %v3578_v54 = vld [vmem:[#allocation4 + $0x460] sm:$0xff]  ;;  %v3591_v12 = vld [vmem:[#allocation4 + $0x4c8] sm:$0xff] }
 0x24a   :  { %5389 = vmatpush1.bf16.msra.mxu1 %v7386_v39  ;;  %v3595_v46 = vld [vmem:[#allocation4 + $0x4e8] sm:$0xff] }
 0x24b   :  { %5401 = vmatprep.subr.bf16.mxu1 %v7395_v11 }
 0x24c   :  { %5518 = vmatpush1.bf16.msra.mxu0 %v7388_v62 }
 0x24d   :  { %5530 = vmatprep.subr.bf16.mxu0 %v7397_v58 }
 0x26f   :  { %v2914_v60 = vpop.f32.mrb[16].mxu0  ;;  %v2957_v63 = vpop.f32.mrb[16].mxu1 }
 0x270   :  { %v3159_v22 = vmin.f32 %v2914_v60, 0.0  ;;  %v3161_v4 = vmin.f32 %v2957_v63, 0.0  ;;  %v2916_v40 = vpop.f32.mrb[17].mxu0  ;;  %v2959_v0 = vpop.f32.mrb[17].mxu1  ;;  %vm3111_vm0 = vcmp.gt.f32.partialorder %v2957_v63, 0.0  ;;  %vm3109_vm1 = vcmp.gt.f32.partialorder %v2914_v60, 0.0 }
 0x271   :  { %v3160_v1 = vmin.f32 %v2916_v40, 0.0  ;;  %v3162_v5 = vmin.f32 %v2959_v0, 0.0  ;;  %v2918_v6 = vpop.f32.mrb[18].mxu0  ;;  %v2961_v13 = vpop.f32.mrb[18].mxu1  ;;  %vm3112_vm2 = vcmp.gt.f32.partialorder %v2959_v0, 0.0  ;;  %vm3110_vm3 = vcmp.gt.f32.partialorder %v2916_v40, 0.0 }
 0x272   :  { %v3225_v33 = vmul.f32 1.442695, %v3159_v22  ;;  %v3229_v21 = vmul.f32 1.442695, %v3161_v4  ;;  %v3184_v23 = vmin.f32 %v2918_v6, 0.0  ;;  %v3186_v61 = vmin.f32 %v2961_v13, 0.0 }
 0x273   :  { %v3227_v43 = vmul.f32 1.442695, %v3160_v1  ;;  %v3231_v29 = vmul.f32 1.442695, %v3162_v5  ;;  %v2920_v14 = vpop.f32.mrb[19].mxu0  ;;  %v2963_v38 = vpop.f32.mrb[19].mxu1 }
 0x274   :  { %8600 = vpow2.f32 %v3225_v33  ;;  %v3275_v37 = vmul.f32 1.442695, %v3184_v23  ;;  %v3279_v9 = vmul.f32 1.442695, %v3186_v61  ;;  %v3185_v16 = vmin.f32 %v2920_v14, 0.0 }
 0x275   :  { %8602 = vpow2.f32 %v3229_v21  ;;  %v3187_v2 = vmin.f32 %v2963_v38, 0.0  ;;  %vm3136_vm4 = vcmp.gt.f32.partialorder %v2961_v13, 0.0  ;;  %vm3134_vm5 = vcmp.gt.f32.partialorder %v2918_v6, 0.0 }
 0x276   :  { %8604 = vpow2.f32 %v3227_v43  ;;  %v3277_v24 = vmul.f32 1.442695, %v3185_v16  ;;  %vm3137_vm6 = vcmp.gt.f32.partialorder %v2963_v38, 0.0  ;;  %vm3135_vm7 = vcmp.gt.f32.partialorder %v2920_v14, 0.0 }
 0x277   :  { %8606 = vpow2.f32 %v3231_v29  ;;  %v3281_v15 = vmul.f32 1.442695, %v3187_v2 }
 0x278   :  { %8608 = vpow2.f32 %v3275_v37 }
 0x279   :  { %8610 = vpow2.f32 %v3279_v9 }
 0x27a   :  { %8612 = vpow2.f32 %v3277_v24 }
 0x27b   :  { %8614 = vpow2.f32 %v3281_v15 }
 0x27e   :  { %v8601_v19 = vpop.eup %8600 }
 0x27f   :  { %v8603_v42 = vpop.eup %8602  ;;  %v7232_v7 = vadd.f32 -1.0, %v8601_v19 }
 0x280   :  { %v8605_v45 = vpop.eup %8604  ;;  %v7234_v49 = vadd.f32 -1.0, %v8603_v42 }
 0x281   :  { %v8607_v34 = vpop.eup %8606  ;;  %v9309_v30 = vsel %vm3109_vm1, %v2914_v60, %v7232_v7  ;;  %v7233_v51 = vadd.f32 -1.0, %v8605_v45 }
 0x282   :  { %v8609_v31 = vpop.eup %8608  ;;  %v3414_v52 = vmax.f32 %v9168_v55, %v9309_v30  ;;  %v9313_v53 = vsel %vm3111_vm0, %v2957_v63, %v7234_v49  ;;  %v7235_v27 = vadd.f32 -1.0, %v8607_v34 }
 0x283   :  { %v8611_v8 = vpop.eup %8610  ;;  %v3416_v28 = vmax.f32 %v9253_v20, %v9313_v53  ;;  %v9317_v36 = vsel %vm3110_vm3, %v2916_v40, %v7233_v51  ;;  %v7257_v10 = vadd.f32 -1.0, %v8609_v31 }
 0x284   :  { %v8613_v39 = vpop.eup %8612  ;;  %v3415_v62 = vmax.f32 %v9237_v35, %v9317_v36  ;;  %v9321_v11 = vsel %vm3112_vm2, %v2959_v0, %v7235_v27  ;;  %v7259_v58 = vadd.f32 -1.0, %v8611_v8 }
 0x285   :  { %v8615_v60 = vpop.eup %8614  ;;  %v3417_v63 = vmax.f32 %v9245_v41, %v9321_v11  ;;  %v9325_v22 = vsel %vm3134_vm5, %v2918_v6, %v7257_v10  ;;  %v7258_v4 = vadd.f32 -1.0, %v8613_v39 }
 0x286   :  { %v3419_v40 = vmax.f32 %v9197_v50, %v9325_v22  ;;  %v9329_v1 = vsel %vm3136_vm4, %v2961_v13, %v7259_v58  ;;  %v7260_v5 = vadd.f32 -1.0, %v8615_v60 }
 0x287   :  { %v3421_v0 = vmax.f32 %v9284_v26, %v9329_v1  ;;  %v9333_v33 = vsel %vm3135_vm7, %v2920_v14, %v7258_v4 }
 0x288   :  { %v3420_v21 = vmax.f32 %v9268_v3, %v9333_v33  ;;  %v9337_v23 = vsel %vm3137_vm6, %v2963_v38, %v7260_v5 }
 0x289   :  { %v3422_v6 = vmax.f32 %v9276_v25, %v9337_v23  ;;  %v3646_v25 = vld [vmem:[#allocation4 + $0x680] sm:$0xff] }
 0x28a   :  { %v3650_v23 = vld [vmem:[#allocation4 + $0x6a0] sm:$0xff] }
 0x2af   :  { %v3000_v43 = vpop.f32.mrb[20].mxu0  ;;  %v3043_v29 = vpop.f32.mrb[20].mxu1 }
 0x2b0   :  { %v3163_v61 = vmin.f32 %v3000_v43, 0.0  ;;  %v3165_v13 = vmin.f32 %v3043_v29, 0.0  ;;  %v3002_v37 = vpop.f32.mrb[21].mxu0  ;;  %v3045_v9 = vpop.f32.mrb[21].mxu1  ;;  %vm3115_vm8 = vcmp.gt.f32.partialorder %v3043_v29, 0.0  ;;  %vm3113_vm9 = vcmp.gt.f32.partialorder %v3000_v43, 0.0 }
 0x2b1   :  { %v3164_v16 = vmin.f32 %v3002_v37, 0.0  ;;  %v3166_v2 = vmin.f32 %v3045_v9, 0.0  ;;  %v3004_v24 = vpop.f32.mrb[22].mxu0  ;;  %v3047_v15 = vpop.f32.mrb[22].mxu1  ;;  %vm3116_vm10 = vcmp.gt.f32.partialorder %v3045_v9, 0.0  ;;  %vm3114_vm11 = vcmp.gt.f32.partialorder %v3002_v37, 0.0 }
 0x2b2   :  { %v3233_v14 = vmul.f32 1.442695, %v3163_v61  ;;  %v3237_v19 = vmul.f32 1.442695, %v3165_v13  ;;  %v3188_v42 = vmin.f32 %v3004_v24, 0.0  ;;  %v3190_v38 = vmin.f32 %v3047_v15, 0.0 }
 0x2b3   :  { %v3235_v7 = vmul.f32 1.442695, %v3164_v16  ;;  %v3239_v45 = vmul.f32 1.442695, %v3166_v2  ;;  %v3006_v34 = vpop.f32.mrb[23].mxu0  ;;  %v3049_v51 = vpop.f32.mrb[23].mxu1 }
 0x2b4   :  { %8616 = vpow2.f32 %v3233_v14  ;;  %v3283_v49 = vmul.f32 1.442695, %v3188_v42  ;;  %v3287_v31 = vmul.f32 1.442695, %v3190_v38  ;;  %v3189_v27 = vmin.f32 %v3006_v34, 0.0 }
 0x2b5   :  { %8618 = vpow2.f32 %v3237_v19  ;;  %v3191_v8 = vmin.f32 %v3049_v51, 0.0  ;;  %vm3140_vm12 = vcmp.gt.f32.partialorder %v3047_v15, 0.0  ;;  %vm3138_vm13 = vcmp.gt.f32.partialorder %v3004_v24, 0.0 }
 0x2b6   :  { %8620 = vpow2.f32 %v3235_v7  ;;  %v3285_v10 = vmul.f32 1.442695, %v3189_v27  ;;  %vm3141_vm14 = vcmp.gt.f32.partialorder %v3049_v51, 0.0  ;;  %vm3139_vm15 = vcmp.gt.f32.partialorder %v3006_v34, 0.0 }
 0x2b7   :  { %8622 = vpow2.f32 %v3239_v45  ;;  %v3289_v39 = vmul.f32 1.442695, %v3191_v8 }
 0x2b8   :  { %8624 = vpow2.f32 %v3283_v49 }
 0x2b9   :  { %8626 = vpow2.f32 %v3287_v31 }
 0x2ba   :  { %8628 = vpow2.f32 %v3285_v10 }
 0x2bb   :  { %8630 = vpow2.f32 %v3289_v39  ;;  %v3590_v39 = vld [vmem:[#allocation4 + $0x4c0] sm:$0xff] }
 0x2be   :  { %v8617_v58 = vpop.eup %8616 }
 0x2bf   :  { %v8619_v60 = vpop.eup %8618  ;;  %v7236_v4 = vadd.f32 -1.0, %v8617_v58 }
 0x2c0   :  { %v8621_v5 = vpop.eup %8620  ;;  %v7238_v61 = vadd.f32 -1.0, %v8619_v60  ;;  %v3594_v60 = vld [vmem:[#allocation4 + $0x4e0] sm:$0xff] }
 0x2c1   :  { %v8623_v13 = vpop.eup %8622  ;;  %v3363_v16 = vsel %vm3113_vm9, %v3000_v43, %v7236_v4  ;;  %v7237_v2 = vadd.f32 -1.0, %v8621_v5 }
 0x2c2   :  { %v8625_v14 = vpop.eup %8624  ;;  %v3423_v19 = vmax.f32 %v3413_v44, %v3363_v16  ;;  %v3365_v42 = vsel %vm3115_vm8, %v3043_v29, %v7238_v61  ;;  %v7239_v7 = vadd.f32 -1.0, %v8623_v13  ;;  %v7419_v13 = vcombine.high %v3590_v39, %v3594_v60 }
 0x2c3   :  { %v8627_v45 = vpop.eup %8626  ;;  %v3425_v38 = vmax.f32 %v3415_v62, %v3365_v42  ;;  %v3364_v49 = vsel %vm3114_vm11, %v3002_v37, %v7237_v2  ;;  %v7261_v31 = vadd.f32 -1.0, %v8625_v14  ;;  %v7421_v16 = vcombine.high %v3591_v12, %v3595_v46  ;;  %v3598_v2 = vld [vmem:[#allocation4 + $0x500] sm:$0xff]  ;;  %v3603_v42 = vld [vmem:[#allocation4 + $0x528] sm:$0xff] }
 0x2c4   :  { %v8629_v27 = vpop.eup %8628  ;;  %v3424_v43 = vmax.f32 %v3414_v52, %v3364_v49  ;;  %v3366_v8 = vsel %vm3116_vm10, %v3045_v9, %v7239_v7  ;;  %v7263_v18 = vadd.f32 -1.0, %v8627_v45  ;;  %v3579_v9 = vld [vmem:[#allocation4 + $0x468] sm:$0xff]  ;;  %v3602_v14 = vld [vmem:[#allocation4 + $0x520] sm:$0xff]  ;;  %v7420_v49 = vcombine.low %v3591_v12, %v3595_v46 }
 0x2c5   :  { %v8631_v17 = vpop.eup %8630  ;;  %v3426_v44 = vmax.f32 %v3416_v28, %v3366_v8  ;;  %v3388_v29 = vsel %vm3138_vm13, %v3004_v24, %v7261_v31  ;;  %v7262_v10 = vadd.f32 -1.0, %v8629_v27  ;;  %v3574_v28 = vld [vmem:[#allocation4 + $0x440] sm:$0xff]  ;;  %v3583_v24 = vld [vmem:[#allocation4 + $0x488] sm:$0xff]  ;;  %v7427_v27 = vcombine.high %v3598_v2, %v3602_v14 }
 0x2c6   :  { %v3428_v35 = vmax.f32 %v3418_v59, %v3388_v29  ;;  %v3390_v36 = vsel %vm3140_vm12, %v3047_v15, %v7263_v18  ;;  %v7264_v62 = vadd.f32 -1.0, %v8631_v17  ;;  %v3575_v59 = vld [vmem:[#allocation4 + $0x448] sm:$0xff]  ;;  %v7403_v50 = vcombine.high %v3574_v28, %v3578_v54  ;;  %v3606_v8 = vld [vmem:[#allocation4 + $0x540] sm:$0xff] }
 0x2c7   :  { %v3430_v55 = vmax.f32 %v3420_v21, %v3390_v36  ;;  %v3389_v30 = vsel %vm3139_vm15, %v3006_v34, %v7262_v10  ;;  %v3582_v21 = vld [vmem:[#allocation4 + $0x480] sm:$0xff]  ;;  %v7405_v22 = vcombine.high %v3575_v59, %v3579_v9  ;;  %v3587_v15 = vld [vmem:[#allocation4 + $0x4a8] sm:$0xff]  ;;  %v7402_v26 = vcombine.low %v3574_v28, %v3578_v54 }
 0x2c8   :  { %v9359_v52 = vpack.c.bf16 %v3428_v35, %v3423_v19  ;;  %v3429_v20 = vmax.f32 %v3419_v40, %v3389_v30  ;;  %v3391_v53 = vsel %vm3141_vm14, %v3049_v51, %v7264_v62  ;;  %v3586_v40 = vld [vmem:[#allocation4 + $0x4a0] sm:$0xff]  ;;  %v7404_v1 = vcombine.low %v3575_v59, %v3579_v9  ;;  %v3599_v19 = vld [vmem:[#allocation4 + $0x508] sm:$0xff] }
 0x2c9   :  { %v9364_v37 = vpack.c.bf16 %v3430_v55, %v3425_v38  ;;  %v3431_v32 = vmax.f32 %v3421_v0, %v3391_v53  ;;  %v7411_v34 = vcombine.high %v3582_v21, %v3586_v40  ;;  %v7413_v51 = vcombine.high %v3583_v24, %v3587_v15  ;;  %v3610_v18 = vld [vmem:[#allocation4 + $0x560] sm:$0xff]  ;;  %v3607_v17 = vld [vmem:[#allocation4 + $0x548] sm:$0xff] }
 0x2ca   :  { %v9369_v3 = vpack.c.bf16 %v3429_v20, %v3424_v43  ;;  %v7410_v48 = vcombine.low %v3582_v21, %v3586_v40  ;;  %v7418_v38 = vcombine.low %v3590_v39, %v3594_v60  ;;  %v7429_v43 = vcombine.high %v3599_v19, %v3603_v42  ;;  %v3614_v62 = vld [vmem:[#allocation4 + $0x580] sm:$0xff]  ;;  %v3615_v30 = vld [vmem:[#allocation4 + $0x588] sm:$0xff] }
 0x2cb   :  { %v9371_v33 = vpack.c.bf16 %v3431_v32, %v3426_v44  ;;  %v3611_v44 = vld [vmem:[#allocation4 + $0x568] sm:$0xff]  ;;  %v7426_v29 = vcombine.low %v3598_v2, %v3602_v14  ;;  %v7428_v10 = vcombine.low %v3599_v19, %v3603_v42  ;;  %v7435_v35 = vcombine.high %v3606_v8, %v3610_v18  ;;  %v3618_v55 = vld [vmem:[#allocation4 + $0x5a0] sm:$0xff] }
 0x2cc   :  { %5390 = vmatprep.mubr.bf16.mxu1 %v9369_v3  ;;  %5519 = vmatprep.mubr.bf16.mxu0 %v9369_v3  ;;  %v7437_v36 = vcombine.high %v3607_v17, %v3611_v44  ;;  %v3619_v20 = vld [vmem:[#allocation4 + $0x5a8] sm:$0xff]  ;;  %v7434_v53 = vcombine.low %v3606_v8, %v3610_v18  ;;  %v7436_v28 = vcombine.low %v3607_v17, %v3611_v44  ;;  %v3622_v59 = vld [vmem:[#allocation4 + $0x5c0] sm:$0xff] }
 0x2cd   :  { %5391 = vmatmul.mubr.bf16.vlgmr.msra.gmra.mrb[24].mxu1 %v9359_v52  ;;  %5520 = vmatmul.mubr.bf16.vlgmr.msra.gmra.mrb[28].mxu0 %v9359_v52  ;;  %v7443_v32 = vcombine.high %v3614_v62, %v3618_v55  ;;  %v7445_v54 = vcombine.high %v3615_v30, %v3619_v20  ;;  %v3626_v9 = vld [vmem:[#allocation4 + $0x5e0] sm:$0xff]  ;;  %v3623_v21 = vld [vmem:[#allocation4 + $0x5c8] sm:$0xff]  ;;  %v7474_v18 = vcombine.low %v3646_v25, %v3650_v23 }
 0x2ce   :  { %5402 = vmatpush1.bf16.msra.mxu1 %v7394_v47  ;;  %5531 = vmatpush1.bf16.msra.mxu0 %v7396_v57  ;;  %v7412_v57 = vcombine.low %v3583_v24, %v3587_v15  ;;  %v7442_v24 = vcombine.low %v3614_v62, %v3618_v55  ;;  %v7444_v15 = vcombine.low %v3615_v30, %v3619_v20  ;;  %v3631_v60 = vld [vmem:[#allocation4 + $0x608] sm:$0xff] }
 0x2cf   :  { %5433 = vmatprep.mubr.bf16.mxu1 %v9371_v33  ;;  %5562 = vmatprep.mubr.bf16.mxu0 %v9371_v33  ;;  %v7716_v0 = vpop.f32.mrb[24].mxu0  ;;  %v3635_v12 = vld [vmem:[#allocation4 + $0x628] sm:$0xff] }
 0x2d0   :  { %5403 = vmatprep.subr.bf16.mxu1 %v7403_v50  ;;  %5532 = vmatprep.subr.bf16.mxu0 %v7405_v22  ;;  %v7717_v58 = vpop.f32.mrb[25].mxu0  ;;  %v3627_v50 = vld [vmem:[#allocation4 + $0x5e8] sm:$0xff] }
 0x2d1   :  { %v9385_v47 = vadd.f32 %v7717_v58, %v7716_v0  ;;  %v7719_v56 = vpop.f32.mrb[26].mxu0  ;;  %v7453_v0 = vcombine.high %v3623_v21, %v3627_v50  ;;  %v3634_v58 = vld [vmem:[#allocation4 + $0x620] sm:$0xff]  ;;  %v3639_v2 = vld [vmem:[#allocation4 + $0x648] sm:$0xff] }
 0x2d2   :  { %5404 = vmatpush1.bf16.msra.mxu1 %v7402_v26  ;;  %5533 = vmatpush1.bf16.msra.mxu0 %v7404_v1  ;;  %v7720_v4 = vpop.f32.mrb[27].mxu0  ;;  %v7451_v1 = vcombine.high %v3622_v59, %v3626_v9  ;;  %v3643_v14 = vld [vmem:[#allocation4 + $0x668] sm:$0xff] }
 0x2d3   :  { %v3167_v5 = vmin.f32 %v9385_v47, 0.0  ;;  %5405 = vmatprep.subr.bf16.mxu1 %v7411_v34  ;;  %5534 = vmatprep.subr.bf16.mxu0 %v7413_v51  ;;  %v9388_v61 = vadd.f32 %v7720_v4, %v7719_v56  ;;  %vm3117_vm0 = vcmp.gt.f32.partialorder %v9385_v47, 0.0  ;;  %v3630_v34 = vld [vmem:[#allocation4 + $0x600] sm:$0xff]  ;;  %v7469_v19 = vcombine.high %v3639_v2, %v3643_v14  ;;  %v3651_v42 = vld [vmem:[#allocation4 + $0x6a8] sm:$0xff] }
 0x2d4   :  { %v7458_v11 = vcombine.low %v3630_v34, %v3634_v58  ;;  %v3659_v8 = vld [vmem:[#allocation4 + $0x6e8] sm:$0xff] }
 0x2d5   :  { %v3241_v7 = vmul.f32 1.442695, %v3167_v5  ;;  %v3192_v45 = vmin.f32 %v9388_v61, 0.0  ;;  %vm3142_vm1 = vcmp.gt.f32.partialorder %v9388_v61, 0.0  ;;  %v7461_v5 = vcombine.high %v3631_v60, %v3635_v12  ;;  %v3667_v62 = vld [vmem:[#allocation4 + $0x728] sm:$0xff] }
 0x2d6   :  { %5406 = vmatpush1.bf16.msra.mxu1 %v7410_v48  ;;  %5535 = vmatpush1.bf16.msra.mxu0 %v7412_v57  ;;  %v7450_v48 = vcombine.low %v3622_v59, %v3626_v9  ;;  %v7452_v57 = vcombine.low %v3623_v21, %v3627_v50  ;;  %v3675_v59 = vld [vmem:[#allocation4 + $0x768] sm:$0xff] }
 0x2d7   :  { %8632 = vpow2.f32 %v3241_v7  ;;  %v3291_v31 = vmul.f32 1.442695, %v3192_v45  ;;  %5407 = vmatprep.subr.bf16.mxu1 %v7419_v13  ;;  %5536 = vmatprep.subr.bf16.mxu0 %v7421_v16  ;;  %v3638_v13 = vld [vmem:[#allocation4 + $0x640] sm:$0xff]  ;;  %v7468_v45 = vcombine.low %v3639_v2, %v3643_v14 }
 0x2d8   :  { %v3642_v16 = vld [vmem:[#allocation4 + $0x660] sm:$0xff] }
 0x2d9   :  { %8634 = vpow2.f32 %v3291_v31  ;;  %v7466_v7 = vcombine.low %v3638_v13, %v3642_v16  ;;  %v3654_v31 = vld [vmem:[#allocation4 + $0x6c0] sm:$0xff] }
 0x2da   :  { %5408 = vmatpush1.bf16.msra.mxu1 %v7418_v38  ;;  %5537 = vmatpush1.bf16.msra.mxu0 %v7420_v49  ;;  %v7475_v38 = vcombine.high %v3646_v25, %v3650_v23  ;;  %v3707_v25 = vld [vmem:[#allocation4 + $0x868] sm:$0xff] }
 0x2db   :  { %5409 = vmatprep.subr.bf16.mxu1 %v7427_v27  ;;  %5538 = vmatprep.subr.bf16.mxu0 %v7429_v43  ;;  %v3658_v27 = vld [vmem:[#allocation4 + $0x6e0] sm:$0xff]  ;;  %v3655_v43 = vld [vmem:[#allocation4 + $0x6c8] sm:$0xff] }
 0x2dc   :  { %v7483_v44 = vcombine.high %v3654_v31, %v3658_v27  ;;  %v7482_v55 = vcombine.low %v3654_v31, %v3658_v27  ;;  %v7484_v30 = vcombine.low %v3655_v43, %v3659_v8  ;;  %v3715_v31 = vld [vmem:[#allocation4 + $0x8a8] sm:$0xff] }
 0x2de   :  { %5410 = vmatpush1.bf16.msra.mxu1 %v7426_v29  ;;  %5539 = vmatpush1.bf16.msra.mxu0 %v7428_v10  ;;  %v7485_v29 = vcombine.high %v3655_v43, %v3659_v8  ;;  %v3662_v10 = vld [vmem:[#allocation4 + $0x700] sm:$0xff] }
 0x2df   :  { %5411 = vmatprep.subr.bf16.mxu1 %v7435_v35  ;;  %5540 = vmatprep.subr.bf16.mxu0 %v7437_v36  ;;  %v3666_v35 = vld [vmem:[#allocation4 + $0x720] sm:$0xff]  ;;  %v3663_v36 = vld [vmem:[#allocation4 + $0x708] sm:$0xff] }
 0x2e0   :  { %v7491_v20 = vcombine.high %v3662_v10, %v3666_v35  ;;  %v7490_v9 = vcombine.low %v3662_v10, %v3666_v35  ;;  %v7492_v21 = vcombine.low %v3663_v36, %v3667_v62  ;;  %v3723_v10 = vld [vmem:[#allocation4 + $0x8e8] sm:$0xff]  ;;  %v8829_v35 = vmov 0  }
 0x2e1   :  { %v8633_v22 = vpop.eup %8632 }
 0x2e2   :  { %v7240_v40 = vadd.f32 -1.0, %v8633_v22  ;;  %5412 = vmatpush1.bf16.msra.mxu1 %v7434_v53  ;;  %5541 = vmatpush1.bf16.msra.mxu0 %v7436_v28  ;;  %v7493_v53 = vcombine.high %v3663_v36, %v3667_v62  ;;  %v3670_v28 = vld [vmem:[#allocation4 + $0x740] sm:$0xff] }
 0x2e3   :  { %v8635_v26 = vpop.eup %8634  ;;  %5413 = vmatprep.subr.bf16.mxu1 %v7443_v32  ;;  %5542 = vmatprep.subr.bf16.mxu0 %v7445_v54  ;;  %v3674_v32 = vld [vmem:[#allocation4 + $0x760] sm:$0xff]  ;;  %v3671_v54 = vld [vmem:[#allocation4 + $0x748] sm:$0xff] }
 0x2e4   :  { %v3367_v51 = vsel %vm3117_vm0, %v9385_v47, %v7240_v40  ;;  %v7265_v39 = vadd.f32 -1.0, %v8635_v26  ;;  %v7459_v47 = vcombine.high %v3630_v34, %v3634_v58  ;;  %v7499_v50 = vcombine.high %v3670_v28, %v3674_v32  ;;  %v3678_v40 = vld [vmem:[#allocation4 + $0x780] sm:$0xff]  ;;  %v3683_v26 = vld [vmem:[#allocation4 + $0x7a8] sm:$0xff] }
 0x2e5   :  { %v3427_v46 = vmax.f32 %v3417_v63, %v3367_v51  ;;  %v7460_v63 = vcombine.low %v3631_v60, %v3635_v12  ;;  %v7501_v22 = vcombine.high %v3671_v54, %v3675_v59  ;;  %v3690_v58 = vld [vmem:[#allocation4 + $0x7e0] sm:$0xff]  ;;  %v3687_v60 = vld [vmem:[#allocation4 + $0x7c8] sm:$0xff] }
 0x2e6   :  { %v3392_v56 = vsel %vm3142_vm1, %v9388_v61, %v7265_v39  ;;  %5414 = vmatpush1.bf16.msra.mxu1 %v7442_v24  ;;  %5543 = vmatpush1.bf16.msra.mxu0 %v7444_v15  ;;  %v7467_v61 = vcombine.high %v3638_v13, %v3642_v16  ;;  %v3682_v24 = vld [vmem:[#allocation4 + $0x7a0] sm:$0xff]  ;;  %v3679_v15 = vld [vmem:[#allocation4 + $0x788] sm:$0xff] }
 0x2e7   :  { %v3432_v4 = vmax.f32 %v3422_v6, %v3392_v56  ;;  %5415 = vmatprep.subr.bf16.mxu1 %v7451_v1  ;;  %5544 = vmatprep.subr.bf16.mxu0 %v7453_v0  ;;  %v3647_v6 = vld [vmem:[#allocation4 + $0x688] sm:$0xff]  ;;  %v7498_v1 = vcombine.low %v3670_v28, %v3674_v32  ;;  %v7500_v0 = vcombine.low %v3671_v54, %v3675_v59  ;;  %v3686_v39 = vld [vmem:[#allocation4 + $0x7c0] sm:$0xff] }
 0x2e8   :  { %v7477_v49 = vcombine.high %v3647_v6, %v3651_v42  ;;  %v7476_v17 = vcombine.low %v3647_v6, %v3651_v42  ;;  %v7507_v34 = vcombine.high %v3678_v40, %v3682_v24  ;;  %v7509_v51 = vcombine.high %v3679_v15, %v3683_v26  ;;  %v3691_v12 = vld [vmem:[#allocation4 + $0x7e8] sm:$0xff] }
 0x2e9   :  { %v9401_v41 = vpack.c.bf16 %v3432_v4, %v3427_v46  ;;  %v7506_v46 = vcombine.low %v3678_v40, %v3682_v24  ;;  %v7508_v56 = vcombine.low %v3679_v15, %v3683_v26  ;;  %v3694_v4 = vld [vmem:[#allocation4 + $0x800] sm:$0xff]  ;;  %v3699_v13 = vld [vmem:[#allocation4 + $0x828] sm:$0xff]  ;;  %v7514_v16 = vcombine.low %v3686_v39, %v3690_v58 }
 0x2ea   :  { %5416 = vmatpush1.bf16.msra.mxu1 %v7450_v48  ;;  %5545 = vmatpush1.bf16.msra.mxu0 %v7452_v57  ;;  %v7515_v48 = vcombine.high %v3686_v39, %v3690_v58  ;;  %v7517_v57 = vcombine.high %v3687_v60, %v3691_v12  ;;  %v7516_v2 = vcombine.low %v3687_v60, %v3691_v12  ;;  %v3727_v28 = vld [vmem:[#allocation4 + $0x908] sm:$0xff] }
 0x2eb   :  { %5417 = vmatprep.subr.bf16.mxu1 %v7459_v47  ;;  %5546 = vmatprep.subr.bf16.mxu0 %v7461_v5  ;;  %v3698_v47 = vld [vmem:[#allocation4 + $0x820] sm:$0xff]  ;;  %v3695_v5 = vld [vmem:[#allocation4 + $0x808] sm:$0xff] }
 0x2ec   :  { %v7523_v14 = vcombine.high %v3694_v4, %v3698_v47  ;;  %v7522_v23 = vcombine.low %v3694_v4, %v3698_v47  ;;  %v7524_v6 = vcombine.low %v3695_v5, %v3699_v13  ;;  %v3731_v32 = vld [vmem:[#allocation4 + $0x928] sm:$0xff] }
 0x2ed   :  { %v3735_v40 = vld [vmem:[#allocation4 + $0x948] sm:$0xff]  ;;  %v7556_v26 = vcombine.low %v3727_v28, %v3731_v32 }
 0x2ee   :  { %5418 = vmatpush1.bf16.msra.mxu1 %v7458_v11  ;;  %5547 = vmatpush1.bf16.msra.mxu0 %v7460_v63  ;;  %v7525_v11 = vcombine.high %v3695_v5, %v3699_v13  ;;  %v3702_v63 = vld [vmem:[#allocation4 + $0x840] sm:$0xff]  ;;  %v3739_v24 = vld [vmem:[#allocation4 + $0x968] sm:$0xff] }
 0x2ef   :  { %5419 = vmatprep.subr.bf16.mxu1 %v7467_v61  ;;  %5548 = vmatprep.subr.bf16.mxu0 %v7469_v19  ;;  %v3706_v61 = vld [vmem:[#allocation4 + $0x860] sm:$0xff]  ;;  %v3703_v19 = vld [vmem:[#allocation4 + $0x848] sm:$0xff]  ;;  %v7564_v12 = vcombine.low %v3735_v40, %v3739_v24 }
 0x2f0   :  { %v7531_v42 = vcombine.high %v3702_v63, %v3706_v61  ;;  %v7530_v27 = vcombine.low %v3702_v63, %v3706_v61  ;;  %v7532_v43 = vcombine.low %v3703_v19, %v3707_v25  ;;  %v3743_v39 = vld [vmem:[#allocation4 + $0x988] sm:$0xff]  ;;  %v3441_v63 = vld [vmem:[#allocation4 + $0x18] sm:$0xff] }
 0x2f1   :  { %v3747_v58 = vld [vmem:[#allocation4 + $0x9a8] sm:$0xff]  ;;  %v3445_v61 = vld [vmem:[#allocation4 + $0x38] sm:$0xff] }
 0x2f2   :  { %5420 = vmatpush1.bf16.msra.mxu1 %v7466_v7  ;;  %5549 = vmatpush1.bf16.msra.mxu0 %v7468_v45  ;;  %v7533_v7 = vcombine.high %v3703_v19, %v3707_v25  ;;  %v3710_v45 = vld [vmem:[#allocation4 + $0x880] sm:$0xff]  ;;  %v3751_v4 = vld [vmem:[#allocation4 + $0x9c8] sm:$0xff]  ;;  %v7572_v13 = vcombine.low %v3743_v39, %v3747_v58 }
 0x2f3   :  { %5421 = vmatprep.subr.bf16.mxu1 %v7475_v38  ;;  %5550 = vmatprep.subr.bf16.mxu0 %v7477_v49  ;;  %v3714_v38 = vld [vmem:[#allocation4 + $0x8a0] sm:$0xff]  ;;  %v3711_v49 = vld [vmem:[#allocation4 + $0x888] sm:$0xff] }
 0x2f4   :  { %v7539_v8 = vcombine.high %v3710_v45, %v3714_v38  ;;  %v7538_v36 = vcombine.low %v3710_v45, %v3714_v38  ;;  %v7540_v62 = vcombine.low %v3711_v49, %v3715_v31  ;;  %v3755_v47 = vld [vmem:[#allocation4 + $0x9e8] sm:$0xff]  ;;  %v3449_v45 = vld [vmem:[#allocation4 + $0x58] sm:$0xff] }
 0x2f5   :  { %v7580_v25 = vcombine.low %v3751_v4, %v3755_v47  ;;  %v3453_v38 = vld [vmem:[#allocation4 + $0x78] sm:$0xff] }
 0x2f6   :  { %5422 = vmatpush1.bf16.msra.mxu1 %v7474_v18  ;;  %5551 = vmatpush1.bf16.msra.mxu0 %v7476_v17  ;;  %v7541_v18 = vcombine.high %v3711_v49, %v3715_v31  ;;  %v3718_v17 = vld [vmem:[#allocation4 + $0x8c0] sm:$0xff]  ;;  %v7272_v31 = vcombine.low %v3441_v63, %v3445_v61 }
 0x2f7   :  { %5423 = vmatprep.subr.bf16.mxu1 %v7483_v44  ;;  %5552 = vmatprep.subr.bf16.mxu0 %v7485_v29  ;;  %v3722_v44 = vld [vmem:[#allocation4 + $0x8e0] sm:$0xff]  ;;  %v3719_v29 = vld [vmem:[#allocation4 + $0x8c8] sm:$0xff] }
 0x2f8   :  { %v7546_v54 = vcombine.low %v3718_v17, %v3722_v44  ;;  %v7548_v59 = vcombine.low %v3719_v29, %v3723_v10 }
 0x2fa   :  { %5424 = vmatpush1.bf16.msra.mxu1 %v7482_v55  ;;  %5553 = vmatpush1.bf16.msra.mxu0 %v7484_v30  ;;  %v7547_v55 = vcombine.high %v3718_v17, %v3722_v44  ;;  %v7549_v30 = vcombine.high %v3719_v29, %v3723_v10  ;;  %v3457_v17 = vld [vmem:[#allocation4 + $0x98] sm:$0xff]  ;;  %v7280_v10 = vcombine.low %v3449_v45, %v3453_v38 }
 0x2fb   :  { %5425 = vmatprep.subr.bf16.mxu1 %v7491_v20  ;;  %5554 = vmatprep.subr.bf16.mxu0 %v7493_v53  ;;  %v3726_v20 = vld [vmem:[#allocation4 + $0x900] sm:$0xff]  ;;  %v3461_v44 = vld [vmem:[#allocation4 + $0xb8] sm:$0xff] }
 0x2fc   :  { %v3730_v53 = vld [vmem:[#allocation4 + $0x920] sm:$0xff] }
 0x2fd   :  { %v7554_v15 = vcombine.low %v3726_v20, %v3730_v53 }
 0x2fe   :  { %5426 = vmatpush1.bf16.msra.mxu1 %v7490_v9  ;;  %5555 = vmatpush1.bf16.msra.mxu0 %v7492_v21  ;;  %v7555_v9 = vcombine.high %v3726_v20, %v3730_v53  ;;  %v7557_v21 = vcombine.high %v3727_v28, %v3731_v32  ;;  %v3465_v20 = vld [vmem:[#allocation4 + $0xd8] sm:$0xff]  ;;  %v7288_v32 = vcombine.low %v3457_v17, %v3461_v44 }
 0x2ff   :  { %5427 = vmatprep.subr.bf16.mxu1 %v7499_v50  ;;  %5556 = vmatprep.subr.bf16.mxu0 %v7501_v22  ;;  %v3734_v50 = vld [vmem:[#allocation4 + $0x940] sm:$0xff]  ;;  %v3469_v53 = vld [vmem:[#allocation4 + $0xf8] sm:$0xff] }
 0x300   :  { %v3738_v22 = vld [vmem:[#allocation4 + $0x960] sm:$0xff] }
 0x301   :  { %v7562_v60 = vcombine.low %v3734_v50, %v3738_v22 }
 0x302   :  { %5428 = vmatpush1.bf16.msra.mxu1 %v7498_v1  ;;  %5557 = vmatpush1.bf16.msra.mxu0 %v7500_v0  ;;  %v7563_v1 = vcombine.high %v3734_v50, %v3738_v22  ;;  %v7565_v0 = vcombine.high %v3735_v40, %v3739_v24  ;;  %v3477_v50 = vld [vmem:[#allocation4 + $0x138] sm:$0xff]  ;;  %v7296_v40 = vcombine.low %v3465_v20, %v3469_v53 }
 0x303   :  { %5429 = vmatprep.subr.bf16.mxu1 %v7507_v34  ;;  %5558 = vmatprep.subr.bf16.mxu0 %v7509_v51  ;;  %v3742_v34 = vld [vmem:[#allocation4 + $0x980] sm:$0xff] }
 0x304   :  { %v3746_v51 = vld [vmem:[#allocation4 + $0x9a0] sm:$0xff] }
 0x305   :  { %v7570_v5 = vcombine.low %v3742_v34, %v3746_v51 }
 0x306   :  { %5430 = vmatpush1.bf16.msra.mxu1 %v7506_v46  ;;  %5559 = vmatpush1.bf16.msra.mxu0 %v7508_v56  ;;  %v7571_v46 = vcombine.high %v3742_v34, %v3746_v51  ;;  %v7573_v56 = vcombine.high %v3743_v39, %v3747_v58  ;;  %v3485_v34 = vld [vmem:[#allocation4 + $0x178] sm:$0xff] }
 0x307   :  { %5431 = vmatprep.subr.bf16.mxu1 %v7515_v48  ;;  %5560 = vmatprep.subr.bf16.mxu0 %v7517_v57  ;;  %v3750_v48 = vld [vmem:[#allocation4 + $0x9c0] sm:$0xff] }
 0x308   :  { %v3754_v57 = vld [vmem:[#allocation4 + $0x9e0] sm:$0xff] }
 0x309   :  { %v7578_v19 = vcombine.low %v3750_v48, %v3754_v57 }
 0x30a   :  { %5432 = vmatpush1.bf16.msra.mxu1 %v7514_v16  ;;  %5561 = vmatpush1.bf16.msra.mxu0 %v7516_v2  ;;  %v7579_v16 = vcombine.high %v3750_v48, %v3754_v57  ;;  %v7581_v2 = vcombine.high %v3751_v4, %v3755_v47  ;;  %v3493_v48 = vld [vmem:[#allocation4 + $0x1b8] sm:$0xff] }
 0x30b   :  { %5444 = vmatprep.subr.bf16.mxu1 %v7523_v14  ;;  %5573 = vmatprep.subr.bf16.mxu0 %v7525_v11  ;;  %v3440_v14 = vld [vmem:[#allocation4 + $0x10] sm:$0xff] }
 0x30c   :  { %v3444_v11 = vld [vmem:[#allocation4 + $0x30] sm:$0xff] }
 0x30d   :  { %5434 = vmatmul.mubr.bf16.vlgmr.msra.gmra.mrb[24].mxu1 %v9364_v37  ;;  %5563 = vmatmul.mubr.bf16.vlgmr.msra.gmra.mrb[28].mxu0 %v9364_v37  ;;  %v7270_v49 = vcombine.low %v3440_v14, %v3444_v11 }
 0x30e   :  { %5445 = vmatpush1.bf16.msra.mxu1 %v7522_v23  ;;  %5574 = vmatpush1.bf16.msra.mxu0 %v7524_v6  ;;  %v7271_v23 = vcombine.high %v3440_v14, %v3444_v11  ;;  %v7273_v6 = vcombine.high %v3441_v63, %v3445_v61  ;;  %v3501_v14 = vld [vmem:[#allocation4 + $0x1f8] sm:$0xff] }
 0x30f   :  { %5446 = vmatprep.subr.bf16.mxu1 %v7531_v42  ;;  %5575 = vmatprep.subr.bf16.mxu0 %v7533_v7  ;;  %v3448_v42 = vld [vmem:[#allocation4 + $0x50] sm:$0xff] }
 0x310   :  { %5476 = vmatprep.mubr.bf16.mxu1 %v8829_v35  ;;  %5605 = vmatprep.mubr.bf16.mxu0 %v8829_v35  ;;  %v3452_v7 = vld [vmem:[#allocation4 + $0x70] sm:$0xff] }
 0x311   :  { %v7278_v29 = vcombine.low %v3448_v42, %v3452_v7 }
 0x312   :  { %5447 = vmatpush1.bf16.msra.mxu1 %v7530_v27  ;;  %5576 = vmatpush1.bf16.msra.mxu0 %v7532_v43  ;;  %v7279_v27 = vcombine.high %v3448_v42, %v3452_v7  ;;  %v7281_v43 = vcombine.high %v3449_v45, %v3453_v38  ;;  %v3509_v42 = vld [vmem:[#allocation4 + $0x238] sm:$0xff] }
 0x313   :  { %5448 = vmatprep.subr.bf16.mxu1 %v7539_v8  ;;  %5577 = vmatprep.subr.bf16.mxu0 %v7541_v18  ;;  %v3456_v8 = vld [vmem:[#allocation4 + $0x90] sm:$0xff] }
 0x314   :  { %v3460_v18 = vld [vmem:[#allocation4 + $0xb0] sm:$0xff] }
 0x315   :  { %v7286_v28 = vcombine.low %v3456_v8, %v3460_v18 }
 0x316   :  { %5449 = vmatpush1.bf16.msra.mxu1 %v7538_v36  ;;  %5578 = vmatpush1.bf16.msra.mxu0 %v7540_v62  ;;  %v7287_v36 = vcombine.high %v3456_v8, %v3460_v18  ;;  %v7289_v62 = vcombine.high %v3457_v17, %v3461_v44  ;;  %v3517_v8 = vld [vmem:[#allocation4 + $0x278] sm:$0xff] }
 0x317   :  { %5450 = vmatprep.subr.bf16.mxu1 %v7547_v55  ;;  %5579 = vmatprep.subr.bf16.mxu0 %v7549_v30  ;;  %v3464_v55 = vld [vmem:[#allocation4 + $0xd0] sm:$0xff] }
 0x318   :  { %v3468_v30 = vld [vmem:[#allocation4 + $0xf0] sm:$0xff] }
 0x319   :  { %v7294_v22 = vcombine.low %v3464_v55, %v3468_v30 }
 0x31a   :  { %5451 = vmatpush1.bf16.msra.mxu1 %v7546_v54  ;;  %5580 = vmatpush1.bf16.msra.mxu0 %v7548_v59  ;;  %v7295_v54 = vcombine.high %v3464_v55, %v3468_v30  ;;  %v7297_v59 = vcombine.high %v3465_v20, %v3469_v53  ;;  %v3525_v55 = vld [vmem:[#allocation4 + $0x2b8] sm:$0xff] }
 0x31b   :  { %5452 = vmatprep.subr.bf16.mxu1 %v7555_v9  ;;  %5581 = vmatprep.subr.bf16.mxu0 %v7557_v21  ;;  %v3472_v9 = vld [vmem:[#allocation4 + $0x110] sm:$0xff] }
 0x31c   :  { %v3476_v21 = vld [vmem:[#allocation4 + $0x130] sm:$0xff] }
 0x31d   :  { %v7303_v24 = vcombine.high %v3472_v9, %v3476_v21  ;;  %v7302_v51 = vcombine.low %v3472_v9, %v3476_v21  ;;  %v3533_v9 = vld [vmem:[#allocation4 + $0x2f8] sm:$0xff] }
 0x31e   :  { %5453 = vmatpush1.bf16.msra.mxu1 %v7554_v15  ;;  %5582 = vmatpush1.bf16.msra.mxu0 %v7556_v26  ;;  %v3480_v26 = vld [vmem:[#allocation4 + $0x150] sm:$0xff] }
 0x31f   :  { %5454 = vmatprep.subr.bf16.mxu1 %v7563_v1  ;;  %5583 = vmatprep.subr.bf16.mxu0 %v7565_v0  ;;  %v3484_v1 = vld [vmem:[#allocation4 + $0x170] sm:$0xff]  ;;  %v3481_v0 = vld [vmem:[#allocation4 + $0x158] sm:$0xff] }
 0x320   :  { %v7311_v58 = vcombine.high %v3480_v26, %v3484_v1  ;;  %v7310_v57 = vcombine.low %v3480_v26, %v3484_v1  ;;  %v7312_v4 = vcombine.low %v3481_v0, %v3485_v34  ;;  %v3541_v26 = vld [vmem:[#allocation4 + $0x338] sm:$0xff] }
 0x322   :  { %5455 = vmatpush1.bf16.msra.mxu1 %v7562_v60  ;;  %5584 = vmatpush1.bf16.msra.mxu0 %v7564_v12  ;;  %v7313_v60 = vcombine.high %v3481_v0, %v3485_v34  ;;  %v3488_v12 = vld [vmem:[#allocation4 + $0x190] sm:$0xff] }
 0x323   :  { %5456 = vmatprep.subr.bf16.mxu1 %v7571_v46  ;;  %5585 = vmatprep.subr.bf16.mxu0 %v7573_v56  ;;  %v3492_v46 = vld [vmem:[#allocation4 + $0x1b0] sm:$0xff]  ;;  %v3489_v56 = vld [vmem:[#allocation4 + $0x198] sm:$0xff] }
 0x324   :  { %v7319_v47 = vcombine.high %v3488_v12, %v3492_v46  ;;  %v7318_v11 = vcombine.low %v3488_v12, %v3492_v46  ;;  %v7320_v63 = vcombine.low %v3489_v56, %v3493_v48  ;;  %v3549_v12 = vld [vmem:[#allocation4 + $0x378] sm:$0xff] }
 0x326   :  { %5457 = vmatpush1.bf16.msra.mxu1 %v7570_v5  ;;  %5586 = vmatpush1.bf16.msra.mxu0 %v7572_v13  ;;  %v7321_v5 = vcombine.high %v3489_v56, %v3493_v48  ;;  %v3496_v13 = vld [vmem:[#allocation4 + $0x1d0] sm:$0xff] }
 0x327   :  { %5458 = vmatprep.subr.bf16.mxu1 %v7579_v16  ;;  %5587 = vmatprep.subr.bf16.mxu0 %v7581_v2  ;;  %v3500_v16 = vld [vmem:[#allocation4 + $0x1f0] sm:$0xff]  ;;  %v3497_v2 = vld [vmem:[#allocation4 + $0x1d8] sm:$0xff] }
 0x328   :  { %v7327_v61 = vcombine.high %v3496_v13, %v3500_v16  ;;  %v7326_v7 = vcombine.low %v3496_v13, %v3500_v16  ;;  %v7328_v45 = vcombine.low %v3497_v2, %v3501_v14  ;;  %v3557_v13 = vld [vmem:[#allocation4 + $0x3b8] sm:$0xff] }
 0x32a   :  { %5459 = vmatpush1.bf16.msra.mxu1 %v7578_v19  ;;  %5588 = vmatpush1.bf16.msra.mxu0 %v7580_v25  ;;  %v7329_v19 = vcombine.high %v3497_v2, %v3501_v14  ;;  %v3504_v25 = vld [vmem:[#allocation4 + $0x210] sm:$0xff] }
 0x32b   :  { %5616 = vmatprep.subr.bf16.mxu1 %v7271_v23  ;;  %5745 = vmatprep.subr.bf16.mxu0 %v7273_v6  ;;  %v3508_v23 = vld [vmem:[#allocation4 + $0x230] sm:$0xff]  ;;  %v3505_v6 = vld [vmem:[#allocation4 + $0x218] sm:$0xff] }
 0x32c   :  { %v7335_v38 = vcombine.high %v3504_v25, %v3508_v23  ;;  %v7334_v18 = vcombine.low %v3504_v25, %v3508_v23  ;;  %v7336_v17 = vcombine.low %v3505_v6, %v3509_v42  ;;  %v3565_v25 = vld [vmem:[#allocation4 + $0x3f8] sm:$0xff] }
 0x32d   :  { %5477 = vmatmul.mubr.bf16.vlgmr.msra.gmra.mrb[24].mxu1 %v9401_v41  ;;  %5606 = vmatmul.mubr.bf16.vlgmr.msra.gmra.mrb[28].mxu0 %v9401_v41 }
 0x32e   :  { %5617 = vmatpush1.bf16.msra.mxu1 %v7270_v49  ;;  %5648 = vmatprep.mubr.bf16.mxu1 %v9369_v3  ;;  %v7337_v49 = vcombine.high %v3505_v6, %v3509_v42 }
 0x32f   :  { %5746 = vmatpush1.bf16.msra.mxu0 %v7272_v31  ;;  %5777 = vmatprep.mubr.bf16.mxu0 %v9369_v3  ;;  %v3473_v3 = vld [vmem:[#allocation4 + $0x118] sm:$0xff]  ;;  %v3512_v31 = vld [vmem:[#allocation4 + $0x250] sm:$0xff] }
 0x330   :  { %5618 = vmatprep.subr.bf16.mxu1 %v7279_v27  ;;  %5747 = vmatprep.subr.bf16.mxu0 %v7281_v43  ;;  %v7305_v15 = vcombine.high %v3473_v3, %v3477_v50  ;;  %v7304_v39 = vcombine.low %v3473_v3, %v3477_v50  ;;  %v3516_v27 = vld [vmem:[#allocation4 + $0x270] sm:$0xff]  ;;  %v3513_v43 = vld [vmem:[#allocation4 + $0x258] sm:$0xff] }
 0x331   :  { %v7343_v44 = vcombine.high %v3512_v31, %v3516_v27  ;;  %v7342_v30 = vcombine.low %v3512_v31, %v3516_v27  ;;  %v7344_v20 = vcombine.low %v3513_v43, %v3517_v8  ;;  %v3573_v31 = vld [vmem:[#allocation4 + $0x438] sm:$0xff] }
 0x332   :  { %5619 = vmatpush1.bf16.msra.mxu1 %v7278_v29  ;;  %v7345_v29 = vcombine.high %v3513_v43, %v3517_v8 }
 0x333   :  { %5748 = vmatpush1.bf16.msra.mxu0 %v7280_v10  ;;  %5620 = vmatprep.subr.bf16.mxu1 %v7287_v36  ;;  %v3520_v10 = vld [vmem:[#allocation4 + $0x290] sm:$0xff] }
 0x334   :  { %5749 = vmatprep.subr.bf16.mxu0 %v7289_v62  ;;  %v3524_v36 = vld [vmem:[#allocation4 + $0x2b0] sm:$0xff]  ;;  %v3521_v62 = vld [vmem:[#allocation4 + $0x298] sm:$0xff] }
 0x335   :  { %v7351_v53 = vcombine.high %v3520_v10, %v3524_v36  ;;  %v7350_v21 = vcombine.low %v3520_v10, %v3524_v36  ;;  %v7352_v3 = vcombine.low %v3521_v62, %v3525_v55  ;;  %v3577_v10 = vld [vmem:[#allocation4 + $0x458] sm:$0xff] }
 0x336   :  { %5621 = vmatpush1.bf16.msra.mxu1 %v7286_v28  ;;  %v7353_v28 = vcombine.high %v3521_v62, %v3525_v55  ;;  %v3581_v36 = vld [vmem:[#allocation4 + $0x478] sm:$0xff] }
 0x337   :  { %5750 = vmatpush1.bf16.msra.mxu0 %v7288_v32  ;;  %5622 = vmatprep.subr.bf16.mxu1 %v7295_v54  ;;  %v3528_v32 = vld [vmem:[#allocation4 + $0x2d0] sm:$0xff] }
 0x338   :  { %5751 = vmatprep.subr.bf16.mxu0 %v7297_v59  ;;  %v3532_v54 = vld [vmem:[#allocation4 + $0x2f0] sm:$0xff]  ;;  %v3529_v59 = vld [vmem:[#allocation4 + $0x2d8] sm:$0xff] }
 0x339   :  { %v7359_v50 = vcombine.high %v3528_v32, %v3532_v54  ;;  %v7358_v1 = vcombine.low %v3528_v32, %v3532_v54  ;;  %v7360_v0 = vcombine.low %v3529_v59, %v3533_v9  ;;  %v3589_v32 = vld [vmem:[#allocation4 + $0x4b8] sm:$0xff] }
 0x33a   :  { %5623 = vmatpush1.bf16.msra.mxu1 %v7294_v22  ;;  %v7361_v22 = vcombine.high %v3529_v59, %v3533_v9  ;;  %v7408_v59 = vcombine.low %v3577_v10, %v3581_v36 }
 0x33b   :  { %5752 = vmatpush1.bf16.msra.mxu0 %v7296_v40  ;;  %5624 = vmatprep.subr.bf16.mxu1 %v7303_v24  ;;  %v3536_v40 = vld [vmem:[#allocation4 + $0x310] sm:$0xff] }
 0x33c   :  { %5753 = vmatprep.subr.bf16.mxu0 %v7305_v15  ;;  %v3540_v24 = vld [vmem:[#allocation4 + $0x330] sm:$0xff]  ;;  %v3537_v15 = vld [vmem:[#allocation4 + $0x318] sm:$0xff] }
 0x33d   :  { %v7367_v34 = vcombine.high %v3536_v40, %v3540_v24  ;;  %v7366_v46 = vcombine.low %v3536_v40, %v3540_v24  ;;  %v7368_v56 = vcombine.low %v3537_v15, %v3541_v26  ;;  %v3597_v40 = vld [vmem:[#allocation4 + $0x4f8] sm:$0xff] }
 0x33e   :  { %5625 = vmatpush1.bf16.msra.mxu1 %v7302_v51  ;;  %v7369_v51 = vcombine.high %v3537_v15, %v3541_v26 }
 0x33f   :  { %5754 = vmatpush1.bf16.msra.mxu0 %v7304_v39  ;;  %5626 = vmatprep.subr.bf16.mxu1 %v7311_v58  ;;  %v3544_v39 = vld [vmem:[#allocation4 + $0x350] sm:$0xff] }
 0x340   :  { %5755 = vmatprep.subr.bf16.mxu0 %v7313_v60  ;;  %v3548_v58 = vld [vmem:[#allocation4 + $0x370] sm:$0xff]  ;;  %v3545_v60 = vld [vmem:[#allocation4 + $0x358] sm:$0xff] }
 0x341   :  { %v7375_v48 = vcombine.high %v3544_v39, %v3548_v58  ;;  %v7374_v16 = vcombine.low %v3544_v39, %v3548_v58  ;;  %v7376_v2 = vcombine.low %v3545_v60, %v3549_v12 }
 0x342   :  { %5627 = vmatpush1.bf16.msra.mxu1 %v7310_v57  ;;  %v7377_v57 = vcombine.high %v3545_v60, %v3549_v12  ;;  %v3608_v12 = vld [vmem:[#allocation4 + $0x550] sm:$0xff] }
 0x343   :  { %5756 = vmatpush1.bf16.msra.mxu0 %v7312_v4  ;;  %5628 = vmatprep.subr.bf16.mxu1 %v7319_v47  ;;  %v3552_v4 = vld [vmem:[#allocation4 + $0x390] sm:$0xff] }
 0x344   :  { %5757 = vmatprep.subr.bf16.mxu0 %v7321_v5  ;;  %v3556_v47 = vld [vmem:[#allocation4 + $0x3b0] sm:$0xff]  ;;  %v3553_v5 = vld [vmem:[#allocation4 + $0x398] sm:$0xff] }
 0x345   :  { %v7383_v14 = vcombine.high %v3552_v4, %v3556_v47  ;;  %v7382_v23 = vcombine.low %v3552_v4, %v3556_v47  ;;  %v7384_v6 = vcombine.low %v3553_v5, %v3557_v13 }
 0x346   :  { %5629 = vmatpush1.bf16.msra.mxu1 %v7318_v11  ;;  %v7385_v11 = vcombine.high %v3553_v5, %v3557_v13  ;;  %v3616_v13 = vld [vmem:[#allocation4 + $0x590] sm:$0xff] }
 0x347   :  { %5758 = vmatpush1.bf16.msra.mxu0 %v7320_v63  ;;  %5630 = vmatprep.subr.bf16.mxu1 %v7327_v61  ;;  %v3560_v63 = vld [vmem:[#allocation4 + $0x3d0] sm:$0xff] }
 0x348   :  { %5759 = vmatprep.subr.bf16.mxu0 %v7329_v19  ;;  %v3564_v61 = vld [vmem:[#allocation4 + $0x3f0] sm:$0xff]  ;;  %v3561_v19 = vld [vmem:[#allocation4 + $0x3d8] sm:$0xff] }
 0x349   :  { %v7391_v42 = vcombine.high %v3560_v63, %v3564_v61  ;;  %v7390_v27 = vcombine.low %v3560_v63, %v3564_v61  ;;  %v7392_v43 = vcombine.low %v3561_v19, %v3565_v25 }
 0x34a   :  { %5631 = vmatpush1.bf16.msra.mxu1 %v7326_v7  ;;  %v7393_v7 = vcombine.high %v3561_v19, %v3565_v25  ;;  %v3624_v25 = vld [vmem:[#allocation4 + $0x5d0] sm:$0xff] }
 0x34b   :  { %5760 = vmatpush1.bf16.msra.mxu0 %v7328_v45  ;;  %5632 = vmatprep.subr.bf16.mxu1 %v7335_v38  ;;  %v3568_v45 = vld [vmem:[#allocation4 + $0x410] sm:$0xff] }
 0x34c   :  { %5761 = vmatprep.subr.bf16.mxu0 %v7337_v49  ;;  %v3572_v38 = vld [vmem:[#allocation4 + $0x430] sm:$0xff]  ;;  %v3569_v49 = vld [vmem:[#allocation4 + $0x418] sm:$0xff] }
 0x34d   :  { %v7399_v8 = vcombine.high %v3568_v45, %v3572_v38  ;;  %v7400_v62 = vcombine.low %v3569_v49, %v3573_v31 }
 0x34e   :  { %5633 = vmatpush1.bf16.msra.mxu1 %v7334_v18  ;;  %v7401_v18 = vcombine.high %v3569_v49, %v3573_v31  ;;  %v3632_v31 = vld [vmem:[#allocation4 + $0x610] sm:$0xff] }
 0x34f   :  { %5762 = vmatpush1.bf16.msra.mxu0 %v7336_v17  ;;  %5634 = vmatprep.subr.bf16.mxu1 %v7343_v44  ;;  %v3576_v17 = vld [vmem:[#allocation4 + $0x450] sm:$0xff] }
 0x350   :  { %5763 = vmatprep.subr.bf16.mxu0 %v7345_v29  ;;  %v3580_v44 = vld [vmem:[#allocation4 + $0x470] sm:$0xff]  ;;  %v7398_v29 = vcombine.low %v3568_v45, %v3572_v38 }
 0x351   :  { %v7407_v55 = vcombine.high %v3576_v17, %v3580_v44  ;;  %v7406_v54 = vcombine.low %v3576_v17, %v3580_v44 }
 0x352   :  { %5635 = vmatpush1.bf16.msra.mxu1 %v7342_v30  ;;  %v3584_v30 = vld [vmem:[#allocation4 + $0x490] sm:$0xff] }
 0x353   :  { %5764 = vmatpush1.bf16.msra.mxu0 %v7344_v20  ;;  %5636 = vmatprep.subr.bf16.mxu1 %v7351_v53  ;;  %v3588_v20 = vld [vmem:[#allocation4 + $0x4b0] sm:$0xff]  ;;  %v7409_v53 = vcombine.high %v3577_v10, %v3581_v36 }
 0x354   :  { %5765 = vmatprep.subr.bf16.mxu0 %v7353_v28  ;;  %v3585_v28 = vld [vmem:[#allocation4 + $0x498] sm:$0xff]  ;;  %v7415_v9 = vcombine.high %v3584_v30, %v3588_v20  ;;  %v7414_v24 = vcombine.low %v3584_v30, %v3588_v20  ;;  %v3640_v10 = vld [vmem:[#allocation4 + $0x650] sm:$0xff] }
 0x355   :  { %v3644_v36 = vld [vmem:[#allocation4 + $0x670] sm:$0xff] }
 0x356   :  { %5637 = vmatpush1.bf16.msra.mxu1 %v7350_v21  ;;  %v7417_v21 = vcombine.high %v3585_v28, %v3589_v32 }
 0x357   :  { %5766 = vmatpush1.bf16.msra.mxu0 %v7352_v3  ;;  %5638 = vmatprep.subr.bf16.mxu1 %v7359_v50  ;;  %v3592_v3 = vld [vmem:[#allocation4 + $0x4d0] sm:$0xff] }
 0x358   :  { %5767 = vmatprep.subr.bf16.mxu0 %v7361_v22  ;;  %v3596_v50 = vld [vmem:[#allocation4 + $0x4f0] sm:$0xff]  ;;  %v3593_v22 = vld [vmem:[#allocation4 + $0x4d8] sm:$0xff] }
 0x359   :  { %v7423_v15 = vcombine.high %v3592_v3, %v3596_v50  ;;  %v7425_v26 = vcombine.high %v3593_v22, %v3597_v40  ;;  %v7424_v39 = vcombine.low %v3593_v22, %v3597_v40  ;;  %v3656_v40 = vld [vmem:[#allocation4 + $0x6d0] sm:$0xff] }
 0x35a   :  { %5639 = vmatpush1.bf16.msra.mxu1 %v7358_v1  ;;  %v3600_v1 = vld [vmem:[#allocation4 + $0x510] sm:$0xff] }
 0x35b   :  { %5768 = vmatpush1.bf16.msra.mxu0 %v7360_v0  ;;  %5640 = vmatprep.subr.bf16.mxu1 %v7367_v34  ;;  %v3604_v0 = vld [vmem:[#allocation4 + $0x530] sm:$0xff]  ;;  %v3601_v34 = vld [vmem:[#allocation4 + $0x518] sm:$0xff] }
 0x35c   :  { %5769 = vmatprep.subr.bf16.mxu0 %v7369_v51  ;;  %v3605_v51 = vld [vmem:[#allocation4 + $0x538] sm:$0xff]  ;;  %v7431_v58 = vcombine.high %v3600_v1, %v3604_v0 }
 0x35d   :  { %v7433_v60 = vcombine.high %v3601_v34, %v3605_v51  ;;  %v7432_v4 = vcombine.low %v3601_v34, %v3605_v51  ;;  %v3664_v51 = vld [vmem:[#allocation4 + $0x710] sm:$0xff] }
 0x35e   :  { %5641 = vmatpush1.bf16.msra.mxu1 %v7366_v46  ;;  %v3612_v46 = vld [vmem:[#allocation4 + $0x570] sm:$0xff] }
 0x35f   :  { %5770 = vmatpush1.bf16.msra.mxu0 %v7368_v56  ;;  %5642 = vmatprep.subr.bf16.mxu1 %v7375_v48  ;;  %v3609_v56 = vld [vmem:[#allocation4 + $0x558] sm:$0xff]  ;;  %v7439_v47 = vcombine.high %v3608_v12, %v3612_v46 }
 0x360   :  { %5771 = vmatprep.subr.bf16.mxu0 %v7377_v57  ;;  %v3613_v48 = vld [vmem:[#allocation4 + $0x578] sm:$0xff]  ;;  %v7430_v57 = vcombine.low %v3600_v1, %v3604_v0 }
 0x361   :  { %v7441_v5 = vcombine.high %v3609_v56, %v3613_v48  ;;  %v7440_v63 = vcombine.low %v3609_v56, %v3613_v48  ;;  %v3672_v48 = vld [vmem:[#allocation4 + $0x750] sm:$0xff] }
 0x362   :  { %5643 = vmatpush1.bf16.msra.mxu1 %v7374_v16  ;;  %v3620_v16 = vld [vmem:[#allocation4 + $0x5b0] sm:$0xff] }
 0x363   :  { %5772 = vmatpush1.bf16.msra.mxu0 %v7376_v2  ;;  %5644 = vmatprep.subr.bf16.mxu1 %v7383_v14  ;;  %v3617_v2 = vld [vmem:[#allocation4 + $0x598] sm:$0xff]  ;;  %v7447_v61 = vcombine.high %v3616_v13, %v3620_v16 }
 0x364   :  { %5773 = vmatprep.subr.bf16.mxu0 %v7385_v11  ;;  %v3621_v14 = vld [vmem:[#allocation4 + $0x5b8] sm:$0xff]  ;;  %v7438_v11 = vcombine.low %v3608_v12, %v3612_v46 }
 0x365   :  { %v7449_v19 = vcombine.high %v3617_v2, %v3621_v14  ;;  %v7448_v45 = vcombine.low %v3617_v2, %v3621_v14  ;;  %v3680_v14 = vld [vmem:[#allocation4 + $0x790] sm:$0xff] }
 0x366   :  { %5645 = vmatpush1.bf16.msra.mxu1 %v7382_v23  ;;  %v3628_v23 = vld [vmem:[#allocation4 + $0x5f0] sm:$0xff] }
 0x367   :  { %5774 = vmatpush1.bf16.msra.mxu0 %v7384_v6  ;;  %5646 = vmatprep.subr.bf16.mxu1 %v7391_v42  ;;  %v3625_v6 = vld [vmem:[#allocation4 + $0x5d8] sm:$0xff]  ;;  %v7455_v38 = vcombine.high %v3624_v25, %v3628_v23 }
 0x368   :  { %5775 = vmatprep.subr.bf16.mxu0 %v7393_v7  ;;  %v3629_v42 = vld [vmem:[#allocation4 + $0x5f8] sm:$0xff]  ;;  %v7446_v7 = vcombine.low %v3616_v13, %v3620_v16 }
 0x369   :  { %v7457_v49 = vcombine.high %v3625_v6, %v3629_v42  ;;  %v7456_v17 = vcombine.low %v3625_v6, %v3629_v42  ;;  %v3688_v42 = vld [vmem:[#allocation4 + $0x7d0] sm:$0xff] }
 0x36a   :  { %5647 = vmatpush1.bf16.msra.mxu1 %v7390_v27  ;;  %v3636_v27 = vld [vmem:[#allocation4 + $0x630] sm:$0xff] }
 0x36b   :  { %5776 = vmatpush1.bf16.msra.mxu0 %v7392_v43  ;;  %5659 = vmatprep.subr.bf16.mxu1 %v7399_v8  ;;  %v3633_v43 = vld [vmem:[#allocation4 + $0x618] sm:$0xff]  ;;  %v7463_v44 = vcombine.high %v3632_v31, %v3636_v27  ;;  %v7462_v30 = vcombine.low %v3632_v31, %v3636_v27 }
 0x36c   :  { %5788 = vmatprep.subr.bf16.mxu0 %v7401_v18  ;;  %v3637_v8 = vld [vmem:[#allocation4 + $0x638] sm:$0xff]  ;;  %v7454_v18 = vcombine.low %v3624_v25, %v3628_v23 }
 0x36d   :  { %5649 = vmatmul.mubr.bf16.vlgmr.msra.gmra.mrb[28].mxu1 %v9359_v52  ;;  %v7464_v20 = vcombine.low %v3633_v43, %v3637_v8 }
 0x36e   :  { %5778 = vmatmul.mubr.bf16.vlgmr.msra.gmra.mrb[32].mxu0 %v9359_v52  ;;  %5660 = vmatpush1.bf16.msra.mxu1 %v7398_v29  ;;  %v7416_v52 = vcombine.low %v3585_v28, %v3589_v32  ;;  %v7465_v29 = vcombine.high %v3633_v43, %v3637_v8  ;;  %v3648_v32 = vld [vmem:[#allocation4 + $0x690] sm:$0xff] }
 0x36f   :  { %5691 = vmatprep.mubr.bf16.mxu1 %v9371_v33  ;;  %5789 = vmatpush1.bf16.msra.mxu0 %v7400_v62  ;;  %v3641_v62 = vld [vmem:[#allocation4 + $0x658] sm:$0xff]  ;;  %v3696_v8 = vld [vmem:[#allocation4 + $0x810] sm:$0xff] }
 0x370   :  { %5820 = vmatprep.mubr.bf16.mxu0 %v9371_v33  ;;  %5661 = vmatprep.subr.bf16.mxu1 %v7407_v55  ;;  %v7422_v33 = vcombine.low %v3592_v3, %v3596_v50  ;;  %v3645_v55 = vld [vmem:[#allocation4 + $0x678] sm:$0xff] }
 0x371   :  { %5790 = vmatprep.subr.bf16.mxu0 %v7409_v53  ;;  %v7471_v53 = vcombine.high %v3640_v10, %v3644_v36  ;;  %v7473_v28 = vcombine.high %v3641_v62, %v3645_v55  ;;  %v7472_v3 = vcombine.low %v3641_v62, %v3645_v55  ;;  %v3704_v55 = vld [vmem:[#allocation4 + $0x850] sm:$0xff] }
 0x372   :  { %5662 = vmatpush1.bf16.msra.mxu1 %v7406_v54  ;;  %v3652_v54 = vld [vmem:[#allocation4 + $0x6b0] sm:$0xff] }
 0x373   :  { %5791 = vmatpush1.bf16.msra.mxu0 %v7408_v59  ;;  %5663 = vmatprep.subr.bf16.mxu1 %v7415_v9  ;;  %v3649_v59 = vld [vmem:[#allocation4 + $0x698] sm:$0xff]  ;;  %v7479_v50 = vcombine.high %v3648_v32, %v3652_v54 }
 0x374   :  { %5792 = vmatprep.subr.bf16.mxu0 %v7417_v21  ;;  %v3653_v9 = vld [vmem:[#allocation4 + $0x6b8] sm:$0xff]  ;;  %v7470_v21 = vcombine.low %v3640_v10, %v3644_v36 }
 0x375   :  { %v7481_v22 = vcombine.high %v3649_v59, %v3653_v9  ;;  %v7480_v1 = vcombine.low %v3649_v59, %v3653_v9  ;;  %v3712_v9 = vld [vmem:[#allocation4 + $0x890] sm:$0xff] }
 0x376   :  { %5664 = vmatpush1.bf16.msra.mxu1 %v7414_v24  ;;  %v3660_v24 = vld [vmem:[#allocation4 + $0x6f0] sm:$0xff] }
 0x377   :  { %5793 = vmatpush1.bf16.msra.mxu0 %v7416_v52  ;;  %5665 = vmatprep.subr.bf16.mxu1 %v7423_v15  ;;  %v3657_v52 = vld [vmem:[#allocation4 + $0x6d8] sm:$0xff]  ;;  %v7487_v0 = vcombine.high %v3656_v40, %v3660_v24 }
 0x378   :  { %5794 = vmatprep.subr.bf16.mxu0 %v7425_v26  ;;  %v3661_v15 = vld [vmem:[#allocation4 + $0x6f8] sm:$0xff]  ;;  %v7478_v26 = vcombine.low %v3648_v32, %v3652_v54 }
 0x379   :  { %v7489_v34 = vcombine.high %v3657_v52, %v3661_v15  ;;  %v7488_v12 = vcombine.low %v3657_v52, %v3661_v15  ;;  %v3720_v15 = vld [vmem:[#allocation4 + $0x8d0] sm:$0xff] }
 0x37a   :  { %5666 = vmatpush1.bf16.msra.mxu1 %v7422_v33  ;;  %v3668_v33 = vld [vmem:[#allocation4 + $0x730] sm:$0xff] }
 0x37b   :  { %5795 = vmatpush1.bf16.msra.mxu0 %v7424_v39  ;;  %5667 = vmatprep.subr.bf16.mxu1 %v7431_v58  ;;  %v3665_v39 = vld [vmem:[#allocation4 + $0x718] sm:$0xff]  ;;  %v7495_v46 = vcombine.high %v3664_v51, %v3668_v33 }
 0x37c   :  { %5796 = vmatprep.subr.bf16.mxu0 %v7433_v60  ;;  %v3669_v58 = vld [vmem:[#allocation4 + $0x738] sm:$0xff]  ;;  %v7486_v60 = vcombine.low %v3656_v40, %v3660_v24 }
 0x37d   :  { %v7497_v56 = vcombine.high %v3665_v39, %v3669_v58  ;;  %v7496_v13 = vcombine.low %v3665_v39, %v3669_v58  ;;  %v3728_v39 = vld [vmem:[#allocation4 + $0x910] sm:$0xff] }
 0x37e   :  { %5668 = vmatpush1.bf16.msra.mxu1 %v7430_v57  ;;  %v3676_v57 = vld [vmem:[#allocation4 + $0x770] sm:$0xff] }
 0x37f   :  { %5797 = vmatpush1.bf16.msra.mxu0 %v7432_v4  ;;  %5669 = vmatprep.subr.bf16.mxu1 %v7439_v47  ;;  %v3673_v4 = vld [vmem:[#allocation4 + $0x758] sm:$0xff]  ;;  %v7503_v16 = vcombine.high %v3672_v48, %v3676_v57  ;;  %v3732_v58 = vld [vmem:[#allocation4 + $0x930] sm:$0xff] }
 0x380   :  { %5798 = vmatprep.subr.bf16.mxu0 %v7441_v5  ;;  %v3677_v47 = vld [vmem:[#allocation4 + $0x778] sm:$0xff]  ;;  %v7494_v5 = vcombine.low %v3664_v51, %v3668_v33 }
 0x381   :  { %v7505_v2 = vcombine.high %v3673_v4, %v3677_v47  ;;  %v7504_v25 = vcombine.low %v3673_v4, %v3677_v47  ;;  %v3740_v4 = vld [vmem:[#allocation4 + $0x970] sm:$0xff]  ;;  %v3737_v47 = vld [vmem:[#allocation4 + $0x958] sm:$0xff] }
 0x382   :  { %5670 = vmatpush1.bf16.msra.mxu1 %v7438_v11  ;;  %v3684_v11 = vld [vmem:[#allocation4 + $0x7b0] sm:$0xff] }
 0x383   :  { %5799 = vmatpush1.bf16.msra.mxu0 %v7440_v63  ;;  %5671 = vmatprep.subr.bf16.mxu1 %v7447_v61  ;;  %v3681_v63 = vld [vmem:[#allocation4 + $0x798] sm:$0xff]  ;;  %v7511_v23 = vcombine.high %v3680_v14, %v3684_v11 }
 0x384   :  { %5800 = vmatprep.subr.bf16.mxu0 %v7449_v19  ;;  %v3685_v61 = vld [vmem:[#allocation4 + $0x7b8] sm:$0xff]  ;;  %v7502_v19 = vcombine.low %v3672_v48, %v3676_v57  ;;  %v7559_v48 = vcombine.high %v3728_v39, %v3732_v58  ;;  %v3736_v57 = vld [vmem:[#allocation4 + $0x950] sm:$0xff] }
 0x385   :  { %v7513_v6 = vcombine.high %v3681_v63, %v3685_v61  ;;  %v7512_v31 = vcombine.low %v3681_v63, %v3685_v61  ;;  %v3748_v63 = vld [vmem:[#allocation4 + $0x9b0] sm:$0xff]  ;;  %v3745_v61 = vld [vmem:[#allocation4 + $0x998] sm:$0xff] }
 0x386   :  { %5672 = vmatpush1.bf16.msra.mxu1 %v7446_v7  ;;  %v3692_v7 = vld [vmem:[#allocation4 + $0x7f0] sm:$0xff] }
 0x387   :  { %5801 = vmatpush1.bf16.msra.mxu0 %v7448_v45  ;;  %5673 = vmatprep.subr.bf16.mxu1 %v7455_v38  ;;  %v3689_v45 = vld [vmem:[#allocation4 + $0x7d8] sm:$0xff]  ;;  %v7519_v27 = vcombine.high %v3688_v42, %v3692_v7 }
 0x388   :  { %5802 = vmatprep.subr.bf16.mxu0 %v7457_v49  ;;  %v3693_v38 = vld [vmem:[#allocation4 + $0x7f8] sm:$0xff]  ;;  %v7510_v49 = vcombine.low %v3680_v14, %v3684_v11  ;;  %v3744_v11 = vld [vmem:[#allocation4 + $0x990] sm:$0xff] }
 0x389   :  { %v7521_v43 = vcombine.high %v3689_v45, %v3693_v38  ;;  %v7520_v10 = vcombine.low %v3689_v45, %v3693_v38  ;;  %v3756_v45 = vld [vmem:[#allocation4 + $0x9f0] sm:$0xff]  ;;  %v3753_v38 = vld [vmem:[#allocation4 + $0x9d8] sm:$0xff] }
 0x38a   :  { %5674 = vmatpush1.bf16.msra.mxu1 %v7454_v18  ;;  %v3700_v18 = vld [vmem:[#allocation4 + $0x830] sm:$0xff] }
 0x38b   :  { %5803 = vmatpush1.bf16.msra.mxu0 %v7456_v17  ;;  %5675 = vmatprep.subr.bf16.mxu1 %v7463_v44  ;;  %v3697_v17 = vld [vmem:[#allocation4 + $0x818] sm:$0xff]  ;;  %v7527_v36 = vcombine.high %v3696_v8, %v3700_v18 }
 0x38c   :  { %5804 = vmatprep.subr.bf16.mxu0 %v7465_v29  ;;  %v3701_v44 = vld [vmem:[#allocation4 + $0x838] sm:$0xff]  ;;  %v7518_v29 = vcombine.low %v3688_v42, %v3692_v7  ;;  %v3752_v7 = vld [vmem:[#allocation4 + $0x9d0] sm:$0xff] }
 0x38d   :  { %v7529_v62 = vcombine.high %v3697_v17, %v3701_v44  ;;  %v7528_v32 = vcombine.low %v3697_v17, %v3701_v44  ;;  %v8418_v44 = vld [vmem:[#allocation6 + $0x4] ss:$16 sps:$4 sm:$0xff]  }
 0x38e   :  { %5676 = vmatpush1.bf16.msra.mxu1 %v7462_v30  ;;  %v3708_v30 = vld [vmem:[#allocation4 + $0x870] sm:$0xff] }
 0x38f   :  { %5805 = vmatpush1.bf16.msra.mxu0 %v7464_v20  ;;  %5677 = vmatprep.subr.bf16.mxu1 %v7471_v53  ;;  %v3705_v20 = vld [vmem:[#allocation4 + $0x858] sm:$0xff]  ;;  %v7535_v54 = vcombine.high %v3704_v55, %v3708_v30 }
 0x390   :  { %5806 = vmatprep.subr.bf16.mxu0 %v7473_v28  ;;  %v3709_v53 = vld [vmem:[#allocation4 + $0x878] sm:$0xff]  ;;  %v7526_v28 = vcombine.low %v3696_v8, %v3700_v18  ;;  %v7582_v18 = vcombine.low %v3752_v7, %v3756_v45 }
 0x391   :  { %v7537_v59 = vcombine.high %v3705_v20, %v3709_v53  ;;  %v7536_v40 = vcombine.low %v3705_v20, %v3709_v53  ;;  %v8425_v20 = vld [vmem:[#allocation6 + $0x28] ss:$16 sps:$4 sm:$0xff]   ;;  %v8430_v53 = vld [vmem:[#allocation6 + $0x44] ss:$16 sps:$4 sm:$0xff]  }
 0x392   :  { %5678 = vmatpush1.bf16.msra.mxu1 %v7470_v21  ;;  %v3716_v21 = vld [vmem:[#allocation4 + $0x8b0] sm:$0xff] }
 0x393   :  { %5807 = vmatpush1.bf16.msra.mxu0 %v7472_v3  ;;  %5679 = vmatprep.subr.bf16.mxu1 %v7479_v50  ;;  %v3713_v3 = vld [vmem:[#allocation4 + $0x898] sm:$0xff]  ;;  %v7543_v24 = vcombine.high %v3712_v9, %v3716_v21 }
 0x394   :  { %5808 = vmatprep.subr.bf16.mxu0 %v7481_v22  ;;  %v3717_v50 = vld [vmem:[#allocation4 + $0x8b8] sm:$0xff]  ;;  %v7534_v22 = vcombine.low %v3704_v55, %v3708_v30  ;;  %v8422_v30 = vld [vmem:[#allocation6 + $0x20] ss:$16 sps:$4 sm:$0xff]  }
 0x395   :  { %v7545_v52 = vcombine.high %v3713_v3, %v3717_v50  ;;  %v8427_v55 = vld [vmem:[#allocation6 + $0x2c] ss:$16 sps:$4 sm:$0xff]  }
 0x396   :  { %5680 = vmatpush1.bf16.msra.mxu1 %v7478_v26  ;;  %v3724_v26 = vld [vmem:[#allocation4 + $0x8f0] sm:$0xff] }
 0x397   :  { %5809 = vmatpush1.bf16.msra.mxu0 %v7480_v1  ;;  %5681 = vmatprep.subr.bf16.mxu1 %v7487_v0  ;;  %v3721_v1 = vld [vmem:[#allocation4 + $0x8d8] sm:$0xff]  ;;  %v7551_v51 = vcombine.high %v3720_v15, %v3724_v26 }
 0x398   :  { %5810 = vmatprep.subr.bf16.mxu0 %v7489_v34  ;;  %v3725_v0 = vld [vmem:[#allocation4 + $0x8f8] sm:$0xff]  ;;  %v7542_v34 = vcombine.low %v3712_v9, %v3716_v21  ;;  %v8434_v21 = vld [vmem:[#allocation6 + $0x60] ss:$16 sps:$4 sm:$0xff]  }
 0x399   :  { %v7553_v33 = vcombine.high %v3721_v1, %v3725_v0  ;;  %v8439_v9 = vld [vmem:[#allocation6 + $0x6c] ss:$16 sps:$4 sm:$0xff]  }
 0x39a   :  { %5682 = vmatpush1.bf16.msra.mxu1 %v7486_v60  ;;  %v3729_v60 = vld [vmem:[#allocation4 + $0x918] sm:$0xff] }
 0x39b   :  { %5811 = vmatpush1.bf16.msra.mxu0 %v7488_v12  ;;  %5683 = vmatprep.subr.bf16.mxu1 %v7495_v46  ;;  %v3733_v12 = vld [vmem:[#allocation4 + $0x938] sm:$0xff]  ;;  %v7550_v46 = vcombine.low %v3720_v15, %v3724_v26  ;;  %v8446_v15 = vld [vmem:[#allocation6 + $0xa0] ss:$16 sps:$4 sm:$0xff]  }
 0x39c   :  { %5812 = vmatprep.subr.bf16.mxu0 %v7497_v56  ;;  %v7552_v56 = vcombine.low %v3721_v1, %v3725_v0  ;;  %v8449_v26 = vld [vmem:[#allocation6 + $0xa8] ss:$16 sps:$4 sm:$0xff]   ;;  %v8454_v1 = vld [vmem:[#allocation6 + $0xc4] ss:$16 sps:$4 sm:$0xff]   ;;  %v8457_v0 = vld [vmem:[#allocation6 + $0xcc] ss:$16 sps:$4 sm:$0xff]  }
 0x39e   :  { %5684 = vmatpush1.bf16.msra.mxu1 %v7494_v5  ;;  %v3741_v5 = vld [vmem:[#allocation4 + $0x978] sm:$0xff] }
 0x39f   :  { %5813 = vmatpush1.bf16.msra.mxu0 %v7496_v13  ;;  %5685 = vmatprep.subr.bf16.mxu1 %v7503_v16  ;;  %v7558_v13 = vcombine.low %v3728_v39, %v3732_v58  ;;  %v7560_v16 = vcombine.low %v3729_v60, %v3733_v12  ;;  %v7569_v14 = vcombine.high %v3737_v47, %v3741_v5  ;;  %v8458_v39 = vld [vmem:[#allocation6 + $0xe0] ss:$16 sps:$4 sm:$0xff]   ;;  %v8461_v58 = vld [vmem:[#allocation6 + $0xe8] ss:$16 sps:$4 sm:$0xff]  }
 0x3a0   :  { %5814 = vmatprep.subr.bf16.mxu0 %v7505_v2  ;;  %v7567_v2 = vcombine.high %v3736_v57, %v3740_v4 }
 0x3a2   :  { %5686 = vmatpush1.bf16.msra.mxu1 %v7502_v19  ;;  %v3749_v19 = vld [vmem:[#allocation4 + $0x9b8] sm:$0xff] }
 0x3a3   :  { %5815 = vmatpush1.bf16.msra.mxu0 %v7504_v25  ;;  %5687 = vmatprep.subr.bf16.mxu1 %v7511_v23  ;;  %v7566_v25 = vcombine.low %v3736_v57, %v3740_v4  ;;  %v7568_v23 = vcombine.low %v3737_v47, %v3741_v5  ;;  %v7577_v42 = vcombine.high %v3745_v61, %v3749_v19 }
 0x3a4   :  { %5816 = vmatprep.subr.bf16.mxu0 %v7513_v6  ;;  %v7575_v6 = vcombine.high %v3744_v11, %v3748_v63 }
 0x3a6   :  { %5688 = vmatpush1.bf16.msra.mxu1 %v7510_v49  ;;  %v3757_v49 = vld [vmem:[#allocation4 + $0x9f8] sm:$0xff] }
 0x3a7   :  { %5817 = vmatpush1.bf16.msra.mxu0 %v7512_v31  ;;  %5689 = vmatprep.subr.bf16.mxu1 %v7519_v27  ;;  %v7574_v31 = vcombine.low %v3744_v11, %v3748_v63  ;;  %v7576_v27 = vcombine.low %v3745_v61, %v3749_v19  ;;  %v7585_v8 = vcombine.high %v3753_v38, %v3757_v49 }
 0x3a8   :  { %5818 = vmatprep.subr.bf16.mxu0 %v7521_v43  ;;  %v7583_v43 = vcombine.high %v3752_v7, %v3756_v45  ;;  %v7584_v17 = vcombine.low %v3753_v38, %v3757_v49 }
 0x3aa   :  { %5690 = vmatpush1.bf16.msra.mxu1 %v7518_v29  ;;  %v8421_v29 = vld [vmem:[#allocation6 + $0xc] ss:$16 sps:$4 sm:$0xff]  }
 0x3ab   :  { %5819 = vmatpush1.bf16.msra.mxu0 %v7520_v10  ;;  %5702 = vmatprep.subr.bf16.mxu1 %v7527_v36  ;;  %v8416_v10 = vld [vmem:[#allocation6] ss:$16 sps:$4 sm:$0xff]   ;;  %v8419_v36 = vld [vmem:[#allocation6 + $0x8] ss:$16 sps:$4 sm:$0xff]  }
 0x3ac   :  { %5831 = vmatprep.subr.bf16.mxu0 %v7529_v62  ;;  %v8424_v62 = vld [vmem:[#allocation6 + $0x24] ss:$16 sps:$4 sm:$0xff]  }
 0x3ad   :  { %5692 = vmatmul.mubr.bf16.vlgmr.msra.gmra.mrb[28].mxu1 %v9364_v37 }
 0x3ae   :  { %5821 = vmatmul.mubr.bf16.vlgmr.msra.gmra.mrb[32].mxu0 %v9364_v37  ;;  %5703 = vmatpush1.bf16.msra.mxu1 %v7526_v28  ;;  %v7544_v37 = vcombine.low %v3713_v3, %v3717_v50  ;;  %v8433_v28 = vld [vmem:[#allocation6 + $0x4c] ss:$16 sps:$4 sm:$0xff]   ;;  %v8442_v3 = vld [vmem:[#allocation6 + $0x84] ss:$16 sps:$4 sm:$0xff]  }
 0x3af   :  { %5832 = vmatpush1.bf16.msra.mxu0 %v7528_v32  ;;  %5704 = vmatprep.subr.bf16.mxu1 %v7535_v54  ;;  %v8428_v32 = vld [vmem:[#allocation6 + $0x40] ss:$16 sps:$4 sm:$0xff]   ;;  %v8431_v54 = vld [vmem:[#allocation6 + $0x48] ss:$16 sps:$4 sm:$0xff]   ;;  %v8445_v50 = vld [vmem:[#allocation6 + $0x8c] ss:$16 sps:$4 sm:$0xff]  }
 0x3b0   :  { %5833 = vmatprep.subr.bf16.mxu0 %v7537_v59  ;;  %5734 = vmatprep.mubr.bf16.mxu1 %v8829_v35  ;;  %v8436_v59 = vld [vmem:[#allocation6 + $0x64] ss:$16 sps:$4 sm:$0xff]  }
 0x3b1   :  { %5863 = vmatprep.mubr.bf16.mxu0 %v8829_v35  ;;  %v7561_v35 = vcombine.high %v3729_v60, %v3733_v12  ;;  %v8466_v60 = vld [vmem:[#allocation6 + $0x104] ss:$16 sps:$4 sm:$0xff]   ;;  %v8469_v12 = vld [vmem:[#allocation6 + $0x10c] ss:$16 sps:$4 sm:$0xff]  }
 0x3b2   :  { %5705 = vmatpush1.bf16.msra.mxu1 %v7534_v22  ;;  %v8440_v22 = vld [vmem:[#allocation6 + $0x80] ss:$16 sps:$4 sm:$0xff]  }
 0x3b3   :  { %5834 = vmatpush1.bf16.msra.mxu0 %v7536_v40  ;;  %5706 = vmatprep.subr.bf16.mxu1 %v7543_v24  ;;  %v8443_v40 = vld [vmem:[#allocation6 + $0x88] ss:$16 sps:$4 sm:$0xff]   ;;  %v8448_v24 = vld [vmem:[#allocation6 + $0xa4] ss:$16 sps:$4 sm:$0xff]  }
 0x3b4   :  { %5835 = vmatprep.subr.bf16.mxu0 %v7545_v52  ;;  %v8451_v52 = vld [vmem:[#allocation6 + $0xac] ss:$16 sps:$4 sm:$0xff]  }
 0x3b6   :  { %5707 = vmatpush1.bf16.msra.mxu1 %v7542_v34  ;;  %v8452_v34 = vld [vmem:[#allocation6 + $0xc0] ss:$16 sps:$4 sm:$0xff]  }
 0x3b7   :  { %5836 = vmatpush1.bf16.msra.mxu0 %v7544_v37  ;;  %5708 = vmatprep.subr.bf16.mxu1 %v7551_v51  ;;  %v8455_v37 = vld [vmem:[#allocation6 + $0xc8] ss:$16 sps:$4 sm:$0xff]   ;;  %v8460_v51 = vld [vmem:[#allocation6 + $0xe4] ss:$16 sps:$4 sm:$0xff]  }
 0x3b8   :  { %5837 = vmatprep.subr.bf16.mxu0 %v7553_v33  ;;  %v8463_v33 = vld [vmem:[#allocation6 + $0xec] ss:$16 sps:$4 sm:$0xff]  }
 0x3ba   :  { %5709 = vmatpush1.bf16.msra.mxu1 %v7550_v46  ;;  %v8464_v46 = vld [vmem:[#allocation6 + $0x100] ss:$16 sps:$4 sm:$0xff]  }
 0x3bb   :  { %5838 = vmatpush1.bf16.msra.mxu0 %v7552_v56  ;;  %5710 = vmatprep.subr.bf16.mxu1 %v7559_v48  ;;  %v8467_v56 = vld [vmem:[#allocation6 + $0x108] ss:$16 sps:$4 sm:$0xff]  }
 0x3bc   :  { %5839 = vmatprep.subr.bf16.mxu0 %v7561_v35 }
 0x3be   :  { %5711 = vmatpush1.bf16.msra.mxu1 %v7558_v13 }
 0x3bf   :  { %5840 = vmatpush1.bf16.msra.mxu0 %v7560_v16  ;;  %5712 = vmatprep.subr.bf16.mxu1 %v7567_v2 }
 0x3c0   :  { %5841 = vmatprep.subr.bf16.mxu0 %v7569_v14 }
 0x3c2   :  { %5713 = vmatpush1.bf16.msra.mxu1 %v7566_v25 }
 0x3c3   :  { %5842 = vmatpush1.bf16.msra.mxu0 %v7568_v23  ;;  %5714 = vmatprep.subr.bf16.mxu1 %v7575_v6 }
 0x3c4   :  { %5843 = vmatprep.subr.bf16.mxu0 %v7577_v42 }
 0x3c6   :  { %5715 = vmatpush1.bf16.msra.mxu1 %v7574_v31 }
 0x3c7   :  { %5844 = vmatpush1.bf16.msra.mxu0 %v7576_v27  ;;  %5716 = vmatprep.subr.bf16.mxu1 %v7583_v43 }
 0x3c8   :  { %5845 = vmatprep.subr.bf16.mxu0 %v7585_v8 }
 0x3ca   :  { %5717 = vmatpush1.bf16.msra.mxu1 %v7582_v18 }
 0x3cb   :  { %5846 = vmatpush1.bf16.msra.mxu0 %v7584_v17  ;;  %6368 = vmatprep.subr.bf16.mxu1 %v8418_v44 }
 0x3cc   :  { %6411 = vmatprep.subr.bf16.mxu0 %v8421_v29 }
 0x3cd   :  { %5735 = vmatmul.mubr.bf16.vlgmr.msra.gmra.mrb[28].mxu1 %v9401_v41 }
 0x3ce   :  { %5864 = vmatmul.mubr.bf16.vlgmr.msra.gmra.mrb[32].mxu0 %v9401_v41  ;;  %6369 = vmatpush1.bf16.msra.mxu1 %v8416_v10  ;;  %v8437_v41 = vld [vmem:[#allocation6 + $0x68] ss:$16 sps:$4 sm:$0xff]  }
 0x3cf   :  { %6412 = vmatpush1.bf16.msra.mxu0 %v8419_v36  ;;  %6370 = vmatprep.subr.bf16.mxu1 %v8424_v62 }
 0x3d0   :  { %6413 = vmatprep.subr.bf16.mxu0 %v8427_v55 }
 0x3d2   :  { %6371 = vmatpush1.bf16.msra.mxu1 %v8422_v30 }
 0x3d3   :  { %6414 = vmatpush1.bf16.msra.mxu0 %v8425_v20  ;;  %6372 = vmatprep.subr.bf16.mxu1 %v8430_v53 }
 0x3d4   :  { %6415 = vmatprep.subr.bf16.mxu0 %v8433_v28 }
 0x3d6   :  { %6373 = vmatpush1.bf16.msra.mxu1 %v8428_v32 }
 0x3d7   :  { %6416 = vmatpush1.bf16.msra.mxu0 %v8431_v54  ;;  %6374 = vmatprep.subr.bf16.mxu1 %v8436_v59 }
 0x3d8   :  { %6417 = vmatprep.subr.bf16.mxu0 %v8439_v9 }
 0x3da   :  { %6375 = vmatpush1.bf16.msra.mxu1 %v8434_v21 }
 0x3db   :  { %6418 = vmatpush1.bf16.msra.mxu0 %v8437_v41  ;;  %6376 = vmatprep.subr.bf16.mxu1 %v8442_v3 }
 0x3dc   :  { %6419 = vmatprep.subr.bf16.mxu0 %v8445_v50 }
 0x3de   :  { %6377 = vmatpush1.bf16.msra.mxu1 %v8440_v22 }
 0x3df   :  { %6420 = vmatpush1.bf16.msra.mxu0 %v8443_v40  ;;  %6378 = vmatprep.subr.bf16.mxu1 %v8448_v24 }
 0x3e0   :  { %6421 = vmatprep.subr.bf16.mxu0 %v8451_v52 }
 0x3e2   :  { %6379 = vmatpush1.bf16.msra.mxu1 %v8446_v15 }
 0x3e3   :  { %6422 = vmatpush1.bf16.msra.mxu0 %v8449_v26  ;;  %6380 = vmatprep.subr.bf16.mxu1 %v8454_v1  ;;  %v8472_v1 = vld [vmem:[#allocation6 + $0x124] ss:$16 sps:$4 sm:$0xff]  }
 0x3e4   :  { %6423 = vmatprep.subr.bf16.mxu0 %v8457_v0  ;;  %v8475_v0 = vld [vmem:[#allocation6 + $0x12c] ss:$16 sps:$4 sm:$0xff]  }
 0x3e6   :  { %6381 = vmatpush1.bf16.msra.mxu1 %v8452_v34  ;;  %v8470_v34 = vld [vmem:[#allocation6 + $0x120] ss:$16 sps:$4 sm:$0xff]  }
 0x3e7   :  { %6424 = vmatpush1.bf16.msra.mxu0 %v8455_v37  ;;  %6382 = vmatprep.subr.bf16.mxu1 %v8460_v51  ;;  %v8473_v37 = vld [vmem:[#allocation6 + $0x128] ss:$16 sps:$4 sm:$0xff]   ;;  %v8478_v51 = vld [vmem:[#allocation6 + $0x144] ss:$16 sps:$4 sm:$0xff]  }
 0x3e8   :  { %6425 = vmatprep.subr.bf16.mxu0 %v8463_v33  ;;  %v8481_v33 = vld [vmem:[#allocation6 + $0x14c] ss:$16 sps:$4 sm:$0xff]  }
 0x3ea   :  { %6383 = vmatpush1.bf16.msra.mxu1 %v8458_v39  ;;  %v8476_v39 = vld [vmem:[#allocation6 + $0x140] ss:$16 sps:$4 sm:$0xff]  }
 0x3eb   :  { %6426 = vmatpush1.bf16.msra.mxu0 %v8461_v58  ;;  %6384 = vmatprep.subr.bf16.mxu1 %v8466_v60  ;;  %v8479_v58 = vld [vmem:[#allocation6 + $0x148] ss:$16 sps:$4 sm:$0xff]   ;;  %v8484_v60 = vld [vmem:[#allocation6 + $0x164] ss:$16 sps:$4 sm:$0xff]  }
 0x3ec   :  { %6427 = vmatprep.subr.bf16.mxu0 %v8469_v12  ;;  %v8487_v12 = vld [vmem:[#allocation6 + $0x16c] ss:$16 sps:$4 sm:$0xff]  }
 0x3ee   :  { %6385 = vmatpush1.bf16.msra.mxu1 %v8464_v46  ;;  %v8482_v46 = vld [vmem:[#allocation6 + $0x160] ss:$16 sps:$4 sm:$0xff]  }
 0x3ef   :  { %6428 = vmatpush1.bf16.msra.mxu0 %v8467_v56  ;;  %6386 = vmatprep.subr.bf16.mxu1 %v8472_v1  ;;  %v8485_v56 = vld [vmem:[#allocation6 + $0x168] ss:$16 sps:$4 sm:$0xff]  }
 0x3f0   :  { %6429 = vmatprep.subr.bf16.mxu0 %v8475_v0 }
 0x3f2   :  { %6387 = vmatpush1.bf16.msra.mxu1 %v8470_v34 }
 0x3f3   :  { %6430 = vmatpush1.bf16.msra.mxu0 %v8473_v37  ;;  %6388 = vmatprep.subr.bf16.mxu1 %v8478_v51 }
 0x3f4   :  { %6431 = vmatprep.subr.bf16.mxu0 %v8481_v33 }
 0x3f6   :  { %6389 = vmatpush1.bf16.msra.mxu1 %v8476_v39 }
 0x3f7   :  { %6432 = vmatpush1.bf16.msra.mxu0 %v8479_v58  ;;  %6390 = vmatprep.subr.bf16.mxu1 %v8484_v60 }
 0x3f8   :  { %6433 = vmatprep.subr.bf16.mxu0 %v8487_v12 }
 0x3fa   :  { %6391 = vmatpush1.bf16.msra.mxu1 %v8482_v46 }
 0x3fb   :  { %6434 = vmatpush1.bf16.msra.mxu0 %v8485_v56 }
 0x400   :  { %v5478_v48 = vpop.f32.mrb[24].mxu1  ;;  %v5607_v35 = vpop.f32.mrb[28].mxu0 }
 0x401   :  { %v5890_v57 = vmin.f32 %v5478_v48, 0.0  ;;  %v5892_v4 = vmin.f32 %v5607_v35, 0.0  ;;  %v5480_v47 = vpop.f32.mrb[25].mxu1  ;;  %v5609_v5 = vpop.f32.mrb[29].mxu0  ;;  %vm5874_vm2 = vcmp.gt.f32.partialorder %v5478_v48, 0.0  ;;  %vm5876_vm3 = vcmp.gt.f32.partialorder %v5607_v35, 0.0 }
 0x402   :  { %v5891_v13 = vmin.f32 %v5480_v47, 0.0  ;;  %v5893_v16 = vmin.f32 %v5609_v5, 0.0  ;;  %v5482_v2 = vpop.f32.mrb[26].mxu1  ;;  %v5611_v14 = vpop.f32.mrb[30].mxu0  ;;  %vm5875_vm4 = vcmp.gt.f32.partialorder %v5480_v47, 0.0  ;;  %vm5877_vm5 = vcmp.gt.f32.partialorder %v5609_v5, 0.0 }
 0x403   :  { %v5906_v11 = vmul.f32 1.442695, %v5890_v57  ;;  %v5910_v63 = vmul.f32 1.442695, %v5892_v4  ;;  %v5898_v61 = vmin.f32 %v5482_v2, 0.0  ;;  %v5900_v23 = vmin.f32 %v5611_v14, 0.0 }
 0x404   :  { %v5908_v19 = vmul.f32 1.442695, %v5891_v13  ;;  %v5912_v25 = vmul.f32 1.442695, %v5893_v16  ;;  %v5484_v42 = vpop.f32.mrb[27].mxu1  ;;  %v5613_v7 = vpop.f32.mrb[31].mxu0 }
 0x405   :  { %8636 = vpow2.f32 %v5906_v11  ;;  %v5922_v6 = vmul.f32 1.442695, %v5898_v61  ;;  %v5926_v45 = vmul.f32 1.442695, %v5900_v23  ;;  %v5899_v38 = vmin.f32 %v5484_v42, 0.0 }
 0x406   :  { %8638 = vpow2.f32 %v5910_v63  ;;  %v5901_v49 = vmin.f32 %v5613_v7, 0.0  ;;  %vm5882_vm6 = vcmp.gt.f32.partialorder %v5482_v2, 0.0  ;;  %vm5884_vm7 = vcmp.gt.f32.partialorder %v5611_v14, 0.0  ;;  %v8488_v57 = vld [vmem:[#allocation6 + $0x180] ss:$16 sps:$4 sm:$0xff]  }
 0x407   :  { %8640 = vpow2.f32 %v5908_v19  ;;  %v5924_v31 = vmul.f32 1.442695, %v5899_v38  ;;  %vm5883_vm8 = vcmp.gt.f32.partialorder %v5484_v42, 0.0  ;;  %vm5885_vm9 = vcmp.gt.f32.partialorder %v5613_v7, 0.0  ;;  %v8491_v4 = vld [vmem:[#allocation6 + $0x188] ss:$16 sps:$4 sm:$0xff]  }
 0x408   :  { %8642 = vpow2.f32 %v5912_v25  ;;  %v5928_v27 = vmul.f32 1.442695, %v5901_v49  ;;  %v8494_v13 = vld [vmem:[#allocation6 + $0x1a0] ss:$16 sps:$4 sm:$0xff]   ;;  %v8497_v16 = vld [vmem:[#allocation6 + $0x1a8] ss:$16 sps:$4 sm:$0xff]  }
 0x409   :  { %8644 = vpow2.f32 %v5922_v6  ;;  %v8500_v11 = vld [vmem:[#allocation6 + $0x1c0] ss:$16 sps:$4 sm:$0xff]   ;;  %v8503_v63 = vld [vmem:[#allocation6 + $0x1c8] ss:$16 sps:$4 sm:$0xff]   ;;  %v8508_v19 = vld [vmem:[#allocation6 + $0x1e4] ss:$16 sps:$4 sm:$0xff]  }
 0x40a   :  { %8646 = vpow2.f32 %v5926_v45  ;;  %v8506_v61 = vld [vmem:[#allocation6 + $0x1e0] ss:$16 sps:$4 sm:$0xff]   ;;  %v8509_v25 = vld [vmem:[#allocation6 + $0x1e8] ss:$16 sps:$4 sm:$0xff]   ;;  %v8511_v23 = vld [vmem:[#allocation6 + $0x1ec] ss:$16 sps:$4 sm:$0xff]  }
 0x40b   :  { %8648 = vpow2.f32 %v5924_v31  ;;  %v8512_v6 = vld [vmem:[#allocation7 + $0x40] sm:$0xff]  }
 0x40c   :  { %8650 = vpow2.f32 %v5928_v27 }
 0x40f   :  { %v8637_v43 = vpop.eup %8636 }
 0x410   :  { %v8639_v8 = vpop.eup %8638  ;;  %v7586_v18 = vadd.f32 -1.0, %v8637_v43 }
 0x411   :  { %v8641_v17 = vpop.eup %8640  ;;  %v7588_v44 = vadd.f32 -1.0, %v8639_v8 }
 0x412   :  { %v8643_v29 = vpop.eup %8642  ;;  %v9421_v10 = vsel %vm5874_vm2, %v5478_v48, %v7586_v18  ;;  %v7587_v36 = vadd.f32 -1.0, %v8641_v17  ;;  %v8490_v48 = vld [vmem:[#allocation6 + $0x184] ss:$16 sps:$4 sm:$0xff]  }
 0x413   :  { %v8645_v62 = vpop.eup %8644  ;;  %v9423_v55 = vsel %vm5876_vm3, %v5607_v35, %v7588_v44  ;;  %v7589_v30 = vadd.f32 -1.0, %v8643_v29  ;;  %v8493_v35 = vld [vmem:[#allocation6 + $0x18c] ss:$16 sps:$4 sm:$0xff]   ;;  %6392 = vmatprep.subr.bf16.mxu1 %v8490_v48 }
 0x414   :  { %v8647_v20 = vpop.eup %8646  ;;  %v5970_v53 = vmax.f32 %v9421_v10, %v9423_v55  ;;  %v9427_v28 = vsel %vm5875_vm4, %v5480_v47, %v7587_v36  ;;  %v7594_v32 = vadd.f32 -1.0, %v8645_v62  ;;  %6435 = vmatprep.subr.bf16.mxu0 %v8493_v35  ;;  %6393 = vmatpush1.bf16.msra.mxu1 %v8488_v57  ;;  %v8496_v47 = vld [vmem:[#allocation6 + $0x1a4] ss:$16 sps:$4 sm:$0xff]  }
 0x415   :  { %v8649_v54 = vpop.eup %8648  ;;  %v9429_v59 = vsel %vm5877_vm5, %v5609_v5, %v7589_v30  ;;  %v7596_v9 = vadd.f32 -1.0, %v8647_v20  ;;  %6436 = vmatpush1.bf16.msra.mxu0 %v8491_v4  ;;  %v8499_v5 = vld [vmem:[#allocation6 + $0x1ac] ss:$16 sps:$4 sm:$0xff]   ;;  %6394 = vmatprep.subr.bf16.mxu1 %v8496_v47 }
 0x416   :  { %v8651_v21 = vpop.eup %8650  ;;  %v5971_v41 = vmax.f32 %v9427_v28, %v9429_v59  ;;  %v9433_v3 = vsel %vm5882_vm6, %v5482_v2, %v7594_v32  ;;  %v7595_v50 = vadd.f32 -1.0, %v8649_v54  ;;  %6437 = vmatprep.subr.bf16.mxu0 %v8499_v5  ;;  %v8502_v2 = vld [vmem:[#allocation6 + $0x1c4] ss:$16 sps:$4 sm:$0xff]  }
 0x417   :  { %v9435_v22 = vsel %vm5884_vm7, %v5611_v14, %v7596_v9  ;;  %v7597_v40 = vadd.f32 -1.0, %v8651_v21  ;;  %v8505_v14 = vld [vmem:[#allocation6 + $0x1cc] ss:$16 sps:$4 sm:$0xff]  }
 0x418   :  { %v5972_v24 = vmax.f32 %v9433_v3, %v9435_v22  ;;  %v9439_v52 = vsel %vm5883_vm8, %v5484_v42, %v7595_v50  ;;  %6395 = vmatpush1.bf16.msra.mxu1 %v8494_v13  ;;  %v8515_v3 = vld [vmem:[#allocation7 + $0x8] sm:$0xff]   ;;  %v8516_v22 = vld [vmem:[#allocation7 + $0x50] sm:$0xff]  }
 0x419   :  { %v9441_v15 = vsel %vm5885_vm9, %v5613_v7, %v7597_v40  ;;  %6438 = vmatpush1.bf16.msra.mxu0 %v8497_v16  ;;  %6396 = vmatprep.subr.bf16.mxu1 %v8502_v2 }
 0x41a   :  { %v5973_v26 = vmax.f32 %v9439_v52, %v9441_v15  ;;  %6439 = vmatprep.subr.bf16.mxu0 %v8505_v14  ;;  %v8518_v52 = vld [vmem:[#allocation7 + $0x58] sm:$0xff]  }
 0x41b   :  { %v8519_v15 = vld [vmem:[#allocation7 + $0x18] sm:$0xff]  }
 0x41c   :  { %6397 = vmatpush1.bf16.msra.mxu1 %v8500_v11 }
 0x41d   :  { %6440 = vmatpush1.bf16.msra.mxu0 %v8503_v63  ;;  %6398 = vmatprep.subr.bf16.mxu1 %v8508_v19 }
 0x41e   :  { %6441 = vmatprep.subr.bf16.mxu0 %v8511_v23 }
 0x420   :  { %6399 = vmatpush1.bf16.msra.mxu1 %v8506_v61 }
 0x421   :  { %6442 = vmatpush1.bf16.msra.mxu0 %v8509_v25  ;;  %7722 = vmatprep.subr.bf16.mxu1 %v8512_v6 }
 0x4a0   :  { %v5736_v42 = vpop.f32.mrb[28].mxu1 }
 0x4a1   :  { %v5894_v7 = vmin.f32 %v5736_v42, 0.0  ;;  %v5865_v45 = vpop.f32.mrb[32].mxu0  ;;  %v5738_v38 = vpop.f32.mrb[29].mxu1  ;;  %vm5878_vm10 = vcmp.gt.f32.partialorder %v5736_v42, 0.0 }
 0x4a2   :  { %v5896_v49 = vmin.f32 %v5865_v45, 0.0  ;;  %v5895_v31 = vmin.f32 %v5738_v38, 0.0  ;;  %v5867_v27 = vpop.f32.mrb[33].mxu0  ;;  %v5740_v43 = vpop.f32.mrb[30].mxu1  ;;  %vm5880_vm11 = vcmp.gt.f32.partialorder %v5865_v45, 0.0  ;;  %vm5879_vm12 = vcmp.gt.f32.partialorder %v5738_v38, 0.0 }
 0x4a3   :  { %v5914_v8 = vmul.f32 1.442695, %v5894_v7  ;;  %v5897_v18 = vmin.f32 %v5867_v27, 0.0  ;;  %v5869_v17 = vpop.f32.mrb[34].mxu0  ;;  %v5902_v36 = vmin.f32 %v5740_v43, 0.0  ;;  %v5742_v20 = vpop.f32.mrb[31].mxu1 }
 0x4a4   :  { %v5918_v44 = vmul.f32 1.442695, %v5896_v49  ;;  %v5916_v29 = vmul.f32 1.442695, %v5895_v31  ;;  %v5904_v30 = vmin.f32 %v5869_v17, 0.0  ;;  %v5871_v32 = vpop.f32.mrb[35].mxu0 }
 0x4a5   :  { %8652 = vpow2.f32 %v5914_v8  ;;  %v5920_v62 = vmul.f32 1.442695, %v5897_v18  ;;  %v5930_v54 = vmul.f32 1.442695, %v5902_v36  ;;  %v5903_v9 = vmin.f32 %v5742_v20, 0.0  ;;  %v8514_v7 = vld [vmem:[#allocation7 + $0x48] sm:$0xff]  }
 0x4a6   :  { %8654 = vpow2.f32 %v5918_v44  ;;  %v5934_v21 = vmul.f32 1.442695, %v5904_v30  ;;  %v5905_v50 = vmin.f32 %v5871_v32, 0.0  ;;  %vm5881_vm13 = vcmp.gt.f32.partialorder %v5867_v27, 0.0  ;;  %v8523_v49 = vld [vmem:[#allocation7 + $0x28] sm:$0xff]   ;;  %v8524_v31 = vld [vmem:[#allocation7 + $0x70] sm:$0xff]  }
 0x4a7   :  { %8656 = vpow2.f32 %v5916_v29  ;;  %v5932_v40 = vmul.f32 1.442695, %v5903_v9  ;;  %vm5886_vm14 = vcmp.gt.f32.partialorder %v5740_v43, 0.0  ;;  %vm5888_vm15 = vcmp.gt.f32.partialorder %v5869_v17, 0.0  ;;  %v8527_v8 = vld [vmem:[#allocation7 + $0x38] sm:$0xff]   ;;  %v8528_v18 = vld [vmem:[#allocation9] sm:$0xff]  }
 0x4a8   :  { %8658 = vpow2.f32 %v5920_v62  ;;  %v5936_v1 = vmul.f32 1.442695, %v5905_v50  ;;  %vm5887_vm0 = vcmp.gt.f32.partialorder %v5742_v20, 0.0  ;;  %vm5889_vm1 = vcmp.gt.f32.partialorder %v5871_v32, 0.0  ;;  %v8529_v44 = vld [vmem:[#allocation9 + $0x8] sm:$0xff]  }
 0x4a9   :  { %8660 = vpow2.f32 %v5930_v54 }
 0x4aa   :  { %8662 = vpow2.f32 %v5934_v21 }
 0x4ab   :  { %8664 = vpow2.f32 %v5932_v40 }
 0x4ac   :  { %8666 = vpow2.f32 %v5936_v1 }
 0x4af   :  { %v8653_v0 = vpop.eup %8652 }
 0x4b0   :  { %v8655_v34 = vpop.eup %8654  ;;  %v7590_v37 = vadd.f32 -1.0, %v8653_v0 }
 0x4b1   :  { %v8657_v51 = vpop.eup %8656  ;;  %v7592_v33 = vadd.f32 -1.0, %v8655_v34 }
 0x4b2   :  { %v8659_v39 = vpop.eup %8658  ;;  %v5958_v58 = vsel %vm5878_vm10, %v5736_v42, %v7590_v37  ;;  %v7591_v60 = vadd.f32 -1.0, %v8657_v51  ;;  %v8513_v42 = vld [vmem:[#allocation7] sm:$0xff]   ;;  %vm8831_vm10 = vmmov 0  }
 0x4b3   :  { %v8661_v12 = vpop.eup %8660  ;;  %v5974_v46 = vmax.f32 %v5970_v53, %v5958_v58  ;;  %v7593_v56 = vadd.f32 -1.0, %v8659_v39  ;;  %v5960_v35 = vsel %vm5880_vm11, %v5865_v45, %v7592_v33  ;;  %v8521_v45 = vld [vmem:[#allocation7 + $0x20] sm:$0xff]  }
 0x4b4   :  { %v8663_v48 = vpop.eup %8662  ;;  %v5959_v57 = vsel %vm5879_vm12, %v5738_v38, %v7591_v60  ;;  %v7598_v4 = vadd.f32 -1.0, %v8661_v12  ;;  %v8522_v38 = vld [vmem:[#allocation7 + $0x68] sm:$0xff]  }
 0x4b5   :  { %v8665_v47 = vpop.eup %8664  ;;  %v5978_v5 = vmax.f32 %v5974_v46, %v5960_v35  ;;  %v5975_v13 = vmax.f32 %v5971_v41, %v5959_v57  ;;  %v7600_v16 = vadd.f32 -1.0, %v8663_v48  ;;  %v5961_v14 = vsel %vm5881_vm13, %v5867_v27, %v7593_v56  ;;  %v8525_v27 = vld [vmem:[#allocation7 + $0x30] sm:$0xff]  }
 0x4b6   :  { %v8667_v2 = vpop.eup %8666  ;;  %v5966_v10 = vsel %vm5886_vm14, %v5740_v43, %v7598_v4  ;;  %v7599_v55 = vadd.f32 -1.0, %v8665_v47  ;;  %v8526_v43 = vld [vmem:[#allocation7 + $0x78] sm:$0xff]  }
 0x4b7   :  { %v5979_v53 = vmax.f32 %v5975_v13, %v5961_v14  ;;  %v5976_v11 = vmax.f32 %v5972_v24, %v5966_v10  ;;  %v7601_v63 = vadd.f32 -1.0, %v8667_v2  ;;  %v5968_v61 = vsel %vm5888_vm15, %v5869_v17, %v7600_v16  ;;  %v8517_v24 = vld [vmem:[#allocation7 + $0x10] sm:$0xff]  }
 0x4b8   :  { %v5967_v19 = vsel %vm5887_vm0, %v5742_v20, %v7599_v55  ;;  %v8830_v17 = vmov 0.0  }
 0x4b9   :  { %v5980_v25 = vmax.f32 %v5976_v11, %v5968_v61  ;;  %v5977_v28 = vmax.f32 %v5973_v26, %v5967_v19  ;;  %v5969_v59 = vsel %vm5889_vm1, %v5871_v32, %v7601_v63  ;;  %v8520_v26 = vld [vmem:[#allocation7 + $0x60] sm:$0xff]   ;;  %7753 = vmatprep.subr.bf16.mxu0 %v8830_v17 }
 0x4bb   :  { %v5982_v41 = vpack.c.bf16 %v5980_v25, %v5978_v5  ;;  %v5981_v23 = vmax.f32 %v5977_v28, %v5969_v59 }
 0x4bd   :  { %v5983_v6 = vpack.c.bf16 %v5981_v23, %v5979_v53 }
 0x4bf   :  { %6400 = vmatprep.mubr.bf16.mxu1 %v5983_v6  ;;  %6443 = vmatprep.mubr.bf16.mxu0 %v5983_v6 }
 0x4c0   :  { %6401 = vmatmul.mubr.bf16.vlgmr.msra.gmra.mrb[32].mxu1 %v5982_v41  ;;  %6444 = vmatmul.mubr.bf16.vlgmr.msra.gmra.mrb[36].mxu0 %v5982_v41 }
 0x4c1   :  { %7723 = vmatpush3.bf16.msra.mxu1 %v8513_v42  ;;  %7754 = vmatpush3.bf16.msra.mxu0 %v8528_v18 }
 0x4c2   :  { %7724 = vmatprep.subr.bf16.mxu1 %v8514_v7  ;;  %7755 = vmatprep.subr.bf16.mxu0 %v8830_v17 }
 0x4c3   :  { %7769 = vmatprep.mubr.msk.bf16.mxu0 %vm8831_vm10, %v8830_v17 }
 0x4c5   :  { %7725 = vmatpush3.bf16.msra.mxu1 %v8515_v3  ;;  %7756 = vmatpush3.bf16.msra.mxu0 %v8529_v44 }
 0x4c6   :  { %7726 = vmatprep.subr.bf16.mxu1 %v8516_v22  ;;  %7757 = vmatprep.subr.bf16.mxu0 %v8830_v17 }
 0x4c9   :  { %7727 = vmatpush3.bf16.msra.mxu1 %v8517_v24 }
 0x4ca   :  { %7728 = vmatprep.subr.bf16.mxu1 %v8518_v52 }
 0x4cd   :  { %7729 = vmatpush3.bf16.msra.mxu1 %v8519_v15 }
 0x4ce   :  { %7730 = vmatprep.subr.bf16.mxu1 %v8520_v26 }
 0x4d1   :  { %7731 = vmatpush3.bf16.msra.mxu1 %v8521_v45  ;;  %v8530_v45 = vld [vmem:[#allocation9 + $0x10] sm:$0xff]  }
 0x4d2   :  { %7732 = vmatprep.subr.bf16.mxu1 %v8522_v38  ;;  %7758 = vmatpush3.bf16.msra.mxu0 %v8530_v45  ;;  %v8531_v38 = vld [vmem:[#allocation9 + $0x18] sm:$0xff]  }
 0x4d3   :  { %7759 = vmatprep.subr.bf16.mxu0 %v8830_v17 }
 0x4d5   :  { %7733 = vmatpush3.bf16.msra.mxu1 %v8523_v49  ;;  %v8532_v49 = vld [vmem:[#allocation9 + $0x20] sm:$0xff]  }
 0x4d6   :  { %7734 = vmatprep.subr.bf16.mxu1 %v8524_v31  ;;  %7760 = vmatpush3.bf16.msra.mxu0 %v8531_v38  ;;  %v8533_v31 = vld [vmem:[#allocation9 + $0x28] sm:$0xff]  }
 0x4d7   :  { %7761 = vmatprep.subr.bf16.mxu0 %v8830_v17 }
 0x4d9   :  { %7735 = vmatpush3.bf16.msra.mxu1 %v8525_v27  ;;  %v8534_v27 = vld [vmem:[#allocation9 + $0x30] sm:$0xff]  }
 0x4da   :  { %7736 = vmatprep.subr.bf16.mxu1 %v8526_v43  ;;  %7762 = vmatpush3.bf16.msra.mxu0 %v8532_v49  ;;  %v8535_v43 = vld [vmem:[#allocation9 + $0x38] sm:$0xff]  }
 0x4db   :  { %7763 = vmatprep.subr.bf16.mxu0 %v8830_v17 }
 0x4dd   :  { %7737 = vmatpush3.bf16.msra.mxu1 %v8527_v8 }
 0x4de   :  { %7764 = vmatpush3.bf16.msra.mxu0 %v8533_v31 }
 0x4df   :  { %7765 = vmatprep.subr.bf16.mxu0 %v8830_v17 }
 0x4e2   :  { %7766 = vmatpush3.bf16.msra.mxu0 %v8534_v27 }
 0x4e3   :  { %7767 = vmatprep.subr.bf16.mxu0 %v8830_v17 }
 0x4e6   :  { %7768 = vmatpush3.bf16.msra.mxu0 %v8535_v43 }
 0x593   :  { %v6402_v29 = vpop.f32.mrb[32].mxu1  ;;  %v6445_v36 = vpop.f32.mrb[36].mxu0 }
 0x594   :  { %v6462_v62 = vmin.f32 %v6402_v29, 0.0  ;;  %v6464_v30 = vmin.f32 %v6445_v36, 0.0  ;;  %v6404_v20 = vpop.f32.mrb[33].mxu1  ;;  %v6447_v32 = vpop.f32.mrb[37].mxu0  ;;  %vm6454_vm2 = vcmp.gt.f32.partialorder %v6402_v29, 0.0  ;;  %vm6456_vm3 = vcmp.gt.f32.partialorder %v6445_v36, 0.0 }
 0x595   :  { %v6463_v54 = vmin.f32 %v6404_v20, 0.0  ;;  %v6465_v9 = vmin.f32 %v6447_v32, 0.0  ;;  %v6406_v21 = vpop.f32.mrb[34].mxu1  ;;  %v6449_v50 = vpop.f32.mrb[38].mxu0  ;;  %vm6455_vm4 = vcmp.gt.f32.partialorder %v6404_v20, 0.0  ;;  %vm6457_vm5 = vcmp.gt.f32.partialorder %v6447_v32, 0.0 }
 0x596   :  { %v6470_v40 = vmul.f32 1.442695, %v6462_v62  ;;  %v6474_v1 = vmul.f32 1.442695, %v6464_v30  ;;  %v6466_v0 = vmin.f32 %v6406_v21, 0.0  ;;  %v6468_v51 = vmin.f32 %v6449_v50, 0.0 }
 0x597   :  { %v6472_v34 = vmul.f32 1.442695, %v6463_v54  ;;  %v6476_v37 = vmul.f32 1.442695, %v6465_v9  ;;  %v6408_v39 = vpop.f32.mrb[35].mxu1  ;;  %v6451_v58 = vpop.f32.mrb[39].mxu0 }
 0x598   :  { %8668 = vpow2.f32 %v6470_v40  ;;  %v6478_v33 = vmul.f32 1.442695, %v6466_v0  ;;  %v6482_v60 = vmul.f32 1.442695, %v6468_v51  ;;  %v6467_v12 = vmin.f32 %v6408_v39, 0.0 }
 0x599   :  { %8670 = vpow2.f32 %v6474_v1  ;;  %v6469_v46 = vmin.f32 %v6451_v58, 0.0  ;;  %vm6458_vm6 = vcmp.gt.f32.partialorder %v6406_v21, 0.0  ;;  %vm6460_vm7 = vcmp.gt.f32.partialorder %v6449_v50, 0.0 }
 0x59a   :  { %8672 = vpow2.f32 %v6472_v34  ;;  %v6480_v56 = vmul.f32 1.442695, %v6467_v12  ;;  %vm6459_vm8 = vcmp.gt.f32.partialorder %v6408_v39, 0.0  ;;  %vm6461_vm9 = vcmp.gt.f32.partialorder %v6451_v58, 0.0 }
 0x59b   :  { %8674 = vpow2.f32 %v6476_v37  ;;  %v6484_v48 = vmul.f32 1.442695, %v6469_v46 }
 0x59c   :  { %8676 = vpow2.f32 %v6478_v33 }
 0x59d   :  { %8678 = vpow2.f32 %v6482_v60 }
 0x59e   :  { %8680 = vpow2.f32 %v6480_v56 }
 0x59f   :  { %8682 = vpow2.f32 %v6484_v48 }
 0x5a2   :  { %v8669_v35 = vpop.eup %8668 }
 0x5a3   :  { %v8671_v57 = vpop.eup %8670  ;;  %v7666_v4 = vadd.f32 -1.0, %v8669_v35 }
 0x5a4   :  { %v8673_v47 = vpop.eup %8672  ;;  %v7668_v5 = vadd.f32 -1.0, %v8671_v57 }
 0x5a5   :  { %v8675_v13 = vpop.eup %8674  ;;  %v6494_v16 = vsel %vm6454_vm2, %v6402_v29, %v7666_v4  ;;  %v7667_v2 = vadd.f32 -1.0, %v8673_v47 }
 0x5a6   :  { %v8677_v14 = vpop.eup %8676  ;;  %v6496_v10 = vsel %vm6456_vm3, %v6445_v36, %v7668_v5  ;;  %v7669_v55 = vadd.f32 -1.0, %v8675_v13 }
 0x5a7   :  { %v8679_v53 = vpop.eup %8678  ;;  %v6502_v11 = vmax.f32 %v6494_v16, %v6496_v10  ;;  %v6495_v63 = vsel %vm6455_vm4, %v6404_v20, %v7667_v2  ;;  %v7670_v61 = vadd.f32 -1.0, %v8677_v14 }
 0x5a8   :  { %v8681_v19 = vpop.eup %8680  ;;  %v6497_v25 = vsel %vm6457_vm5, %v6447_v32, %v7669_v55  ;;  %v7672_v28 = vadd.f32 -1.0, %v8679_v53 }
 0x5a9   :  { %v8683_v59 = vpop.eup %8682  ;;  %v6503_v41 = vmax.f32 %v6495_v63, %v6497_v25  ;;  %v6498_v23 = vsel %vm6458_vm6, %v6406_v21, %v7670_v61  ;;  %v7671_v6 = vadd.f32 -1.0, %v8681_v19 }
 0x5aa   :  { %v6500_v42 = vsel %vm6460_vm7, %v6449_v50, %v7672_v28  ;;  %v7673_v7 = vadd.f32 -1.0, %v8683_v59 }
 0x5ab   :  { %v6504_v3 = vmax.f32 %v6498_v23, %v6500_v42  ;;  %v6499_v22 = vsel %vm6459_vm8, %v6408_v39, %v7671_v6 }
 0x5ac   :  { %v6501_v24 = vsel %vm6461_vm9, %v6451_v58, %v7673_v7 }
 0x5ad   :  { %v6506_v52 = vpack.c.bf16 %v6504_v3, %v6502_v11  ;;  %v6505_v15 = vmax.f32 %v6499_v22, %v6501_v24 }
 0x5af   :  { %v6507_v26 = vpack.c.bf16 %v6505_v15, %v6503_v41 }
 0x5b1   :  { %6668 = vmatprep.mubr.bf16.mxu1 %v6507_v26 }
 0x5b2   :  { %6669 = vmatmul.mubr.bf16.vlgmr.msra.gmra.mrb[36].mxu1 %v6506_v52 }
 0x685   :  { %v7738_v8 = vpop.f32.mrb[36].mxu1 }
 0x686   :  { %v7739_v18 = vpop.f32.mrb[37].mxu1 }
 0x687   :  { %v7740_v44 = vadd.f32 %v7739_v18, %v7738_v8  ;;  %v7741_v29 = vpop.f32.mrb[38].mxu1 }
 0x688   :  { %v7742_v36 = vpop.f32.mrb[39].mxu1 }
 0x689   :  { %v6679_v62 = vmin.f32 %v7740_v44, 0.0  ;;  %v7743_v30 = vadd.f32 %v7742_v36, %v7741_v29  ;;  %vm6677_vm11 = vcmp.gt.f32.partialorder %v7740_v44, 0.0 }
 0x68b   :  { %v6681_v20 = vmul.f32 1.442695, %v6679_v62  ;;  %v6680_v32 = vmin.f32 %v7743_v30, 0.0  ;;  %vm6678_vm12 = vcmp.gt.f32.partialorder %v7743_v30, 0.0 }
 0x68d   :  { %8684 = vpow2.f32 %v6681_v20  ;;  %v6683_v54 = vmul.f32 1.442695, %v6680_v32 }
 0x68f   :  { %8686 = vpow2.f32 %v6683_v54 }
 0x697   :  { %v8685_v9 = vpop.eup %8684 }
 0x698   :  { %v7690_v21 = vadd.f32 -1.0, %v8685_v9 }
 0x699   :  { %v8687_v50 = vpop.eup %8686 }
 0x69a   :  { %v7691_v40 = vadd.f32 -1.0, %v8687_v50  ;;  %v6687_v1 = vsel %vm6677_vm11, %v7740_v44, %v7690_v21 }
 0x69c   :  { %v6688_v17 = vsel %vm6678_vm12, %v7743_v30, %v7691_v40 }
 0x69d   :  { %v6689_v0 = vpack.c.bf16 %v6688_v17, %v6687_v1 }
 0x69f   :  { %7770 = vmatmul.mubr.bf16.vlgmr.msra.gmra.mrb[40].mxu0 %v6689_v0 }
 0x772   :  { %v6788_v34 = vpop.f32.mrb[40].mxu0 }
 0x773   :  { %v6795_v37 = vsub.f32 0.0, %v6788_v34  ;;  %v7771_v51 = vpop.f32.mrb[41].mxu0 }
 0x774   :  { %v6791_v33 = vpop.f32.mrb[42].mxu0 }
 0x775   :  { %v6797_v39 = vmul.f32 1.442695, %v6795_v37  ;;  %v6796_v58 = vsub.f32 0.0, %v6791_v33  ;;  %v7772_v60 = vpop.f32.mrb[43].mxu0 }
 0x777   :  { %8688 = vpow2.f32 %v6797_v39  ;;  %v6799_v12 = vmul.f32 1.442695, %v6796_v58 }
 0x779   :  { %8690 = vpow2.f32 %v6799_v12 }
 0x781   :  { %v8689_v46 = vpop.eup %8688 }
 0x782   :  { %v6801_v56 = vadd.f32 1.0, %v8689_v46 }
 0x783   :  { %v8691_v48 = vpop.eup %8690 }
 0x784   :  { %8692 = vrcp.f32 %v6801_v56  ;;  %v6802_v35 = vadd.f32 1.0, %v8691_v48 }
 0x786   :  { %8694 = vrcp.f32 %v6802_v35 }
 0x78e   :  { %v8693_v57 = vpop.eup %8692 }
 0x78f   :  { %6805 = vst [vmem:[%s9478_s6] sm:$0xff] %v8693_v57 }
 0x790   :  { %v8695_v4 = vpop.eup %8694 }
 0x791   :  { %6806 = vst [vmem:[%s9478_s6 + $0x8] sm:$0xff] %v8695_v4 }
 0x792   :  { %6811 = vsyncpa [#allocation3], 1 }
 0x793   :  { %6812 = vsyncpa [#allocation5], 1 }
 0x794   :  { %6813 = vsyncpa [#allocation8], 1 }

</bundles_post_ra>
